<compile_context>
chip_gen: v7x
topology: tpu7x:2x2x1
jax: 0.10.0
libtpu: 0.0.40
codegen_flags: <defaults>
</compile_context>

<pallas_src>
import functools

import jax
import jax.numpy as jnp
from jax.experimental import pallas as pl
from jax.experimental.pallas import tpu as pltpu


def _round_up(x, m):
    return ((x + m - 1) // m) * m


def vae_kernel(
    x_ref, eps_ref,
    w1_ref, b1_ref,          # fc1: (D, H) dot_dtype, (1, H) f32
    wmulv_ref, bmulv_ref,    # [fc_mu | fc_logvar]: (H, 2L) dot_dtype, (1, 2L) f32
    wdt_ref, bdt_ref,        # [fc2 | time.net[0]]: (L, H+TP) dot_dtype, (1, H+TP) f32
    w3_ref, b3_ref,          # fc3: (H, D) dot_dtype, (1, D) f32
    wt2_ref, bt2_ref,        # time.net[2] weight as a ROW: (1, TP) f32, (1, 1) f32
    out_ref,                 # packed (tm, OUT_W): [recon | mu | logvar | z | t | pad]
    *, approx_softmax_recip=False,
):
    dot_dt = w1_ref.dtype
    x = x_ref[...]
    eps = eps_ref[...]
    L = eps.shape[1]
    H = w3_ref.shape[0]

    # ---- encode: Linear -> ReLU, then fused (mu | logvar) ----
    h = jnp.dot(x.astype(dot_dt), w1_ref[...],
                preferred_element_type=jnp.float32) + b1_ref[...]
    h = jnp.maximum(h, 0.0)
    mulv = jnp.dot(h.astype(dot_dt), wmulv_ref[...],
                   preferred_element_type=jnp.float32) + bmulv_ref[...]
    mu = mulv[:, :L]
    logvar = mulv[:, L:]

    # ---- reparameterize (f32 elementwise) ----
    z = mu + eps * jnp.exp(0.5 * logvar)

    # ---- fused (decoder hidden | time-predictor hidden): one dot from z ----
    dt = jnp.dot(z.astype(dot_dt), wdt_ref[...],
                 preferred_element_type=jnp.float32) + bdt_ref[...]
    dt = jnp.maximum(dt, 0.0)
    dh = dt[:, :H]    # decoder hidden (tm, H)
    th = dt[:, H:]    # time-predictor hidden (tm, TP)

    # ---- time head: VPU multiply + lane reduce instead of a 1-lane MXU dot,
    #      sigmoid as 0.5*(tanh(x/2)+1) (EUP) ----
    tl = jnp.sum(th * wt2_ref[...], axis=-1, keepdims=True) + bt2_ref[...]
    t = 0.5 * (jnp.tanh(0.5 * tl) + 1.0)

    # ---- decode head: Linear(H,D) -> softmax(dim=-1) ----
    logits = jnp.dot(dh.astype(dot_dt), w3_ref[...],
                     preferred_element_type=jnp.float32) + b3_ref[...]
    m = jnp.max(logits, axis=-1, keepdims=True)
    e = jnp.exp(logits - m)
    denom = jnp.sum(e, axis=-1, keepdims=True)
    if approx_softmax_recip:
        recon = e * pl.reciprocal(denom, approx=True)
    else:
        recon = e * (1.0 / denom)   # exact: recon rows sum to 1 for the NB/multinomial loss

    # ---- lane-dense packed store: [recon | mu | logvar | z | t | zero-pad] ----
    pieces = [recon, mulv, z, t]
    used = recon.shape[1] + mulv.shape[1] + z.shape[1] + t.shape[1]
    pad = out_ref.shape[1] - used
    if pad > 0:
        pieces.append(jnp.zeros((x.shape[0], pad), jnp.float32))
    out_ref[...] = jnp.concatenate(pieces, axis=-1).astype(out_ref.dtype)


def prepare_params(params, dot_dtype=jnp.bfloat16):
    """Build kernel-ready parameters ONCE per weight update (hoisted out of the
    per-call wrapper): fuse weights that share a dot LHS and pre-cast the dot
    operands to `dot_dtype`.  Biases stay f32 (added post-dot in f32)."""
    return {
        "w1": params["w1"].astype(dot_dtype),
        "b1": params["b1"],
        "wmulv": jnp.concatenate([params["wmu"], params["wlv"]], axis=1).astype(dot_dtype),
        "bmulv": jnp.concatenate([params["bmu"], params["blv"]], axis=1),
        "wdt": jnp.concatenate([params["w2"], params["wt1"]], axis=1).astype(dot_dtype),
        "bdt": jnp.concatenate([params["b2"], params["bt1"]], axis=1),
        "w3": params["w3"].astype(dot_dtype),
        "b3": params["b3"],
        "wt2_row": params["wt2"].reshape(1, -1).astype(jnp.float32),  # (1, TP), VPU path
        "bt2": params["bt2"],
    }


def vae_forward(x, eps, kp, *, tm=1024, out_dtype=jnp.float32,
                approx_softmax_recip=False, vmem_limit_bytes=64 * 1024 * 1024):
    """Full VAE forward in one Pallas kernel, tiled over the batch dimension.

    tm is the primary sweep knob (v5e: 512-1024, v6e: 1024-2048, v7x: 2048-4096;
    on v7x keep grid_n = cdiv(N, tm) >= 2 and even so both TensorCores are
    busy).  Ragged N is handled by Pallas' masked edge tile -- no wrapper pad.
    """
    N, D = x.shape
    L = eps.shape[1]
    H = kp["w3"].shape[0]
    TP = kp["wt2_row"].shape[1]

    # Clamp the tile to the (8-aligned) batch so tiny batches don't waste compute.
    tm_eff = max(8, min(_round_up(tm, 8), _round_up(N, 8)))
    grid_n = pl.cdiv(N, tm_eff)

    # Packed output width, rounded up to a full 128-lane multiple.
    out_w = _round_up(D + 3 * L + 1, 128)

    def row_spec(cols):
        # batch-tiled operand / output; last partial tile is masked by Pallas
        return pl.BlockSpec((tm_eff, cols), lambda i: (i, 0))

    def full_spec(shape):
        # weight / bias resident across all batch tiles
        return pl.BlockSpec(shape, lambda i: (0, 0))

    in_specs = [
        row_spec(D),                       # x
        row_spec(L),                       # eps
        full_spec(kp["w1"].shape), full_spec(kp["b1"].shape),        # fc1
        full_spec(kp["wmulv"].shape), full_spec(kp["bmulv"].shape),  # fused mu|logvar
        full_spec(kp["wdt"].shape), full_spec(kp["bdt"].shape),      # fused fc2|time[0]
        full_spec(kp["w3"].shape), full_spec(kp["b3"].shape),        # fc3
        full_spec(kp["wt2_row"].shape), full_spec(kp["bt2"].shape),  # time[2]
    ]
    out_specs = row_spec(out_w)
    out_shape = jax.ShapeDtypeStruct((N, out_w), out_dtype)

    # Advisory cost estimate for the XLA scheduler.
    weight_args = (kp["w1"], kp["b1"], kp["wmulv"], kp["bmulv"], kp["wdt"],
                   kp["bdt"], kp["w3"], kp["b3"], kp["wt2_row"], kp["bt2"])
    weight_bytes = sum(int(w.size) * w.dtype.itemsize for w in weight_args)
    out_itemsize = jnp.dtype(out_dtype).itemsize
    flops = 2 * N * (D * H + H * 2 * L + L * (H + TP) + TP + H * D)
    transcendentals = N * (L + D + 1)   # exp(std), softmax exp, tanh
    bytes_accessed = (int(x.size) * x.dtype.itemsize
                      + int(eps.size) * eps.dtype.itemsize
                      + N * out_w * out_itemsize + weight_bytes)

    kernel = functools.partial(vae_kernel,
                               approx_softmax_recip=approx_softmax_recip)

    fn = pl.pallas_call(
        kernel,
        out_shape=out_shape,
        grid_spec=pltpu.PrefetchScalarGridSpec(
            num_scalar_prefetch=0,
            grid=(grid_n,),
            in_specs=in_specs,
            out_specs=out_specs,
        ),
        compiler_params=pltpu.CompilerParams(
            dimension_semantics=("parallel",),
            vmem_limit_bytes=vmem_limit_bytes,
        ),
        cost_estimate=pl.CostEstimate(
            flops=flops,
            transcendentals=transcendentals,
            bytes_accessed=bytes_accessed,
        ),
    )

    packed = fn(
        x, eps,
        kp["w1"], kp["b1"],
        kp["wmulv"], kp["bmulv"],
        kp["wdt"], kp["bdt"],
        kp["w3"], kp["b3"],
        kp["wt2_row"], kp["bt2"],
    )

    recon = packed[:, :D]
    mu = packed[:, D:D + L]
    logvar = packed[:, D + L:D + 2 * L]
    z = packed[:, D + 2 * L:D + 3 * L]
    t = packed[:, D + 3 * L:D + 3 * L + 1]
    return recon, z, mu, logvar, t


def init_params(key, input_dim, hidden_dim, latent_dim):
    """Deterministic parameter init. Linear weights stored as (in, out)."""
    ks = jax.random.split(key, 15)

    def linear(kw, kb, fan_in, fan_out):
        # torch-like uniform(-1/sqrt(fan_in), 1/sqrt(fan_in))
        bound = 1.0 / jnp.sqrt(jnp.float32(fan_in))
        w = jax.random.uniform(kw, (fan_in, fan_out), jnp.float32, -bound, bound)
        b = jax.random.uniform(kb, (1, fan_out), jnp.float32, -bound, bound)
        return w, b

    p = {}
    p["w1"], p["b1"] = linear(ks[0], ks[1], input_dim, hidden_dim)
    p["wmu"], p["bmu"] = linear(ks[2], ks[3], hidden_dim, latent_dim)
    p["wlv"], p["blv"] = linear(ks[4], ks[5], hidden_dim, latent_dim)
    p["w2"], p["b2"] = linear(ks[6], ks[7], latent_dim, hidden_dim)
    p["w3"], p["b3"] = linear(ks[8], ks[9], hidden_dim, input_dim)
    p["wt1"], p["bt1"] = linear(ks[10], ks[11], latent_dim, 128)
    p["wt2"], p["bt2"] = linear(ks[12], ks[13], 128, 1)
    # self.disp parameter (not used in forward(); only in vae_loss)
    p["disp"] = jax.random.normal(ks[14], (input_dim,), jnp.float32)
    return p


def vae_forward_ref(x, eps, p, dot_dtype=jnp.float32):
    """Pure-JAX reference of the PyTorch forward.  `dot_dtype` mirrors the
    kernel's MXU operand precision so the comparison is apples-to-apples."""
    def dot(a, w):
        return jnp.dot(a.astype(dot_dtype), w.astype(dot_dtype),
                       preferred_element_type=jnp.float32)

    h = jnp.maximum(dot(x, p["w1"]) + p["b1"], 0.0)
    mu = dot(h, p["wmu"]) + p["bmu"]
    logvar = dot(h, p["wlv"]) + p["blv"]
    z = mu + eps * jnp.exp(0.5 * logvar)
    th = jnp.maximum(dot(z, p["wt1"]) + p["bt1"], 0.0)
    t = jax.nn.sigmoid(jnp.dot(th, p["wt2"]) + p["bt2"])          # time head stays f32
    dh = jnp.maximum(dot(z, p["w2"]) + p["b2"], 0.0)
    recon = jax.nn.softmax(dot(dh, p["w3"]) + p["b3"], axis=-1)
    return recon, z, mu, logvar, t


if __name__ == "__main__":
    # Small shapes consistent with the module: (batch, input_dim) input.
    # N is deliberately NOT a multiple of 8/tile to exercise the masked edge tile.
    N, input_dim, hidden_dim, latent_dim = 300, 64, 32, 16

    key = jax.random.PRNGKey(0)
    kx, keps, kparam = jax.random.split(key, 3)
    x = jax.random.uniform(kx, (N, input_dim), jnp.float32)
    eps = jax.random.normal(keps, (N, latent_dim), jnp.float32)
    params = init_params(kparam, input_dim, hidden_dim, latent_dim)
    kparams = prepare_params(params, dot_dtype=jnp.bfloat16)

    outs = vae_forward(x, eps, kparams)          # default tm=1024, clamped to 304
    outs = jax.block_until_ready(outs)

    refs = vae_forward_ref(x, eps, params, dot_dtype=jnp.bfloat16)
    names = ("recon_x", "z", "mu", "logvar", "t")
    for name, o, r in zip(names, outs, refs):
        assert o.shape == r.shape and o.dtype == r.dtype, name
        err = float(jnp.max(jnp.abs(o - r)))
        assert err < 2e-3, f"{name} mismatch vs reference: {err}"

    print("KERNEL_OK")
</pallas_src>

<mosaic_0001>
module attributes {stable_mosaic.version = 11 : i64} {
  func.func @vae_kernel(%arg0: i32, %arg1: memref<304x64xf32, #tpu.memory_space<vmem>>, %arg2: memref<304x16xf32, #tpu.memory_space<vmem>>, %arg3: memref<64x32xbf16, #tpu.memory_space<vmem>>, %arg4: memref<1x32xf32, #tpu.memory_space<vmem>>, %arg5: memref<32x32xbf16, #tpu.memory_space<vmem>>, %arg6: memref<1x32xf32, #tpu.memory_space<vmem>>, %arg7: memref<16x160xbf16, #tpu.memory_space<vmem>>, %arg8: memref<1x160xf32, #tpu.memory_space<vmem>>, %arg9: memref<32x64xbf16, #tpu.memory_space<vmem>>, %arg10: memref<1x64xf32, #tpu.memory_space<vmem>>, %arg11: memref<1x128xf32, #tpu.memory_space<vmem>>, %arg12: memref<1x1xf32, #tpu.memory_space<vmem>>, %arg13: memref<304x128xf32, #tpu.memory_space<vmem>>) attributes {dimension_semantics = [#tpu.dimension_semantics<parallel>], iteration_bounds = array<i64: 1>, scalar_prefetch = 0 : i64, scratch_operands = 0 : i64, tpu.core_type = #tpu.core_type<tc>, window_params = [{transform_indices = @transform_0, window_bounds = array<i64: 304, 64>}, {transform_indices = @transform_1, window_bounds = array<i64: 304, 16>}, {pipeline_mode = #tpu.pipeline_mode<synchronous>, transform_indices = @transform_2, window_bounds = array<i64: 64, 32>}, {pipeline_mode = #tpu.pipeline_mode<synchronous>, transform_indices = @transform_3, window_bounds = array<i64: 1, 32>}, {pipeline_mode = #tpu.pipeline_mode<synchronous>, transform_indices = @transform_4, window_bounds = array<i64: 32, 32>}, {pipeline_mode = #tpu.pipeline_mode<synchronous>, transform_indices = @transform_5, window_bounds = array<i64: 1, 32>}, {pipeline_mode = #tpu.pipeline_mode<synchronous>, transform_indices = @transform_6, window_bounds = array<i64: 16, 160>}, {pipeline_mode = #tpu.pipeline_mode<synchronous>, transform_indices = @transform_7, window_bounds = array<i64: 1, 160>}, {pipeline_mode = #tpu.pipeline_mode<synchronous>, transform_indices = @transform_8, window_bounds = array<i64: 32, 64>}, {pipeline_mode = #tpu.pipeline_mode<synchronous>, transform_indices = @transform_9, window_bounds = array<i64: 1, 64>}, {pipeline_mode = #tpu.pipeline_mode<synchronous>, transform_indices = @transform_10, window_bounds = array<i64: 1, 128>}, {pipeline_mode = #tpu.pipeline_mode<synchronous>, transform_indices = @transform_11, window_bounds = array<i64: 1, 1>}, {transform_indices = @transform_12, window_bounds = array<i64: 304, 128>}]} {
    %c0 = arith.constant 0 : index
    %c0_0 = arith.constant 0 : index
    %0 = vector.load %arg1[%c0, %c0_0] : memref<304x64xf32, #tpu.memory_space<vmem>>, vector<304x64xf32>
    %c0_1 = arith.constant 0 : index
    %c0_2 = arith.constant 0 : index
    %1 = vector.load %arg2[%c0_1, %c0_2] : memref<304x16xf32, #tpu.memory_space<vmem>>, vector<304x16xf32>
    %2 = arith.truncf %0 : vector<304x64xf32> to vector<304x64xbf16>
    %c0_3 = arith.constant 0 : index
    %c0_4 = arith.constant 0 : index
    %3 = vector.load %arg3[%c0_3, %c0_4] : memref<64x32xbf16, #tpu.memory_space<vmem>>, vector<64x32xbf16>
    %cst = arith.constant dense<0.000000e+00> : vector<304x32xf32>
    %4 = tpu.matmul %2, %3, %cst {dimension_numbers = #tpu.dot_dimension_numbers<[1], [0], [0], [1], [0, 0, 1, 1], [], []>} : vector<304x64xbf16>, vector<64x32xbf16>, vector<304x32xf32> -> vector<304x32xf32>
    %c0_5 = arith.constant 0 : index
    %c0_6 = arith.constant 0 : index
    %5 = vector.load %arg4[%c0_5, %c0_6] : memref<1x32xf32, #tpu.memory_space<vmem>>, vector<1x32xf32>
    %6 = vector.broadcast %5 : vector<1x32xf32> to vector<304x32xf32>
    %7 = arith.addf %4, %6 : vector<304x32xf32>
    %cst_7 = arith.constant 0.000000e+00 : f32
    %8 = vector.broadcast %cst_7 : f32 to vector<304x32xf32>
    %9 = arith.maximumf %7, %8 : vector<304x32xf32>
    %10 = arith.truncf %9 : vector<304x32xf32> to vector<304x32xbf16>
    %c0_8 = arith.constant 0 : index
    %c0_9 = arith.constant 0 : index
    %11 = vector.load %arg5[%c0_8, %c0_9] : memref<32x32xbf16, #tpu.memory_space<vmem>>, vector<32x32xbf16>
    %cst_10 = arith.constant dense<0.000000e+00> : vector<304x32xf32>
    %12 = tpu.matmul %10, %11, %cst_10 {dimension_numbers = #tpu.dot_dimension_numbers<[1], [0], [0], [1], [0, 0, 1, 1], [], []>} : vector<304x32xbf16>, vector<32x32xbf16>, vector<304x32xf32> -> vector<304x32xf32>
    %c0_11 = arith.constant 0 : index
    %c0_12 = arith.constant 0 : index
    %13 = vector.load %arg6[%c0_11, %c0_12] : memref<1x32xf32, #tpu.memory_space<vmem>>, vector<1x32xf32>
    %14 = vector.broadcast %13 : vector<1x32xf32> to vector<304x32xf32>
    %15 = arith.addf %12, %14 : vector<304x32xf32>
    %16 = vector.extract_strided_slice %15 {offsets = [0, 0], sizes = [304, 16], strides = [1, 1]} : vector<304x32xf32> to vector<304x16xf32>
    %17 = vector.extract_strided_slice %15 {offsets = [0, 16], sizes = [304, 16], strides = [1, 1]} : vector<304x32xf32> to vector<304x16xf32>
    %cst_13 = arith.constant 5.000000e-01 : f32
    %18 = vector.broadcast %cst_13 : f32 to vector<304x16xf32>
    %19 = arith.mulf %18, %17 : vector<304x16xf32>
    %20 = math.exp %19 : vector<304x16xf32>
    %21 = arith.mulf %1, %20 : vector<304x16xf32>
    %22 = arith.addf %16, %21 : vector<304x16xf32>
    %23 = arith.truncf %22 : vector<304x16xf32> to vector<304x16xbf16>
    %c0_14 = arith.constant 0 : index
    %c0_15 = arith.constant 0 : index
    %24 = vector.load %arg7[%c0_14, %c0_15] : memref<16x160xbf16, #tpu.memory_space<vmem>>, vector<16x160xbf16>
    %cst_16 = arith.constant dense<0.000000e+00> : vector<304x160xf32>
    %25 = tpu.matmul %23, %24, %cst_16 {dimension_numbers = #tpu.dot_dimension_numbers<[1], [0], [0], [1], [0, 0, 1, 1], [], []>} : vector<304x16xbf16>, vector<16x160xbf16>, vector<304x160xf32> -> vector<304x160xf32>
    %c0_17 = arith.constant 0 : index
    %c0_18 = arith.constant 0 : index
    %26 = vector.load %arg8[%c0_17, %c0_18] : memref<1x160xf32, #tpu.memory_space<vmem>>, vector<1x160xf32>
    %27 = vector.broadcast %26 : vector<1x160xf32> to vector<304x160xf32>
    %28 = arith.addf %25, %27 : vector<304x160xf32>
    %cst_19 = arith.constant 0.000000e+00 : f32
    %29 = vector.broadcast %cst_19 : f32 to vector<304x160xf32>
    %30 = arith.maximumf %28, %29 : vector<304x160xf32>
    %31 = vector.extract_strided_slice %30 {offsets = [0, 0], sizes = [304, 32], strides = [1, 1]} : vector<304x160xf32> to vector<304x32xf32>
    %32 = vector.extract_strided_slice %30 {offsets = [0, 32], sizes = [304, 128], strides = [1, 1]} : vector<304x160xf32> to vector<304x128xf32>
    %c0_20 = arith.constant 0 : index
    %c0_21 = arith.constant 0 : index
    %33 = vector.load %arg11[%c0_20, %c0_21] : memref<1x128xf32, #tpu.memory_space<vmem>>, vector<1x128xf32>
    %34 = vector.broadcast %33 : vector<1x128xf32> to vector<304x128xf32>
    %35 = arith.mulf %32, %34 : vector<304x128xf32>
    %cst_22 = arith.constant dense<0.000000e+00> : vector<304xf32>
    %36 = vector.multi_reduction <add>, %35, %cst_22 [1] : vector<304x128xf32> to vector<304xf32>
    %37 = vector.shape_cast %36 : vector<304xf32> to vector<304x1xf32>
    %c0_23 = arith.constant 0 : index
    %c0_24 = arith.constant 0 : index
    %38 = vector.load %arg12[%c0_23, %c0_24] : memref<1x1xf32, #tpu.memory_space<vmem>>, vector<1x1xf32>
    %39 = vector.broadcast %38 : vector<1x1xf32> to vector<304x1xf32>
    %40 = arith.addf %37, %39 : vector<304x1xf32>
    %cst_25 = arith.constant 5.000000e-01 : f32
    %41 = vector.broadcast %cst_25 : f32 to vector<304x1xf32>
    %42 = arith.mulf %41, %40 : vector<304x1xf32>
    %43 = math.tanh %42 : vector<304x1xf32>
    %cst_26 = arith.constant 1.000000e+00 : f32
    %44 = vector.broadcast %cst_26 : f32 to vector<304x1xf32>
    %45 = arith.addf %43, %44 : vector<304x1xf32>
    %cst_27 = arith.constant 5.000000e-01 : f32
    %46 = vector.broadcast %cst_27 : f32 to vector<304x1xf32>
    %47 = arith.mulf %46, %45 : vector<304x1xf32>
    %48 = arith.truncf %31 : vector<304x32xf32> to vector<304x32xbf16>
    %c0_28 = arith.constant 0 : index
    %c0_29 = arith.constant 0 : index
    %49 = vector.load %arg9[%c0_28, %c0_29] : memref<32x64xbf16, #tpu.memory_space<vmem>>, vector<32x64xbf16>
    %cst_30 = arith.constant dense<0.000000e+00> : vector<304x64xf32>
    %50 = tpu.matmul %48, %49, %cst_30 {dimension_numbers = #tpu.dot_dimension_numbers<[1], [0], [0], [1], [0, 0, 1, 1], [], []>} : vector<304x32xbf16>, vector<32x64xbf16>, vector<304x64xf32> -> vector<304x64xf32>
    %c0_31 = arith.constant 0 : index
    %c0_32 = arith.constant 0 : index
    %51 = vector.load %arg10[%c0_31, %c0_32] : memref<1x64xf32, #tpu.memory_space<vmem>>, vector<1x64xf32>
    %52 = vector.broadcast %51 : vector<1x64xf32> to vector<304x64xf32>
    %53 = arith.addf %50, %52 : vector<304x64xf32>
    %cst_33 = arith.constant dense<0xFF800000> : vector<304xf32>
    %54 = vector.multi_reduction <maximumf>, %53, %cst_33 [1] : vector<304x64xf32> to vector<304xf32>
    %55 = vector.shape_cast %54 : vector<304xf32> to vector<304x1xf32>
    %56 = vector.broadcast %55 : vector<304x1xf32> to vector<304x64xf32>
    %57 = arith.subf %53, %56 : vector<304x64xf32>
    %58 = math.exp %57 : vector<304x64xf32>
    %cst_34 = arith.constant dense<0.000000e+00> : vector<304xf32>
    %59 = vector.multi_reduction <add>, %58, %cst_34 [1] : vector<304x64xf32> to vector<304xf32>
    %60 = vector.shape_cast %59 : vector<304xf32> to vector<304x1xf32>
    %cst_35 = arith.constant 1.000000e+00 : f32
    %61 = vector.broadcast %cst_35 : f32 to vector<304x1xf32>
    %62 = arith.divf %61, %60 : vector<304x1xf32>
    %63 = vector.broadcast %62 : vector<304x1xf32> to vector<304x64xf32>
    %64 = arith.mulf %58, %63 : vector<304x64xf32>
    %cst_36 = arith.constant 0.000000e+00 : f32
    %65 = vector.broadcast %cst_36 : f32 to vector<304x15xf32>
    %66 = tpu.concatenate %64, %15, %22, %47, %65 in 1 : vector<304x64xf32>, vector<304x32xf32>, vector<304x16xf32>, vector<304x1xf32>, vector<304x15xf32> -> vector<304x128xf32>
    %c0_37 = arith.constant 0 : index
    %c0_38 = arith.constant 0 : index
    %67 = vector.load %arg13[%c0_37, %c0_38] : memref<304x128xf32, #tpu.memory_space<vmem>>, vector<304x128xf32>
    tpu.vector_store %arg13[%c0_37, %c0_38], %66 {strides = array<i32>} : memref<304x128xf32, #tpu.memory_space<vmem>>, vector<304x128xf32>,
    return
  }
  func.func @transform_0(%arg0: i32) -> (i32, i32) {
    %c0_i32 = arith.constant 0 : i32
    %c0_i32_0 = arith.constant 0 : i32
    return %arg0, %c0_i32 : i32, i32
  }
  func.func @transform_1(%arg0: i32) -> (i32, i32) {
    %c0_i32 = arith.constant 0 : i32
    %c0_i32_0 = arith.constant 0 : i32
    return %arg0, %c0_i32 : i32, i32
  }
  func.func @transform_2(%arg0: i32) -> (i32, i32) {
    %c0_i32 = arith.constant 0 : i32
    %c0_i32_0 = arith.constant 0 : i32
    %c0_i32_1 = arith.constant 0 : i32
    return %c0_i32, %c0_i32_0 : i32, i32
  }
  func.func @transform_3(%arg0: i32) -> (i32, i32) {
    %c0_i32 = arith.constant 0 : i32
    %c0_i32_0 = arith.constant 0 : i32
    %c0_i32_1 = arith.constant 0 : i32
    return %c0_i32, %c0_i32_0 : i32, i32
  }
  func.func @transform_4(%arg0: i32) -> (i32, i32) {
    %c0_i32 = arith.constant 0 : i32
    %c0_i32_0 = arith.constant 0 : i32
    %c0_i32_1 = arith.constant 0 : i32
    return %c0_i32, %c0_i32_0 : i32, i32
  }
  func.func @transform_5(%arg0: i32) -> (i32, i32) {
    %c0_i32 = arith.constant 0 : i32
    %c0_i32_0 = arith.constant 0 : i32
    %c0_i32_1 = arith.constant 0 : i32
    return %c0_i32, %c0_i32_0 : i32, i32
  }
  func.func @transform_6(%arg0: i32) -> (i32, i32) {
    %c0_i32 = arith.constant 0 : i32
    %c0_i32_0 = arith.constant 0 : i32
    %c0_i32_1 = arith.constant 0 : i32
    return %c0_i32, %c0_i32_0 : i32, i32
  }
  func.func @transform_7(%arg0: i32) -> (i32, i32) {
    %c0_i32 = arith.constant 0 : i32
    %c0_i32_0 = arith.constant 0 : i32
    %c0_i32_1 = arith.constant 0 : i32
    return %c0_i32, %c0_i32_0 : i32, i32
  }
  func.func @transform_8(%arg0: i32) -> (i32, i32) {
    %c0_i32 = arith.constant 0 : i32
    %c0_i32_0 = arith.constant 0 : i32
    %c0_i32_1 = arith.constant 0 : i32
    return %c0_i32, %c0_i32_0 : i32, i32
  }
  func.func @transform_9(%arg0: i32) -> (i32, i32) {
    %c0_i32 = arith.constant 0 : i32
    %c0_i32_0 = arith.constant 0 : i32
    %c0_i32_1 = arith.constant 0 : i32
    return %c0_i32, %c0_i32_0 : i32, i32
  }
  func.func @transform_10(%arg0: i32) -> (i32, i32) {
    %c0_i32 = arith.constant 0 : i32
    %c0_i32_0 = arith.constant 0 : i32
    %c0_i32_1 = arith.constant 0 : i32
    return %c0_i32, %c0_i32_0 : i32, i32
  }
  func.func @transform_11(%arg0: i32) -> (i32, i32) {
    %c0_i32 = arith.constant 0 : i32
    %c0_i32_0 = arith.constant 0 : i32
    %c0_i32_1 = arith.constant 0 : i32
    return %c0_i32, %c0_i32_0 : i32, i32
  }
  func.func @transform_12(%arg0: i32) -> (i32, i32) {
    %c0_i32 = arith.constant 0 : i32
    %c0_i32_0 = arith.constant 0 : i32
    return %arg0, %c0_i32 : i32, i32
  }
}

</mosaic_0001>

<bundles_post_ra>
// kernel: tpu_custom_call.1
= control target key start
LH: loop header
LB: loop body
LE: loop exit
PB: predicated region body
PF: predicated region fallthrough
CT: control target
= control target key end

     0   :  { %s7260_s0 = inlined_call_operand.hbm [shape: f32[300,64], index: 0, kind: input, shape index: {}]   ;;  %s7261_s1 = inlined_call_operand.hbm [shape: f32[300,16], index: 1, kind: input, shape index: {}]   ;;  %s7262_s2 = inlined_call_operand.hbm [shape: bf16[64,32], index: 2, kind: input, shape index: {}]   ;;  %s7263_s3 = inlined_call_operand.hbm [shape: f32[1,32], index: 3, kind: input, shape index: {}]   ;;  %s7264_s4 = inlined_call_operand.hbm [shape: bf16[32,32], index: 4, kind: input, shape index: {}]   ;;  %s7265_s5 = inlined_call_operand.hbm [shape: f32[1,32], index: 5, kind: input, shape index: {}]   ;;  %s7266_s6 = inlined_call_operand.hbm [shape: bf16[16,160], index: 6, kind: input, shape index: {}]   ;;  %s7267_s7 = inlined_call_operand.hbm [shape: f32[1,160], index: 7, kind: input, shape index: {}]   ;;  %s7268_s8 = inlined_call_operand.hbm [shape: bf16[32,64], index: 8, kind: input, shape index: {}]   ;;  %s7269_s9 = inlined_call_operand.hbm [shape: f32[1,64], index: 9, kind: input, shape index: {}]   ;;  %s7270_s10 = inlined_call_operand.hbm [shape: f32[1,128], index: 10, kind: input, shape index: {}]   ;;  %s7271_s11 = inlined_call_operand.<no memory space> [shape: f32[1,1], index: 11, kind: input, shape index: {}]   ;;  %s7272_s12 = inlined_call_operand.hbm [shape: f32[300,128], index: 12, kind: output, shape index: {}]  }
   0x1   :  { %v17_v0 = vstv %s7271_s11 }
   0x2   :  { %18 = vst [vmem:[#allocation2] sm:$0x1] %v17_v0 }
   0x3   :  { %19 = vsyncpa [#allocation4], 0 }
   0x4   :  { %20 = vsyncpa [#allocation7], 0 }
   0x5   :  { %21 = vsyncpa [#allocation10], 0 }
   0x6   :  { %22 = vsyncpa [#allocation13], 0 }
   0x7   :  { %23 = vsyncpa [#allocation16], 0 }
   0x8   :  { %24 = vsyncpa [#allocation19], 0 }
   0x9   :  { %25 = vsyncpa [#allocation5], 0  ;;  %s4715_s23 = smov [#allocation6]   ;;  %s4716_s25 = smov [#allocation9]  }
   0xa   :  { %s43_s24 = sshll.u32 %s4715_s23, 4  ;;  %s68_s26 = sshll.u32 %s4716_s25, 4  ;;  %s44_s24 = int_to_ptr.vmem [resolvable:$true] %s43_s24  ;;  %s4805_s26 = int_to_ptr.vmem [resolvable:$true] %s68_s26 }
   0xb   :  { %s4437_s29 = scalar_lea.hbm %s7261_s1, 4864 }
   0xc   :  { %p4438_p0 = scmp.ne.s32.totalorder %s7261_s1, %s4437_s29  ;;  %p4441_p1 = scmp.lt.u32.totalorder %s4437_s29, %s7261_s1 }
   0xe   :  { %p4443_p2 = pnand %p4441_p1, %p4438_p0 }
  0x10   :  { %4446 = shalt.err (!%p4443_p2)
}
  0x11   :  { %s4447_s15 = scalar_lea.vmem %s44_s24, 4864  ;;  %p4452_p4 = scmp.lt.s32.totalorder %s44_s24, %s44_s24 }
  0x12   :  { %p4448_p3 = scmp.ne.s32.totalorder %s44_s24, %s4447_s15  ;;  %p4453_p5 = scmp.lt.s32.totalorder %s4447_s15, %s4447_s15 }
  0x14   :  { %p4454_p6 = por %p4453_p5, %p4452_p4 }
  0x16   :  { %p4455_p7 = pnand %p4454_p6, %p4448_p3 }
  0x18   :  { %4458 = shalt.err (!%p4455_p7)
}
  0x19   :  { %s4717_s16 = smov 128   ;;  %s4718_s17 = smov 8  }
  0x1a   :  { %49 = dma.hbm_to_vmem [thread:$0]  %s7261_s1, 4864, %s44_s24, [#allocation7], %s4717_s16, %s4717_s16, %s4718_s17  }
  0x1b   :  { %s4459_s22 = scalar_lea.hbm %s7263_s3, 16 }
  0x1c   :  { %p4460_p8 = scmp.ne.s32.totalorder %s7263_s3, %s4459_s22  ;;  %p4463_p9 = scmp.lt.u32.totalorder %s4459_s22, %s7263_s3 }
  0x1e   :  { %p4465_p10 = pnand %p4463_p9, %p4460_p8 }
  0x20   :  { %4468 = shalt.err (!%p4465_p10)
}
  0x21   :  { %s4469_s29 = scalar_lea.vmem %s4805_s26, 16  ;;  %s4473_s1 = scalar_lea.vmem %s4805_s26, 32 }
  0x22   :  { %p4470_p11 = scmp.ne.s32.totalorder %s4805_s26, %s4469_s29  ;;  %p4474_p12 = scmp.lt.s32.totalorder %s4805_s26, %s4805_s26 }
  0x23   :  { %p4475_p13 = scmp.lt.s32.totalorder %s4473_s1, %s4469_s29 }
  0x25   :  { %p4476_p0 = por %p4475_p13, %p4474_p12 }
  0x27   :  { %p4477_p1 = pnand %p4476_p0, %p4470_p11 }
  0x29   :  { %4480 = shalt.err (!%p4477_p1)
}
  0x2a   :  { %71 = dma.hbm_to_vmem [thread:$0]  %s7263_s3, 16, %s4805_s26, [#allocation10]  }
  0x2b   :  { %s4719_s30 = smov [#allocation12]   ;;  %s4720_s14 = smov [#allocation15]  }
  0x2c   :  { %s90_s13 = sshll.u32 %s4719_s30, 4  ;;  %s112_s15 = sshll.u32 %s4720_s14, 4  ;;  %s91_s13 = int_to_ptr.vmem [resolvable:$true] %s90_s13  ;;  %s113_s15 = int_to_ptr.vmem [resolvable:$true] %s112_s15 }
  0x2d   :  { %s4481_s20 = scalar_lea.hbm %s7265_s5, 16 }
  0x2e   :  { %p4482_p2 = scmp.ne.s32.totalorder %s7265_s5, %s4481_s20  ;;  %p4485_p3 = scmp.lt.u32.totalorder %s4481_s20, %s7265_s5 }
  0x30   :  { %p4487_p4 = pnand %p4485_p3, %p4482_p2 }
  0x32   :  { %4490 = shalt.err (!%p4487_p4)
}
  0x33   :  { %s4491_s3 = scalar_lea.vmem %s91_s13, 16  ;;  %s4495_s26 = scalar_lea.vmem %s91_s13, 32 }
  0x34   :  { %p4492_p5 = scmp.ne.s32.totalorder %s91_s13, %s4491_s3  ;;  %p4496_p6 = scmp.lt.s32.totalorder %s91_s13, %s91_s13 }
  0x35   :  { %p4497_p7 = scmp.lt.s32.totalorder %s4495_s26, %s4491_s3 }
  0x37   :  { %p4498_p8 = por %p4497_p7, %p4496_p6 }
  0x39   :  { %p4499_p9 = pnand %p4498_p8, %p4492_p5 }
  0x3b   :  { %4502 = shalt.err (!%p4499_p9)
}
  0x3c   :  { %93 = dma.hbm_to_vmem [thread:$0]  %s7265_s5, 16, %s91_s13, [#allocation13]  }
  0x3d   :  { %s4503_s24 = scalar_lea.hbm %s7267_s7, 32 }
  0x3e   :  { %p4504_p10 = scmp.ne.s32.totalorder %s7267_s7, %s4503_s24  ;;  %p4507_p11 = scmp.lt.u32.totalorder %s4503_s24, %s7267_s7 }
  0x40   :  { %p4509_p12 = pnand %p4507_p11, %p4504_p10 }
  0x42   :  { %4512 = shalt.err (!%p4509_p12)
}
  0x43   :  { %s4513_s19 = scalar_lea.vmem %s113_s15, 32  ;;  %p4518_p0 = scmp.lt.s32.totalorder %s113_s15, %s113_s15 }
  0x44   :  { %p4514_p13 = scmp.ne.s32.totalorder %s113_s15, %s4513_s19  ;;  %p4519_p1 = scmp.lt.s32.totalorder %s4513_s19, %s4513_s19 }
  0x46   :  { %p4520_p2 = por %p4519_p1, %p4518_p0 }
  0x48   :  { %p4521_p3 = pnand %p4520_p2, %p4514_p13 }
  0x4a   :  { %4524 = shalt.err (!%p4521_p3)
}
  0x4b   :  { %115 = dma.hbm_to_vmem [thread:$0]  %s7267_s7, 32, %s113_s15, [#allocation16]  }
  0x4c   :  { %s4721_s20 = smov [#allocation18]   ;;  %s4722_s22 = smov [#allocation3]  }
  0x4d   :  { %s134_s21 = sshll.u32 %s4721_s20, 4  ;;  %s31_s23 = sshll.u32 %s4722_s22, 4  ;;  %s135_s21 = int_to_ptr.vmem [resolvable:$true] %s134_s21  ;;  %s4864_s23 = int_to_ptr.vmem [resolvable:$true] %s31_s23 }
  0x4e   :  { %s4525_s26 = scalar_lea.hbm %s7269_s9, 16 }
  0x4f   :  { %p4526_p4 = scmp.ne.s32.totalorder %s7269_s9, %s4525_s26  ;;  %p4529_p5 = scmp.lt.u32.totalorder %s4525_s26, %s7269_s9 }
  0x51   :  { %p4531_p6 = pnand %p4529_p5, %p4526_p4 }
  0x53   :  { %4534 = shalt.err (!%p4531_p6)
}
  0x54   :  { %s4535_s7 = scalar_lea.vmem %s135_s21, 16  ;;  %s4539_s15 = scalar_lea.vmem %s135_s21, 32 }
  0x55   :  { %p4536_p7 = scmp.ne.s32.totalorder %s135_s21, %s4535_s7  ;;  %p4540_p8 = scmp.lt.s32.totalorder %s135_s21, %s135_s21 }
  0x56   :  { %p4541_p9 = scmp.lt.s32.totalorder %s4539_s15, %s4535_s7 }
  0x58   :  { %p4542_p10 = por %p4541_p9, %p4540_p8 }
  0x5a   :  { %p4543_p11 = pnand %p4542_p10, %p4536_p7 }
  0x5c   :  { %4546 = shalt.err (!%p4543_p11)
}
  0x5d   :  { %137 = dma.hbm_to_vmem [thread:$0]  %s7269_s9, 16, %s135_s21, [#allocation19]  }
  0x5e   :  { %s4547_s18 = scalar_lea.hbm %s7260_s0, 4864 }
  0x5f   :  { %p4548_p12 = scmp.ne.s32.totalorder %s7260_s0, %s4547_s18  ;;  %p4551_p13 = scmp.lt.u32.totalorder %s4547_s18, %s7260_s0 }
  0x61   :  { %p4553_p0 = pnand %p4551_p13, %p4548_p12 }
  0x63   :  { %4556 = shalt.err (!%p4553_p0)
}
  0x64   :  { %s4557_s22 = scalar_lea.vmem %s4864_s23, 4864  ;;  %p4562_p2 = scmp.lt.s32.totalorder %s4864_s23, %s4864_s23 }
  0x65   :  { %p4558_p1 = scmp.ne.s32.totalorder %s4864_s23, %s4557_s22  ;;  %p4563_p3 = scmp.lt.s32.totalorder %s4557_s22, %s4557_s22 }
  0x67   :  { %p4564_p4 = por %p4563_p3, %p4562_p2 }
  0x69   :  { %p4565_p5 = pnand %p4564_p4, %p4558_p1 }
  0x6b   :  { %4568 = shalt.err (!%p4565_p5)
}
  0x6c   :  { %37 = dma.hbm_to_vmem [thread:$0]  %s7260_s0, 4864, %s4864_s23, [#allocation4], %s4717_s16, %s4717_s16, %s4718_s17  }
  0x6d   :  { %s4723_s25 = smov [#allocation8]   ;;  %s4569_s28 = scalar_lea.hbm %s7262_s2, 512 }
  0x6e   :  { %s55_s3 = sshll.u32 %s4723_s25, 4  ;;  %p4570_p6 = scmp.ne.s32.totalorder %s7262_s2, %s4569_s28  ;;  %s56_s3 = int_to_ptr.vmem [resolvable:$true] %s55_s3 }
  0x6f   :  { %p4573_p7 = scmp.lt.u32.totalorder %s4569_s28, %s7262_s2 }
  0x71   :  { %p4575_p8 = pnand %p4573_p7, %p4570_p6 }
  0x73   :  { %4578 = shalt.err (!%p4575_p8)
}
  0x74   :  { %s4579_s24 = scalar_lea.vmem %s56_s3, 512  ;;  %p4584_p10 = scmp.lt.s32.totalorder %s56_s3, %s56_s3 }
  0x75   :  { %p4580_p9 = scmp.ne.s32.totalorder %s56_s3, %s4579_s24  ;;  %p4585_p11 = scmp.lt.s32.totalorder %s4579_s24, %s4579_s24 }
  0x77   :  { %p4586_p12 = por %p4585_p11, %p4584_p10 }
  0x79   :  { %p4587_p13 = pnand %p4586_p12, %p4580_p9 }
  0x7b   :  { %4590 = shalt.err (!%p4587_p13)
}
  0x7c   :  { %s4724_s0 = smov 64   ;;  %s4725_s23 = smov 4  }
  0x7d   :  { %61 = dma.hbm_to_vmem [thread:$0]  %s7262_s2, 512, %s56_s3, [#allocation7], %s4724_s0, %s4724_s0, %s4725_s23  }
  0x7e   :  { %s4726_s14 = smov [#allocation11]   ;;  %s4727_s19 = smov [#allocation14]  }
  0x7f   :  { %s77_s18 = sshll.u32 %s4726_s14, 4  ;;  %s99_s5 = sshll.u32 %s4727_s19, 4  ;;  %s78_s18 = int_to_ptr.vmem [resolvable:$true] %s77_s18  ;;  %s100_s5 = int_to_ptr.vmem [resolvable:$true] %s99_s5 }
  0x80   :  { %s4591_s22 = scalar_lea.hbm %s7264_s4, 256 }
  0x81   :  { %p4592_p0 = scmp.ne.s32.totalorder %s7264_s4, %s4591_s22  ;;  %p4595_p1 = scmp.lt.u32.totalorder %s4591_s22, %s7264_s4 }
  0x83   :  { %p4597_p2 = pnand %p4595_p1, %p4592_p0 }
  0x85   :  { %4600 = shalt.err (!%p4597_p2)
}
  0x86   :  { %s4601_s2 = scalar_lea.vmem %s78_s18, 256  ;;  %p4606_p4 = scmp.lt.s32.totalorder %s78_s18, %s78_s18 }
  0x87   :  { %p4602_p3 = scmp.ne.s32.totalorder %s78_s18, %s4601_s2  ;;  %p4607_p5 = scmp.lt.s32.totalorder %s4601_s2, %s4601_s2 }
  0x89   :  { %p4608_p6 = por %p4607_p5, %p4606_p4 }
  0x8b   :  { %p4609_p7 = pnand %p4608_p6, %p4602_p3 }
  0x8d   :  { %4612 = shalt.err (!%p4609_p7)
}
  0x8e   :  { %83 = dma.hbm_to_vmem [thread:$0]  %s7264_s4, 256, %s78_s18, [#allocation10], %s4724_s0, %s4724_s0, %s4725_s23  }
  0x8f   :  { %s4613_s1 = scalar_lea.hbm %s7266_s6, 256 }
  0x90   :  { %p4614_p8 = scmp.ne.s32.totalorder %s7266_s6, %s4613_s1  ;;  %p4617_p9 = scmp.lt.u32.totalorder %s4613_s1, %s7266_s6 }
  0x92   :  { %p4619_p10 = pnand %p4617_p9, %p4614_p8 }
  0x94   :  { %4622 = shalt.err (!%p4619_p10)
}
  0x95   :  { %s4623_s30 = scalar_lea.vmem %s100_s5, 256  ;;  %p4628_p12 = scmp.lt.s32.totalorder %s100_s5, %s100_s5 }
  0x96   :  { %p4624_p11 = scmp.ne.s32.totalorder %s100_s5, %s4623_s30  ;;  %p4629_p13 = scmp.lt.s32.totalorder %s4623_s30, %s4623_s30 }
  0x98   :  { %p4630_p0 = por %p4629_p13, %p4628_p12 }
  0x9a   :  { %p4631_p1 = pnand %p4630_p0, %p4624_p11 }
  0x9c   :  { %4634 = shalt.err (!%p4631_p1)
}
  0x9d   :  { %105 = dma.hbm_to_vmem [thread:$0]  %s7266_s6, 256, %s100_s5, [#allocation13], %s4717_s16, %s4717_s16, %s4718_s17  }
  0x9e   :  { %s4728_s18 = smov [#allocation17]   ;;  %s4729_s13 = smov [#allocation20]  }
  0x9f   :  { %s121_s19 = sshll.u32 %s4728_s18, 4  ;;  %s144_s20 = sshll.u32 %s4729_s13, 4  ;;  %s122_s19 = int_to_ptr.vmem [resolvable:$true] %s121_s19  ;;  %s145_s20 = int_to_ptr.vmem [resolvable:$true] %s144_s20 }
  0xa0   :  { %s4635_s21 = scalar_lea.hbm %s7268_s8, 256 }
  0xa1   :  { %p4636_p2 = scmp.ne.s32.totalorder %s7268_s8, %s4635_s21  ;;  %p4639_p3 = scmp.lt.u32.totalorder %s4635_s21, %s7268_s8 }
  0xa3   :  { %p4641_p4 = pnand %p4639_p3, %p4636_p2 }
  0xa5   :  { %4644 = shalt.err (!%p4641_p4)
}
  0xa6   :  { %s4645_s6 = scalar_lea.vmem %s122_s19, 256  ;;  %p4650_p6 = scmp.lt.s32.totalorder %s122_s19, %s122_s19 }
  0xa7   :  { %p4646_p5 = scmp.ne.s32.totalorder %s122_s19, %s4645_s6  ;;  %p4651_p7 = scmp.lt.s32.totalorder %s4645_s6, %s4645_s6 }
  0xa9   :  { %p4652_p8 = por %p4651_p7, %p4650_p6 }
  0xab   :  { %p4653_p9 = pnand %p4652_p8, %p4646_p5 }
  0xad   :  { %4656 = shalt.err (!%p4653_p9)
}
  0xae   :  { %127 = dma.hbm_to_vmem [thread:$0]  %s7268_s8, 256, %s122_s19, [#allocation16], %s4724_s0, %s4724_s0, %s4725_s23  }
  0xaf   :  { %s4657_s1 = scalar_lea.hbm %s7270_s10, 16 }
  0xb0   :  { %p4658_p10 = scmp.ne.s32.totalorder %s7270_s10, %s4657_s1  ;;  %p4661_p11 = scmp.lt.u32.totalorder %s4657_s1, %s7270_s10 }
  0xb2   :  { %p4663_p12 = pnand %p4661_p11, %p4658_p10 }
  0xb4   :  { %4666 = shalt.err (!%p4663_p12)
}
  0xb5   :  { %s4667_s30 = scalar_lea.vmem %s145_s20, 16  ;;  %s4671_s4 = scalar_lea.vmem %s145_s20, 32 }
  0xb6   :  { %p4668_p13 = scmp.ne.s32.totalorder %s145_s20, %s4667_s30  ;;  %p4672_p0 = scmp.lt.s32.totalorder %s145_s20, %s145_s20 }
  0xb7   :  { %p4673_p1 = scmp.lt.s32.totalorder %s4671_s4, %s4667_s30 }
  0xb9   :  { %p4674_p2 = por %p4673_p1, %p4672_p0 }
  0xbb   :  { %p4675_p3 = pnand %p4674_p2, %p4668_p13 }
  0xbd   :  { %4678 = shalt.err (!%p4675_p3)
}
  0xbe   :  { %147 = dma.hbm_to_vmem [thread:$0]  %s7270_s10, 16, %s145_s20, [#allocation19]  }
  0xbf   :  { %4701 = dma.done.wait [#allocation4], 4864  }
  0xc0   :  { %4702 = vsyncadd [#allocation4], 4294962432 }
  0xc1   :  { %4703 = dma.done.wait [#allocation7], 5376  }
  0xc2   :  { %4704 = vsyncadd [#allocation7], 4294961920 }
  0xc3   :  { %4705 = dma.done.wait [#allocation10], 272  }
  0xc4   :  { %4706 = vsyncadd [#allocation10], 4294967024 }
  0xc5   :  { %4707 = dma.done.wait [#allocation13], 272  }
  0xc6   :  { %4708 = vsyncadd [#allocation13], 4294967024 }
  0xc7   :  { %4709 = dma.done.wait [#allocation16], 288  }
  0xc8   :  { %4710 = vsyncadd [#allocation16], 4294967008 }
  0xc9   :  { %4711 = dma.done.wait [#allocation19], 32  }
  0xca   :  { %4712 = vsyncadd [#allocation19], 4294967264  ;;  %v7273_v1 = vmov 0.0   ;;  %vm4731_vm0 = vmmov 0   ;;  %v4121_v2 = vld [vmem:[#allocation8] sm:$0xff]   ;;  %v4122_v3 = vld [vmem:[#allocation8 + $0x8] sm:$0xff]  }
  0xcb   :  { %3855 = vmatprep.subr.bf16.mxu0 %v7273_v1  ;;  %3863 = vmatprep.mubr.msk.bf16.mxu0 %vm4731_vm0, %v7273_v1  ;;  %v4123_v4 = vld [vmem:[#allocation8 + $0x10] sm:$0xff]   ;;  %v4124_v5 = vld [vmem:[#allocation8 + $0x18] sm:$0xff]   ;;  %v184_v6 = vld [vmem:[#allocation3] sm:$0xff]  ;;  %vm318_vm1 = vcmask 523264   ;;  %vm641_vm2 = vcmask 261120   ;;  %s4732_s10 = smov 32  }
  0xcc   :  { %3939 = vmatprep.subr.bf16.mxu1 %v7273_v1  ;;  %3943 = vmatprep.mubr.msk.bf16.mxu1 %vm4731_vm0, %v7273_v1  ;;  %v185_v7 = vld [vmem:[#allocation3 + $0x8] sm:$0xff]  ;;  %v186_v9 = vld [vmem:[#allocation3 + $0x10] sm:$0xff]  ;;  %v187_v10 = vld [vmem:[#allocation3 + $0x18] sm:$0xff]  ;;  %s4734_s14 = smov 112   ;;  %vm1269_vm3 = vcmask 130048   ;;  %s4735_s18 = smov 96  }
  0xcd   :  { %3856 = vmatpush3.bf16.msra.mxu0 %v4121_v2  ;;  %v260_v8 = vpack.c.bf16 %v185_v7, %v184_v6  ;;  %v261_v11 = vpack.c.bf16 %v187_v10, %v186_v9  ;;  %v188_v12 = vld [vmem:[#allocation3 + $0x20] sm:$0xff]  ;;  %v189_v13 = vld [vmem:[#allocation3 + $0x28] sm:$0xff]  ;;  %v190_v15 = vld [vmem:[#allocation3 + $0x30] sm:$0xff]  ;;  %vm1939_vm4 = vcmask 785408   ;;  %vm3561_vm5 = vcmask 916480  }
  0xce   :  { %3857 = vmatprep.subr.bf16.mxu0 %v7273_v1  ;;  %v262_v14 = vpack.c.bf16 %v189_v13, %v188_v12  ;;  %v191_v16 = vld [vmem:[#allocation3 + $0x38] sm:$0xff]  ;;  %v192_v18 = vld [vmem:[#allocation3 + $0x40] sm:$0xff]  ;;  %v193_v19 = vld [vmem:[#allocation3 + $0x48] sm:$0xff]  ;;  %vm3600_vm6 = vcmask 924672  }
  0xcf   :  { %v263_v17 = vpack.c.bf16 %v191_v16, %v190_v15  ;;  %v264_v20 = vpack.c.bf16 %v193_v19, %v192_v18  ;;  %v194_v21 = vld [vmem:[#allocation3 + $0x50] sm:$0xff]  ;;  %v195_v22 = vld [vmem:[#allocation3 + $0x58] sm:$0xff]  ;;  %v196_v24 = vld [vmem:[#allocation3 + $0x60] sm:$0xff] }
  0xd0   :  { %v265_v23 = vpack.c.bf16 %v195_v22, %v194_v21  ;;  %v197_v25 = vld [vmem:[#allocation3 + $0x68] sm:$0xff]  ;;  %v198_v27 = vld [vmem:[#allocation3 + $0x70] sm:$0xff]  ;;  %v199_v28 = vld [vmem:[#allocation3 + $0x78] sm:$0xff] }
  0xd1   :  { %3858 = vmatpush3.bf16.msra.mxu0 %v4122_v3  ;;  %v266_v26 = vpack.c.bf16 %v197_v25, %v196_v24  ;;  %v267_v29 = vpack.c.bf16 %v199_v28, %v198_v27  ;;  %v200_v30 = vld [vmem:[#allocation3 + $0x80] sm:$0xff]  ;;  %v201_v31 = vld [vmem:[#allocation3 + $0x88] sm:$0xff]  ;;  %v202_v33 = vld [vmem:[#allocation3 + $0x90] sm:$0xff] }
  0xd2   :  { %3859 = vmatprep.subr.bf16.mxu0 %v7273_v1  ;;  %v268_v32 = vpack.c.bf16 %v201_v31, %v200_v30  ;;  %v203_v34 = vld [vmem:[#allocation3 + $0x98] sm:$0xff]  ;;  %v204_v36 = vld [vmem:[#allocation3 + $0xa0] sm:$0xff]  ;;  %v205_v37 = vld [vmem:[#allocation3 + $0xa8] sm:$0xff] }
  0xd3   :  { %v269_v35 = vpack.c.bf16 %v203_v34, %v202_v33  ;;  %v270_v38 = vpack.c.bf16 %v205_v37, %v204_v36  ;;  %v206_v39 = vld [vmem:[#allocation3 + $0xb0] sm:$0xff]  ;;  %v207_v40 = vld [vmem:[#allocation3 + $0xb8] sm:$0xff]  ;;  %v4125_v41 = vld [vmem:[#allocation11] sm:$0xff]  }
  0xd4   :  { %v271_v42 = vpack.c.bf16 %v207_v40, %v206_v39  ;;  %3940 = vmatpush3.bf16.msra.mxu1 %v4125_v41  ;;  %v4126_v43 = vld [vmem:[#allocation11 + $0x8] sm:$0xff]   ;;  %v208_v44 = vld [vmem:[#allocation3 + $0xc0] sm:$0xff]  ;;  %v211_v48 = vld [vmem:[#allocation3 + $0xd8] sm:$0xff] }
  0xd5   :  { %3860 = vmatpush3.bf16.msra.mxu0 %v4123_v4  ;;  %3941 = vmatprep.subr.bf16.mxu1 %v7273_v1  ;;  %v209_v45 = vld [vmem:[#allocation3 + $0xc8] sm:$0xff]  ;;  %v210_v47 = vld [vmem:[#allocation3 + $0xd0] sm:$0xff]  ;;  %v212_v50 = vld [vmem:[#allocation3 + $0xe0] sm:$0xff] }
  0xd6   :  { %3861 = vmatprep.subr.bf16.mxu0 %v7273_v1  ;;  %v272_v46 = vpack.c.bf16 %v209_v45, %v208_v44  ;;  %v273_v49 = vpack.c.bf16 %v211_v48, %v210_v47  ;;  %v213_v51 = vld [vmem:[#allocation3 + $0xe8] sm:$0xff]  ;;  %v214_v53 = vld [vmem:[#allocation3 + $0xf0] sm:$0xff]  ;;  %v215_v54 = vld [vmem:[#allocation3 + $0xf8] sm:$0xff] }
  0xd7   :  { %v274_v52 = vpack.c.bf16 %v213_v51, %v212_v50  ;;  %v275_v55 = vpack.c.bf16 %v215_v54, %v214_v53  ;;  %v216_v56 = vld [vmem:[#allocation3 + $0x100] sm:$0xff]  ;;  %v217_v57 = vld [vmem:[#allocation3 + $0x108] sm:$0xff]  ;;  %v218_v59 = vld [vmem:[#allocation3 + $0x110] sm:$0xff] }
  0xd8   :  { %3942 = vmatpush3.bf16.msra.mxu1 %v4126_v43  ;;  %v276_v58 = vpack.c.bf16 %v217_v57, %v216_v56  ;;  %v219_v60 = vld [vmem:[#allocation3 + $0x118] sm:$0xff]  ;;  %v220_v62 = vld [vmem:[#allocation3 + $0x120] sm:$0xff]  ;;  %v221_v63 = vld [vmem:[#allocation3 + $0x128] sm:$0xff] }
  0xd9   :  { %3862 = vmatpush3.bf16.msra.mxu0 %v4124_v5  ;;  %v277_v61 = vpack.c.bf16 %v219_v60, %v218_v59  ;;  %v278_v0 = vpack.c.bf16 %v221_v63, %v220_v62  ;;  %v5038_v2 = vld [vmem:[#allocation9] ss:$0 sm:$0xff]  ;;  %v4127_v33 = vld [vmem:[#allocation14] ss:$8 sps:$4 sm:$0xff]   ;;  %v3766_v36 = vld [vmem:[#allocation20] ss:$0 sm:$0xff] }
  0xda   :  { %4019 = vmatprep.subr.bf16.mxu0 %v7273_v1  ;;  %v4129_v34 = vld [vmem:[#allocation14 + $0x4] ss:$8 sps:$4 sm:$0xff]   ;;  %1632 = vrot.lane.b32.xlu0 %v3766_v36, %s4732_s10 }
  0xdb   :  { %1327 = vmatprep.subr.bf16.mxu1 %v4129_v34 }
  0xdc   :  { %3864 = vmatmul.mubr.msk.bf16.vlgmr.msra.gmra.mrb[0].mxu0 %vm318_vm1, %v260_v8 }
  0xdd   :  { %3867 = vmatprep.mubr.msk.bf16.mxu0 %vm4731_vm0, %v7273_v1 }
  0xe4   :  { %3868 = vmatmul.mubr.msk.bf16.gmra.mrb[4].mxu0 %vm318_vm1, %v261_v11 }
  0xe5   :  { %3871 = vmatprep.mubr.msk.bf16.mxu0 %vm4731_vm0, %v7273_v1 }
  0xec   :  { %3872 = vmatmul.mubr.msk.bf16.gmra.mrb[8].mxu0 %vm318_vm1, %v262_v14 }
  0xed   :  { %3875 = vmatprep.mubr.msk.bf16.mxu0 %vm4731_vm0, %v7273_v1 }
  0xf4   :  { %3876 = vmatmul.mubr.msk.bf16.gmra.mrb[12].mxu0 %vm318_vm1, %v263_v17 }
  0xf5   :  { %3879 = vmatprep.mubr.msk.bf16.mxu0 %vm4731_vm0, %v7273_v1 }
  0xfc   :  { %3880 = vmatmul.mubr.msk.bf16.gmra.mrb[16].mxu0 %vm318_vm1, %v264_v20 }
  0xfd   :  { %3883 = vmatprep.mubr.msk.bf16.mxu0 %vm4731_vm0, %v7273_v1 }
 0x104   :  { %3884 = vmatmul.mubr.msk.bf16.gmra.mrb[20].mxu0 %vm318_vm1, %v265_v23 }
 0x105   :  { %3887 = vmatprep.mubr.msk.bf16.mxu0 %vm4731_vm0, %v7273_v1 }
 0x10c   :  { %3888 = vmatmul.mubr.msk.bf16.gmra.mrb[24].mxu0 %vm318_vm1, %v266_v26 }
 0x10d   :  { %3891 = vmatprep.mubr.msk.bf16.mxu0 %vm4731_vm0, %v7273_v1 }
 0x114   :  { %3892 = vmatmul.mubr.msk.bf16.gmra.mrb[28].mxu0 %vm318_vm1, %v267_v29 }
 0x115   :  { %3895 = vmatprep.mubr.msk.bf16.mxu0 %vm4731_vm0, %v7273_v1 }
 0x11c   :  { %3896 = vmatmul.mubr.msk.bf16.gmra.mrb[32].mxu0 %vm318_vm1, %v268_v32 }
 0x11d   :  { %3899 = vmatprep.mubr.msk.bf16.mxu0 %vm4731_vm0, %v7273_v1 }
 0x124   :  { %3900 = vmatmul.mubr.msk.bf16.gmra.mrb[36].mxu0 %vm318_vm1, %v269_v35 }
 0x125   :  { %3903 = vmatprep.mubr.msk.bf16.mxu0 %vm4731_vm0, %v7273_v1 }
 0x12c   :  { %3904 = vmatmul.mubr.msk.bf16.gmra.mrb[40].mxu0 %vm318_vm1, %v270_v38 }
 0x12d   :  { %3907 = vmatprep.mubr.msk.bf16.mxu0 %vm4731_vm0, %v7273_v1 }
 0x134   :  { %3908 = vmatmul.mubr.msk.bf16.gmra.mrb[44].mxu0 %vm318_vm1, %v271_v42 }
 0x135   :  { %3911 = vmatprep.mubr.msk.bf16.mxu0 %vm4731_vm0, %v7273_v1 }
 0x13c   :  { %3912 = vmatmul.mubr.msk.bf16.gmra.mrb[48].mxu0 %vm318_vm1, %v272_v46 }
 0x13d   :  { %3915 = vmatprep.mubr.msk.bf16.mxu0 %vm4731_vm0, %v7273_v1 }
 0x144   :  { %3916 = vmatmul.mubr.msk.bf16.gmra.mrb[52].mxu0 %vm318_vm1, %v273_v49 }
 0x145   :  { %3919 = vmatprep.mubr.msk.bf16.mxu0 %vm4731_vm0, %v7273_v1 }
 0x14c   :  { %3920 = vmatmul.mubr.msk.bf16.gmra.mrb[56].mxu0 %vm318_vm1, %v274_v52 }
 0x14d   :  { %3923 = vmatprep.mubr.msk.bf16.mxu0 %vm4731_vm0, %v7273_v1 }
 0x154   :  { %3924 = vmatmul.mubr.msk.bf16.gmra.mrb[60].mxu0 %vm318_vm1, %v275_v55 }
 0x155   :  { %3927 = vmatprep.mubr.msk.bf16.mxu0 %vm4731_vm0, %v7273_v1 }
 0x15c   :  { %3928 = vmatmul.mubr.msk.bf16.gmra.mrb[64].mxu0 %vm318_vm1, %v276_v58 }
 0x15d   :  { %3931 = vmatprep.mubr.msk.bf16.mxu0 %vm4731_vm0, %v7273_v1 }
 0x164   :  { %3932 = vmatmul.mubr.msk.bf16.gmra.mrb[68].mxu0 %vm318_vm1, %v277_v61 }
 0x165   :  { %3935 = vmatprep.mubr.msk.bf16.mxu0 %vm4731_vm0, %v7273_v1 }
 0x16c   :  { %3936 = vmatmul.mubr.msk.bf16.gmra.mrb[72].mxu0 %vm318_vm1, %v278_v0 }
 0x16d   :  { %4023 = vmatprep.mubr.msk.bf16.mxu0 %vm4731_vm0, %v7273_v1 }
 0x1af   :  { %v410_v3 = vpop.f32.mrb[0].mxu0 }
 0x1b0   :  { %v411_v4 = vadd.f32 %v5038_v2, %v410_v3  ;;  %v3865_v5 = vpop.f32.mrb[1].mxu0 }
 0x1b1   :  { %v413_v6 = vpop.f32.mrb[2].mxu0 }
 0x1b2   :  { %v414_v7 = vadd.f32 %v5038_v2, %v413_v6  ;;  %v3866_v8 = vpop.f32.mrb[3].mxu0  ;;  %v561_v9 = vmax.f32 %v411_v4, 0.0 }
 0x1b4   :  { %v562_v10 = vmax.f32 %v414_v7, 0.0 }
 0x1b6   :  { %v599_v11 = vpack.c.bf16 %v562_v10, %v561_v9 }
 0x1b7   :  { %v418_v12 = vpop.f32.mrb[4].mxu0 }
 0x1b8   :  { %v419_v13 = vadd.f32 %v5038_v2, %v418_v12  ;;  %v3869_v14 = vpop.f32.mrb[5].mxu0  ;;  %3944 = vmatmul.mubr.msk.bf16.vlgmr.msra.gmra.mrb[0].mxu1 %vm641_vm2, %v599_v11 }
 0x1b9   :  { %v421_v15 = vpop.f32.mrb[6].mxu0  ;;  %3947 = vmatprep.mubr.msk.bf16.mxu1 %vm4731_vm0, %v7273_v1  ;;  %1328 = vmatpush1.bf16.msra.mxu1 %v4127_v33 }
 0x1ba   :  { %v422_v16 = vadd.f32 %v5038_v2, %v421_v15  ;;  %v3870_v17 = vpop.f32.mrb[7].mxu0  ;;  %v563_v18 = vmax.f32 %v419_v13, 0.0 }
 0x1bc   :  { %v564_v19 = vmax.f32 %v422_v16, 0.0 }
 0x1be   :  { %v600_v20 = vpack.c.bf16 %v564_v19, %v563_v18 }
 0x1bf   :  { %v426_v21 = vpop.f32.mrb[8].mxu0 }
 0x1c0   :  { %v427_v22 = vadd.f32 %v5038_v2, %v426_v21  ;;  %v3873_v23 = vpop.f32.mrb[9].mxu0  ;;  %3948 = vmatmul.mubr.msk.bf16.gmra.mrb[4].mxu1 %vm641_vm2, %v600_v20 }
 0x1c1   :  { %v429_v24 = vpop.f32.mrb[10].mxu0  ;;  %3951 = vmatprep.mubr.msk.bf16.mxu1 %vm4731_vm0, %v7273_v1 }
 0x1c2   :  { %v565_v25 = vmax.f32 %v427_v22, 0.0  ;;  %v430_v26 = vadd.f32 %v5038_v2, %v429_v24  ;;  %v3874_v27 = vpop.f32.mrb[11].mxu0 }
 0x1c4   :  { %v566_v28 = vmax.f32 %v430_v26, 0.0 }
 0x1c6   :  { %v601_v29 = vpack.c.bf16 %v566_v28, %v565_v25 }
 0x1c7   :  { %v434_v30 = vpop.f32.mrb[12].mxu0 }
 0x1c8   :  { %v435_v31 = vadd.f32 %v5038_v2, %v434_v30  ;;  %v3877_v32 = vpop.f32.mrb[13].mxu0  ;;  %3952 = vmatmul.mubr.msk.bf16.gmra.mrb[8].mxu1 %vm641_vm2, %v601_v29 }
 0x1c9   :  { %v437_v35 = vpop.f32.mrb[14].mxu0  ;;  %3955 = vmatprep.mubr.msk.bf16.mxu1 %vm4731_vm0, %v7273_v1 }
 0x1ca   :  { %v567_v37 = vmax.f32 %v435_v31, 0.0  ;;  %v438_v38 = vadd.f32 %v5038_v2, %v437_v35  ;;  %v3878_v39 = vpop.f32.mrb[15].mxu0 }
 0x1cc   :  { %v568_v40 = vmax.f32 %v438_v38, 0.0 }
 0x1ce   :  { %v602_v41 = vpack.c.bf16 %v568_v40, %v567_v37 }
 0x1cf   :  { %v442_v42 = vpop.f32.mrb[16].mxu0 }
 0x1d0   :  { %v443_v43 = vadd.f32 %v5038_v2, %v442_v42  ;;  %v3881_v44 = vpop.f32.mrb[17].mxu0  ;;  %3956 = vmatmul.mubr.msk.bf16.gmra.mrb[12].mxu1 %vm641_vm2, %v602_v41 }
 0x1d1   :  { %v445_v45 = vpop.f32.mrb[18].mxu0  ;;  %3959 = vmatprep.mubr.msk.bf16.mxu1 %vm4731_vm0, %v7273_v1 }
 0x1d2   :  { %v569_v46 = vmax.f32 %v443_v43, 0.0  ;;  %v446_v47 = vadd.f32 %v5038_v2, %v445_v45  ;;  %v3882_v48 = vpop.f32.mrb[19].mxu0 }
 0x1d4   :  { %v570_v49 = vmax.f32 %v446_v47, 0.0 }
 0x1d6   :  { %v603_v50 = vpack.c.bf16 %v570_v49, %v569_v46 }
 0x1d7   :  { %v450_v51 = vpop.f32.mrb[20].mxu0 }
 0x1d8   :  { %v451_v52 = vadd.f32 %v5038_v2, %v450_v51  ;;  %v3885_v53 = vpop.f32.mrb[21].mxu0  ;;  %3960 = vmatmul.mubr.msk.bf16.gmra.mrb[16].mxu1 %vm641_vm2, %v603_v50 }
 0x1d9   :  { %v453_v54 = vpop.f32.mrb[22].mxu0  ;;  %3963 = vmatprep.mubr.msk.bf16.mxu1 %vm4731_vm0, %v7273_v1 }
 0x1da   :  { %v571_v55 = vmax.f32 %v451_v52, 0.0  ;;  %v454_v56 = vadd.f32 %v5038_v2, %v453_v54  ;;  %v3886_v57 = vpop.f32.mrb[23].mxu0 }
 0x1dc   :  { %v572_v58 = vmax.f32 %v454_v56, 0.0 }
 0x1de   :  { %v604_v59 = vpack.c.bf16 %v572_v58, %v571_v55 }
 0x1df   :  { %v458_v60 = vpop.f32.mrb[24].mxu0 }
 0x1e0   :  { %v459_v61 = vadd.f32 %v5038_v2, %v458_v60  ;;  %v3889_v62 = vpop.f32.mrb[25].mxu0  ;;  %3964 = vmatmul.mubr.msk.bf16.gmra.mrb[20].mxu1 %vm641_vm2, %v604_v59 }
 0x1e1   :  { %v461_v63 = vpop.f32.mrb[26].mxu0  ;;  %3967 = vmatprep.mubr.msk.bf16.mxu1 %vm4731_vm0, %v7273_v1 }
 0x1e2   :  { %v573_v0 = vmax.f32 %v459_v61, 0.0  ;;  %v462_v3 = vadd.f32 %v5038_v2, %v461_v63  ;;  %v3890_v4 = vpop.f32.mrb[27].mxu0 }
 0x1e4   :  { %v574_v5 = vmax.f32 %v462_v3, 0.0 }
 0x1e6   :  { %v605_v6 = vpack.c.bf16 %v574_v5, %v573_v0 }
 0x1e7   :  { %v466_v7 = vpop.f32.mrb[28].mxu0 }
 0x1e8   :  { %v467_v8 = vadd.f32 %v5038_v2, %v466_v7  ;;  %v3893_v9 = vpop.f32.mrb[29].mxu0  ;;  %3968 = vmatmul.mubr.msk.bf16.gmra.mrb[24].mxu1 %vm641_vm2, %v605_v6 }
 0x1e9   :  { %v469_v10 = vpop.f32.mrb[30].mxu0  ;;  %3971 = vmatprep.mubr.msk.bf16.mxu1 %vm4731_vm0, %v7273_v1 }
 0x1ea   :  { %v575_v11 = vmax.f32 %v467_v8, 0.0  ;;  %v470_v12 = vadd.f32 %v5038_v2, %v469_v10  ;;  %v3894_v13 = vpop.f32.mrb[31].mxu0 }
 0x1ec   :  { %v576_v14 = vmax.f32 %v470_v12, 0.0 }
 0x1ee   :  { %v606_v15 = vpack.c.bf16 %v576_v14, %v575_v11 }
 0x1ef   :  { %v474_v16 = vpop.f32.mrb[32].mxu0 }
 0x1f0   :  { %v475_v17 = vadd.f32 %v5038_v2, %v474_v16  ;;  %v3897_v18 = vpop.f32.mrb[33].mxu0  ;;  %3972 = vmatmul.mubr.msk.bf16.gmra.mrb[28].mxu1 %vm641_vm2, %v606_v15 }
 0x1f1   :  { %v477_v19 = vpop.f32.mrb[34].mxu0  ;;  %3975 = vmatprep.mubr.msk.bf16.mxu1 %vm4731_vm0, %v7273_v1 }
 0x1f2   :  { %v577_v20 = vmax.f32 %v475_v17, 0.0  ;;  %v478_v21 = vadd.f32 %v5038_v2, %v477_v19  ;;  %v3898_v22 = vpop.f32.mrb[35].mxu0 }
 0x1f4   :  { %v578_v23 = vmax.f32 %v478_v21, 0.0 }
 0x1f6   :  { %v607_v24 = vpack.c.bf16 %v578_v23, %v577_v20 }
 0x1f7   :  { %v482_v25 = vpop.f32.mrb[36].mxu0 }
 0x1f8   :  { %v483_v26 = vadd.f32 %v5038_v2, %v482_v25  ;;  %v3901_v27 = vpop.f32.mrb[37].mxu0  ;;  %3976 = vmatmul.mubr.msk.bf16.gmra.mrb[32].mxu1 %vm641_vm2, %v607_v24 }
 0x1f9   :  { %v485_v28 = vpop.f32.mrb[38].mxu0  ;;  %3979 = vmatprep.mubr.msk.bf16.mxu1 %vm4731_vm0, %v7273_v1 }
 0x1fa   :  { %v579_v29 = vmax.f32 %v483_v26, 0.0  ;;  %v486_v30 = vadd.f32 %v5038_v2, %v485_v28  ;;  %v3902_v31 = vpop.f32.mrb[39].mxu0 }
 0x1fc   :  { %v580_v32 = vmax.f32 %v486_v30, 0.0 }
 0x1fe   :  { %v608_v33 = vpack.c.bf16 %v580_v32, %v579_v29 }
 0x1ff   :  { %v490_v34 = vpop.f32.mrb[40].mxu0 }
 0x200   :  { %v491_v35 = vadd.f32 %v5038_v2, %v490_v34  ;;  %v3905_v36 = vpop.f32.mrb[41].mxu0  ;;  %3980 = vmatmul.mubr.msk.bf16.gmra.mrb[36].mxu1 %vm641_vm2, %v608_v33 }
 0x201   :  { %v493_v37 = vpop.f32.mrb[42].mxu0  ;;  %3983 = vmatprep.mubr.msk.bf16.mxu1 %vm4731_vm0, %v7273_v1 }
 0x202   :  { %v581_v38 = vmax.f32 %v491_v35, 0.0  ;;  %v494_v39 = vadd.f32 %v5038_v2, %v493_v37  ;;  %v3906_v40 = vpop.f32.mrb[43].mxu0 }
 0x204   :  { %v582_v41 = vmax.f32 %v494_v39, 0.0 }
 0x206   :  { %v609_v42 = vpack.c.bf16 %v582_v41, %v581_v38 }
 0x207   :  { %v498_v43 = vpop.f32.mrb[44].mxu0 }
 0x208   :  { %v499_v44 = vadd.f32 %v5038_v2, %v498_v43  ;;  %v3909_v45 = vpop.f32.mrb[45].mxu0  ;;  %3984 = vmatmul.mubr.msk.bf16.gmra.mrb[40].mxu1 %vm641_vm2, %v609_v42 }
 0x209   :  { %v501_v46 = vpop.f32.mrb[46].mxu0  ;;  %3987 = vmatprep.mubr.msk.bf16.mxu1 %vm4731_vm0, %v7273_v1 }
 0x20a   :  { %v583_v47 = vmax.f32 %v499_v44, 0.0  ;;  %v502_v48 = vadd.f32 %v5038_v2, %v501_v46  ;;  %v3910_v49 = vpop.f32.mrb[47].mxu0 }
 0x20c   :  { %v584_v50 = vmax.f32 %v502_v48, 0.0 }
 0x20e   :  { %v610_v51 = vpack.c.bf16 %v584_v50, %v583_v47 }
 0x20f   :  { %v506_v52 = vpop.f32.mrb[48].mxu0 }
 0x210   :  { %v507_v53 = vadd.f32 %v5038_v2, %v506_v52  ;;  %v3913_v54 = vpop.f32.mrb[49].mxu0  ;;  %3988 = vmatmul.mubr.msk.bf16.gmra.mrb[44].mxu1 %vm641_vm2, %v610_v51 }
 0x211   :  { %v509_v55 = vpop.f32.mrb[50].mxu0  ;;  %3991 = vmatprep.mubr.msk.bf16.mxu1 %vm4731_vm0, %v7273_v1 }
 0x212   :  { %v585_v56 = vmax.f32 %v507_v53, 0.0  ;;  %v510_v57 = vadd.f32 %v5038_v2, %v509_v55  ;;  %v3914_v58 = vpop.f32.mrb[51].mxu0  ;;  %v5133_v53 = vld [vmem:[#allocation12] ss:$0 sm:$0xff] }
 0x214   :  { %v586_v59 = vmax.f32 %v510_v57, 0.0 }
 0x216   :  { %v611_v60 = vpack.c.bf16 %v586_v59, %v585_v56 }
 0x217   :  { %v514_v61 = vpop.f32.mrb[52].mxu0 }
 0x218   :  { %v515_v62 = vadd.f32 %v5038_v2, %v514_v61  ;;  %v3917_v63 = vpop.f32.mrb[53].mxu0  ;;  %3992 = vmatmul.mubr.msk.bf16.gmra.mrb[48].mxu1 %vm641_vm2, %v611_v60 }
 0x219   :  { %v517_v0 = vpop.f32.mrb[54].mxu0  ;;  %3995 = vmatprep.mubr.msk.bf16.mxu1 %vm4731_vm0, %v7273_v1 }
 0x21a   :  { %v587_v3 = vmax.f32 %v515_v62, 0.0  ;;  %v518_v4 = vadd.f32 %v5038_v2, %v517_v0  ;;  %v3918_v5 = vpop.f32.mrb[55].mxu0 }
 0x21c   :  { %v588_v6 = vmax.f32 %v518_v4, 0.0 }
 0x21e   :  { %v612_v7 = vpack.c.bf16 %v588_v6, %v587_v3 }
 0x21f   :  { %v522_v8 = vpop.f32.mrb[56].mxu0 }
 0x220   :  { %v523_v9 = vadd.f32 %v5038_v2, %v522_v8  ;;  %v3921_v10 = vpop.f32.mrb[57].mxu0  ;;  %3996 = vmatmul.mubr.msk.bf16.gmra.mrb[52].mxu1 %vm641_vm2, %v612_v7 }
 0x221   :  { %v525_v11 = vpop.f32.mrb[58].mxu0  ;;  %3999 = vmatprep.mubr.msk.bf16.mxu1 %vm4731_vm0, %v7273_v1  ;;  %v7275_v10 = vmov 0  }
 0x222   :  { %v589_v12 = vmax.f32 %v523_v9, 0.0  ;;  %v526_v13 = vadd.f32 %v5038_v2, %v525_v11  ;;  %v3922_v14 = vpop.f32.mrb[59].mxu0 }
 0x224   :  { %v590_v15 = vmax.f32 %v526_v13, 0.0 }
 0x226   :  { %v613_v16 = vpack.c.bf16 %v590_v15, %v589_v12 }
 0x227   :  { %v530_v17 = vpop.f32.mrb[60].mxu0 }
 0x228   :  { %v531_v18 = vadd.f32 %v5038_v2, %v530_v17  ;;  %v3925_v19 = vpop.f32.mrb[61].mxu0  ;;  %4000 = vmatmul.mubr.msk.bf16.gmra.mrb[56].mxu1 %vm641_vm2, %v613_v16 }
 0x229   :  { %v533_v20 = vpop.f32.mrb[62].mxu0  ;;  %4003 = vmatprep.mubr.msk.bf16.mxu1 %vm4731_vm0, %v7273_v1 }
 0x22a   :  { %v591_v21 = vmax.f32 %v531_v18, 0.0  ;;  %v534_v22 = vadd.f32 %v5038_v2, %v533_v20  ;;  %v3926_v23 = vpop.f32.mrb[63].mxu0 }
 0x22c   :  { %v592_v24 = vmax.f32 %v534_v22, 0.0 }
 0x22e   :  { %v614_v25 = vpack.c.bf16 %v592_v24, %v591_v21 }
 0x22f   :  { %v538_v26 = vpop.f32.mrb[64].mxu0 }
 0x230   :  { %v539_v27 = vadd.f32 %v5038_v2, %v538_v26  ;;  %v3929_v28 = vpop.f32.mrb[65].mxu0  ;;  %4004 = vmatmul.mubr.msk.bf16.gmra.mrb[60].mxu1 %vm641_vm2, %v614_v25 }
 0x231   :  { %v541_v29 = vpop.f32.mrb[66].mxu0  ;;  %4007 = vmatprep.mubr.msk.bf16.mxu1 %vm4731_vm0, %v7273_v1 }
 0x232   :  { %v593_v30 = vmax.f32 %v539_v27, 0.0  ;;  %v542_v31 = vadd.f32 %v5038_v2, %v541_v29  ;;  %v3930_v32 = vpop.f32.mrb[67].mxu0 }
 0x234   :  { %v594_v33 = vmax.f32 %v542_v31, 0.0 }
 0x236   :  { %v615_v34 = vpack.c.bf16 %v594_v33, %v593_v30 }
 0x237   :  { %v546_v35 = vpop.f32.mrb[68].mxu0 }
 0x238   :  { %4008 = vmatmul.mubr.msk.bf16.gmra.mrb[64].mxu1 %vm641_vm2, %v615_v34  ;;  %v547_v36 = vadd.f32 %v5038_v2, %v546_v35  ;;  %v3933_v37 = vpop.f32.mrb[69].mxu0 }
 0x239   :  { %v549_v38 = vpop.f32.mrb[70].mxu0  ;;  %4011 = vmatprep.mubr.msk.bf16.mxu1 %vm4731_vm0, %v7273_v1 }
 0x23a   :  { %v595_v39 = vmax.f32 %v547_v36, 0.0  ;;  %v550_v40 = vadd.f32 %v5038_v2, %v549_v38  ;;  %v3934_v41 = vpop.f32.mrb[71].mxu0 }
 0x23c   :  { %v596_v42 = vmax.f32 %v550_v40, 0.0 }
 0x23e   :  { %v616_v43 = vpack.c.bf16 %v596_v42, %v595_v39 }
 0x23f   :  { %v554_v44 = vpop.f32.mrb[72].mxu0 }
 0x240   :  { %4012 = vmatmul.mubr.msk.bf16.gmra.mrb[68].mxu1 %vm641_vm2, %v616_v43  ;;  %v555_v45 = vadd.f32 %v5038_v2, %v554_v44  ;;  %v3937_v46 = vpop.f32.mrb[73].mxu0 }
 0x241   :  { %v557_v47 = vpop.f32.mrb[74].mxu0  ;;  %4015 = vmatprep.mubr.msk.bf16.mxu1 %vm4731_vm0, %v7273_v1 }
 0x242   :  { %v597_v48 = vmax.f32 %v555_v45, 0.0  ;;  %v558_v49 = vadd.f32 %v5038_v2, %v557_v47  ;;  %v3938_v50 = vpop.f32.mrb[75].mxu0 }
 0x244   :  { %v598_v51 = vmax.f32 %v558_v49, 0.0 }
 0x246   :  { %v617_v52 = vpack.c.bf16 %v598_v51, %v597_v48 }
 0x248   :  { %4016 = vmatmul.mubr.msk.bf16.gmra.mrb[72].mxu1 %vm641_vm2, %v617_v52 }
 0x249   :  { %1359 = vmatprep.mubr.bf16.mxu1 %v7275_v10 }
 0x28b   :  { %v733_v54 = vpop.f32.mrb[0].mxu1 }
 0x28c   :  { %v5136_v55 = vadd.f32 %v5133_v53, %v733_v54  ;;  %v3945_v56 = vpop.f32.mrb[1].mxu1 }
 0x28d   :  { %v736_v57 = vpop.f32.mrb[2].mxu1 }
 0x28e   :  { %v884_v58 = vmul.f32 0.5, %v5136_v55  ;;  %v5140_v59 = vadd.f32 %v5133_v53, %v736_v57  ;;  %3067 = vrot.lane.b32.xlu0 %v5136_v55, %s4724_s0  ;;  %v3946_v2 = vpop.f32.mrb[3].mxu1 }
 0x290   :  { %v922_v60 = vmul.f32 1.442695, %v884_v58  ;;  %v885_v61 = vmul.f32 0.5, %v5140_v59  ;;  %3069 = vrot.lane.b32.xlu1 %v5140_v59, %s4724_s0 }
 0x292   :  { %4132 = vpow2.f32 %v922_v60  ;;  %v924_v62 = vmul.f32 1.442695, %v885_v61 }
 0x293   :  { %v741_v63 = vpop.f32.mrb[4].mxu1 }
 0x294   :  { %v5148_v0 = vadd.f32 %v5133_v53, %v741_v63  ;;  %v3949_v3 = vpop.f32.mrb[5].mxu1  ;;  %4134 = vpow2.f32 %v924_v62 }
 0x295   :  { %v744_v4 = vpop.f32.mrb[6].mxu1 }
 0x296   :  { %v886_v5 = vmul.f32 0.5, %v5148_v0  ;;  %v5152_v6 = vadd.f32 %v5133_v53, %v744_v4  ;;  %3071 = vrot.lane.b32.xlu1 %v5148_v0, %s4724_s0  ;;  %v3950_v7 = vpop.f32.mrb[7].mxu1 }
 0x298   :  { %v926_v8 = vmul.f32 1.442695, %v886_v5  ;;  %3073 = vrot.lane.b32.xlu0 %v5152_v6, %s4724_s0  ;;  %v887_v9 = vmul.f32 0.5, %v5152_v6 }
 0x29a   :  { %4136 = vpow2.f32 %v926_v8  ;;  %v928_v15 = vmul.f32 1.442695, %v887_v9 }
 0x29b   :  { %v749_v11 = vpop.f32.mrb[8].mxu1 }
 0x29c   :  { %v4133_v12 = vpop.eup %4132  ;;  %v5161_v13 = vadd.f32 %v5133_v53, %v749_v11  ;;  %v3953_v14 = vpop.f32.mrb[9].mxu1  ;;  %4138 = vpow2.f32 %v928_v15 }
 0x29d   :  { %1036 = vrot.lane.b32.xlu0 %v4133_v12, %s4734_s14  ;;  %v752_v16 = vpop.f32.mrb[10].mxu1 }
 0x29e   :  { %v888_v17 = vmul.f32 0.5, %v5161_v13  ;;  %v5166_v18 = vadd.f32 %v5133_v53, %v752_v16  ;;  %v3954_v19 = vpop.f32.mrb[11].mxu1  ;;  %3075 = vrot.lane.b32.xlu1 %v5161_v13, %s4724_s0  ;;  %v4135_v20 = vpop.eup %4134 }
 0x2a0   :  { %v930_v21 = vmul.f32 1.442695, %v888_v17  ;;  %v889_v22 = vmul.f32 0.5, %v5166_v18 }
 0x2a1   :  { %1038 = vrot.lane.b32.xlu0 %v4135_v20, %s4734_s14 }
 0x2a2   :  { %4140 = vpow2.f32 %v930_v21  ;;  %v932_v27 = vmul.f32 1.442695, %v889_v22 }
 0x2a3   :  { %v757_v23 = vpop.f32.mrb[12].mxu1 }
 0x2a4   :  { %v4137_v24 = vpop.eup %4136  ;;  %v5173_v25 = vadd.f32 %v5133_v53, %v757_v23  ;;  %v3957_v26 = vpop.f32.mrb[13].mxu1  ;;  %4142 = vpow2.f32 %v932_v27 }
 0x2a5   :  { %1040 = vrot.lane.b32.xlu1 %v4137_v24, %s4734_s14  ;;  %3077 = vrot.lane.b32.xlu0 %v5166_v18, %s4724_s0  ;;  %v760_v28 = vpop.f32.mrb[14].mxu1 }
 0x2a6   :  { %v890_v29 = vmul.f32 0.5, %v5173_v25  ;;  %v5180_v30 = vadd.f32 %v5133_v53, %v760_v28  ;;  %v3958_v31 = vpop.f32.mrb[15].mxu1  ;;  %v4139_v34 = vpop.eup %4138 }
 0x2a8   :  { %v934_v32 = vmul.f32 1.442695, %v890_v29  ;;  %v891_v33 = vmul.f32 0.5, %v5180_v30 }
 0x2a9   :  { %3079 = vrot.lane.b32.xlu1 %v5173_v25, %s4724_s0  ;;  %3081 = vrot.lane.b32.xlu0 %v5180_v30, %s4724_s0 }
 0x2aa   :  { %4144 = vpow2.f32 %v934_v32  ;;  %v936_v39 = vmul.f32 1.442695, %v891_v33 }
 0x2ab   :  { %v765_v35 = vpop.f32.mrb[16].mxu1 }
 0x2ac   :  { %v4141_v36 = vpop.eup %4140  ;;  %v5188_v37 = vadd.f32 %v5133_v53, %v765_v35  ;;  %v3961_v38 = vpop.f32.mrb[17].mxu1  ;;  %4146 = vpow2.f32 %v936_v39 }
 0x2ad   :  { %1042 = vrot.lane.b32.xlu1 %v4139_v34, %s4734_s14  ;;  %1044 = vrot.lane.b32.xlu0 %v4141_v36, %s4734_s14  ;;  %v768_v40 = vpop.f32.mrb[18].mxu1 }
 0x2ae   :  { %v892_v41 = vmul.f32 0.5, %v5188_v37  ;;  %v5194_v42 = vadd.f32 %v5133_v53, %v768_v40  ;;  %v3962_v43 = vpop.f32.mrb[19].mxu1  ;;  %v4143_v46 = vpop.eup %4142 }
 0x2b0   :  { %v938_v44 = vmul.f32 1.442695, %v892_v41  ;;  %v893_v45 = vmul.f32 0.5, %v5194_v42 }
 0x2b1   :  { %3083 = vrot.lane.b32.xlu1 %v5188_v37, %s4724_s0  ;;  %3085 = vrot.lane.b32.xlu0 %v5194_v42, %s4724_s0 }
 0x2b2   :  { %4148 = vpow2.f32 %v938_v44  ;;  %v940_v51 = vmul.f32 1.442695, %v893_v45 }
 0x2b3   :  { %v773_v47 = vpop.f32.mrb[20].mxu1 }
 0x2b4   :  { %v4145_v48 = vpop.eup %4144  ;;  %v5202_v49 = vadd.f32 %v5133_v53, %v773_v47  ;;  %v3965_v50 = vpop.f32.mrb[21].mxu1  ;;  %4150 = vpow2.f32 %v940_v51 }
 0x2b5   :  { %1046 = vrot.lane.b32.xlu1 %v4143_v46, %s4734_s14  ;;  %1048 = vrot.lane.b32.xlu0 %v4145_v48, %s4734_s14  ;;  %v776_v52 = vpop.f32.mrb[22].mxu1 }
 0x2b6   :  { %v894_v54 = vmul.f32 0.5, %v5202_v49  ;;  %v5208_v56 = vadd.f32 %v5133_v53, %v776_v52  ;;  %v3966_v57 = vpop.f32.mrb[23].mxu1  ;;  %v4147_v60 = vpop.eup %4146 }
 0x2b8   :  { %v942_v58 = vmul.f32 1.442695, %v894_v54  ;;  %v895_v2 = vmul.f32 0.5, %v5208_v56 }
 0x2b9   :  { %3087 = vrot.lane.b32.xlu1 %v5202_v49, %s4724_s0  ;;  %3089 = vrot.lane.b32.xlu0 %v5208_v56, %s4724_s0 }
 0x2ba   :  { %4152 = vpow2.f32 %v942_v58  ;;  %v944_v4 = vmul.f32 1.442695, %v895_v2 }
 0x2bb   :  { %v781_v61 = vpop.f32.mrb[24].mxu1 }
 0x2bc   :  { %v4149_v62 = vpop.eup %4148  ;;  %v5216_v63 = vadd.f32 %v5133_v53, %v781_v61  ;;  %v3969_v3 = vpop.f32.mrb[25].mxu1  ;;  %4154 = vpow2.f32 %v944_v4 }
 0x2bd   :  { %1050 = vrot.lane.b32.xlu1 %v4147_v60, %s4734_s14  ;;  %1052 = vrot.lane.b32.xlu0 %v4149_v62, %s4734_s14  ;;  %v784_v5 = vpop.f32.mrb[26].mxu1 }
 0x2be   :  { %v896_v7 = vmul.f32 0.5, %v5216_v63  ;;  %v5222_v8 = vadd.f32 %v5133_v53, %v784_v5  ;;  %v3970_v9 = vpop.f32.mrb[27].mxu1  ;;  %v4151_v14 = vpop.eup %4150 }
 0x2c0   :  { %v946_v11 = vmul.f32 1.442695, %v896_v7  ;;  %v897_v12 = vmul.f32 0.5, %v5222_v8 }
 0x2c1   :  { %3091 = vrot.lane.b32.xlu1 %v5216_v63, %s4724_s0  ;;  %3093 = vrot.lane.b32.xlu0 %v5222_v8, %s4724_s0 }
 0x2c2   :  { %4156 = vpow2.f32 %v946_v11  ;;  %v948_v20 = vmul.f32 1.442695, %v897_v12 }
 0x2c3   :  { %v789_v15 = vpop.f32.mrb[28].mxu1 }
 0x2c4   :  { %v4153_v16 = vpop.eup %4152  ;;  %v5230_v17 = vadd.f32 %v5133_v53, %v789_v15  ;;  %v3973_v19 = vpop.f32.mrb[29].mxu1  ;;  %4158 = vpow2.f32 %v948_v20 }
 0x2c5   :  { %1054 = vrot.lane.b32.xlu1 %v4151_v14, %s4734_s14  ;;  %1056 = vrot.lane.b32.xlu0 %v4153_v16, %s4734_s14  ;;  %v792_v21 = vpop.f32.mrb[30].mxu1 }
 0x2c6   :  { %v898_v22 = vmul.f32 0.5, %v5230_v17  ;;  %v5236_v23 = vadd.f32 %v5133_v53, %v792_v21  ;;  %v3974_v24 = vpop.f32.mrb[31].mxu1  ;;  %v4155_v28 = vpop.eup %4154 }
 0x2c8   :  { %v950_v26 = vmul.f32 1.442695, %v898_v22  ;;  %v899_v27 = vmul.f32 0.5, %v5236_v23 }
 0x2c9   :  { %3095 = vrot.lane.b32.xlu1 %v5230_v17, %s4724_s0  ;;  %3097 = vrot.lane.b32.xlu0 %v5236_v23, %s4724_s0 }
 0x2ca   :  { %4160 = vpow2.f32 %v950_v26  ;;  %v952_v34 = vmul.f32 1.442695, %v899_v27 }
 0x2cb   :  { %v797_v29 = vpop.f32.mrb[32].mxu1 }
 0x2cc   :  { %v4157_v31 = vpop.eup %4156  ;;  %v5244_v32 = vadd.f32 %v5133_v53, %v797_v29  ;;  %v3977_v33 = vpop.f32.mrb[33].mxu1  ;;  %4162 = vpow2.f32 %v952_v34 }
 0x2cd   :  { %1058 = vrot.lane.b32.xlu1 %v4155_v28, %s4734_s14  ;;  %1060 = vrot.lane.b32.xlu0 %v4157_v31, %s4734_s14  ;;  %v800_v35 = vpop.f32.mrb[34].mxu1 }
 0x2ce   :  { %v900_v36 = vmul.f32 0.5, %v5244_v32  ;;  %v5250_v38 = vadd.f32 %v5133_v53, %v800_v35  ;;  %v3978_v39 = vpop.f32.mrb[35].mxu1  ;;  %v4159_v43 = vpop.eup %4158 }
 0x2d0   :  { %v954_v40 = vmul.f32 1.442695, %v900_v36  ;;  %v901_v41 = vmul.f32 0.5, %v5250_v38 }
 0x2d1   :  { %3099 = vrot.lane.b32.xlu1 %v5244_v32, %s4724_s0  ;;  %3101 = vrot.lane.b32.xlu0 %v5250_v38, %s4724_s0 }
 0x2d2   :  { %4164 = vpow2.f32 %v954_v40  ;;  %v956_v48 = vmul.f32 1.442695, %v901_v41 }
 0x2d3   :  { %v805_v44 = vpop.f32.mrb[36].mxu1 }
 0x2d4   :  { %v4161_v45 = vpop.eup %4160  ;;  %v5258_v46 = vadd.f32 %v5133_v53, %v805_v44  ;;  %v3981_v47 = vpop.f32.mrb[37].mxu1  ;;  %4166 = vpow2.f32 %v956_v48 }
 0x2d5   :  { %1062 = vrot.lane.b32.xlu1 %v4159_v43, %s4734_s14  ;;  %1064 = vrot.lane.b32.xlu0 %v4161_v45, %s4734_s14  ;;  %v808_v50 = vpop.f32.mrb[38].mxu1 }
 0x2d6   :  { %v902_v51 = vmul.f32 0.5, %v5258_v46  ;;  %v5264_v52 = vadd.f32 %v5133_v53, %v808_v50  ;;  %v3982_v54 = vpop.f32.mrb[39].mxu1  ;;  %v4163_v2 = vpop.eup %4162 }
 0x2d8   :  { %v958_v57 = vmul.f32 1.442695, %v902_v51  ;;  %v903_v58 = vmul.f32 0.5, %v5264_v52 }
 0x2d9   :  { %3103 = vrot.lane.b32.xlu1 %v5258_v46, %s4724_s0  ;;  %3105 = vrot.lane.b32.xlu0 %v5264_v52, %s4724_s0 }
 0x2da   :  { %4168 = vpow2.f32 %v958_v57  ;;  %v960_v4 = vmul.f32 1.442695, %v903_v58 }
 0x2db   :  { %v813_v60 = vpop.f32.mrb[40].mxu1 }
 0x2dc   :  { %v4165_v61 = vpop.eup %4164  ;;  %v5272_v62 = vadd.f32 %v5133_v53, %v813_v60  ;;  %v3985_v3 = vpop.f32.mrb[41].mxu1  ;;  %4170 = vpow2.f32 %v960_v4 }
 0x2dd   :  { %1066 = vrot.lane.b32.xlu1 %v4163_v2, %s4734_s14  ;;  %1068 = vrot.lane.b32.xlu0 %v4165_v61, %s4734_s14  ;;  %v816_v5 = vpop.f32.mrb[42].mxu1 }
 0x2de   :  { %v904_v7 = vmul.f32 0.5, %v5272_v62  ;;  %v5278_v9 = vadd.f32 %v5133_v53, %v816_v5  ;;  %v3986_v11 = vpop.f32.mrb[43].mxu1  ;;  %v4167_v15 = vpop.eup %4166 }
 0x2e0   :  { %v962_v12 = vmul.f32 1.442695, %v904_v7  ;;  %v905_v14 = vmul.f32 0.5, %v5278_v9 }
 0x2e1   :  { %3107 = vrot.lane.b32.xlu1 %v5272_v62, %s4724_s0  ;;  %3109 = vrot.lane.b32.xlu0 %v5278_v9, %s4724_s0 }
 0x2e2   :  { %4172 = vpow2.f32 %v962_v12  ;;  %v964_v22 = vmul.f32 1.442695, %v905_v14 }
 0x2e3   :  { %v821_v16 = vpop.f32.mrb[44].mxu1 }
 0x2e4   :  { %v4169_v19 = vpop.eup %4168  ;;  %v5286_v20 = vadd.f32 %v5133_v53, %v821_v16  ;;  %v3989_v21 = vpop.f32.mrb[45].mxu1  ;;  %4174 = vpow2.f32 %v964_v22 }
 0x2e5   :  { %1070 = vrot.lane.b32.xlu1 %v4167_v15, %s4734_s14  ;;  %1072 = vrot.lane.b32.xlu0 %v4169_v19, %s4734_s14  ;;  %v824_v24 = vpop.f32.mrb[46].mxu1 }
 0x2e6   :  { %v906_v26 = vmul.f32 0.5, %v5286_v20  ;;  %v5292_v27 = vadd.f32 %v5133_v53, %v824_v24  ;;  %v3990_v28 = vpop.f32.mrb[47].mxu1  ;;  %v4171_v33 = vpop.eup %4170 }
 0x2e8   :  { %v966_v29 = vmul.f32 1.442695, %v906_v26  ;;  %v907_v31 = vmul.f32 0.5, %v5292_v27 }
 0x2e9   :  { %3111 = vrot.lane.b32.xlu1 %v5286_v20, %s4724_s0  ;;  %3113 = vrot.lane.b32.xlu0 %v5292_v27, %s4724_s0 }
 0x2ea   :  { %4176 = vpow2.f32 %v966_v29  ;;  %v968_v40 = vmul.f32 1.442695, %v907_v31  ;;  %v5336_v29 = vpop.permute.xlu0 %1632 }
 0x2eb   :  { %v829_v34 = vpop.f32.mrb[48].mxu1 }
 0x2ec   :  { %v4173_v35 = vpop.eup %4172  ;;  %v5300_v36 = vadd.f32 %v5133_v53, %v829_v34  ;;  %v3993_v39 = vpop.f32.mrb[49].mxu1  ;;  %4178 = vpow2.f32 %v968_v40 }
 0x2ed   :  { %1074 = vrot.lane.b32.xlu1 %v4171_v33, %s4734_s14  ;;  %1076 = vrot.lane.b32.xlu0 %v4173_v35, %s4734_s14  ;;  %v832_v41 = vpop.f32.mrb[50].mxu1 }
 0x2ee   :  { %v908_v43 = vmul.f32 0.5, %v5300_v36  ;;  %v5306_v44 = vadd.f32 %v5133_v53, %v832_v41  ;;  %v3994_v45 = vpop.f32.mrb[51].mxu1  ;;  %v4175_v50 = vpop.eup %4174 }
 0x2f0   :  { %v970_v47 = vmul.f32 1.442695, %v908_v43  ;;  %v909_v48 = vmul.f32 0.5, %v5306_v44 }
 0x2f1   :  { %3115 = vrot.lane.b32.xlu1 %v5300_v36, %s4724_s0  ;;  %3117 = vrot.lane.b32.xlu0 %v5306_v44, %s4724_s0 }
 0x2f2   :  { %4180 = vpow2.f32 %v970_v47  ;;  %v972_v2 = vmul.f32 1.442695, %v909_v48 }
 0x2f3   :  { %v837_v51 = vpop.f32.mrb[52].mxu1 }
 0x2f4   :  { %v4177_v54 = vpop.eup %4176  ;;  %v5314_v57 = vadd.f32 %v5133_v53, %v837_v51  ;;  %v3997_v58 = vpop.f32.mrb[53].mxu1  ;;  %4182 = vpow2.f32 %v972_v2 }
 0x2f5   :  { %1078 = vrot.lane.b32.xlu1 %v4175_v50, %s4734_s14  ;;  %1080 = vrot.lane.b32.xlu0 %v4177_v54, %s4734_s14  ;;  %v840_v60 = vpop.f32.mrb[54].mxu1 }
 0x2f6   :  { %v910_v61 = vmul.f32 0.5, %v5314_v57  ;;  %v5320_v3 = vadd.f32 %v5133_v53, %v840_v60  ;;  %v3998_v4 = vpop.f32.mrb[55].mxu1  ;;  %v4179_v11 = vpop.eup %4178 }
 0x2f8   :  { %v974_v5 = vmul.f32 1.442695, %v910_v61  ;;  %v911_v7 = vmul.f32 0.5, %v5320_v3 }
 0x2f9   :  { %3119 = vrot.lane.b32.xlu1 %v5314_v57, %s4724_s0  ;;  %3121 = vrot.lane.b32.xlu0 %v5320_v3, %s4724_s0 }
 0x2fa   :  { %4184 = vpow2.f32 %v974_v5  ;;  %v976_v19 = vmul.f32 1.442695, %v911_v7 }
 0x2fb   :  { %v845_v12 = vpop.f32.mrb[56].mxu1 }
 0x2fc   :  { %v4181_v14 = vpop.eup %4180  ;;  %v5328_v15 = vadd.f32 %v5133_v53, %v845_v12  ;;  %v4001_v16 = vpop.f32.mrb[57].mxu1  ;;  %4186 = vpow2.f32 %v976_v19 }
 0x2fd   :  { %1082 = vrot.lane.b32.xlu1 %v4179_v11, %s4734_s14  ;;  %1084 = vrot.lane.b32.xlu0 %v4181_v14, %s4734_s14  ;;  %v848_v21 = vpop.f32.mrb[58].mxu1 }
 0x2fe   :  { %v912_v22 = vmul.f32 0.5, %v5328_v15  ;;  %v5334_v24 = vadd.f32 %v5133_v53, %v848_v21  ;;  %v4002_v26 = vpop.f32.mrb[59].mxu1  ;;  %v4183_v33 = vpop.eup %4182  ;;  %v222_v21 = vld [vmem:[#allocation6] sm:$0xff] }
 0x300   :  { %v978_v28 = vmul.f32 1.442695, %v912_v22  ;;  %v913_v31 = vmul.f32 0.5, %v5334_v24  ;;  %v5348_v45 = vpop.permute.xlu0 %3067 }
 0x301   :  { %3123 = vrot.lane.b32.xlu1 %v5328_v15, %s4724_s0  ;;  %3125 = vrot.lane.b32.xlu0 %v5334_v24, %s4724_s0  ;;  %7299 = vst [vmem:[#allocation29_spill] sm:$0xff] %v5348_v45 }
 0x302   :  { %4188 = vpow2.f32 %v978_v28  ;;  %v980_v41 = vmul.f32 1.442695, %v913_v31  ;;  %v5358_v54 = vpop.permute.xlu1 %3069  ;;  %v223_v28 = vld [vmem:[#allocation6 + $0x8] sm:$0xff] }
 0x303   :  { %v853_v34 = vpop.f32.mrb[60].mxu1  ;;  %7300 = vst [vmem:[#allocation30_spill] sm:$0xff] %v5358_v54 }
 0x304   :  { %v4185_v35 = vpop.eup %4184  ;;  %v5344_v39 = vadd.f32 %v5133_v53, %v853_v34  ;;  %v4005_v40 = vpop.f32.mrb[61].mxu1  ;;  %4190 = vpow2.f32 %v980_v41 }
 0x305   :  { %1086 = vrot.lane.b32.xlu1 %v4183_v33, %s4734_s14  ;;  %1088 = vrot.lane.b32.xlu0 %v4185_v35, %s4734_s14  ;;  %v856_v43 = vpop.f32.mrb[62].mxu1 }
 0x306   :  { %v914_v47 = vmul.f32 0.5, %v5344_v39  ;;  %v5352_v48 = vadd.f32 %v5133_v53, %v856_v43  ;;  %v4006_v50 = vpop.f32.mrb[63].mxu1  ;;  %v4187_v2 = vpop.eup %4186 }
 0x308   :  { %v982_v51 = vmul.f32 1.442695, %v914_v47  ;;  %v915_v7 = vmul.f32 0.5, %v5352_v48  ;;  %v5368_v12 = vpop.permute.xlu1 %3071 }
 0x309   :  { %3127 = vrot.lane.b32.xlu1 %v5344_v39, %s4724_s0  ;;  %3129 = vrot.lane.b32.xlu0 %v5352_v48, %s4724_s0  ;;  %7302 = vst [vmem:[#allocation32_spill] sm:$0xff] %v5368_v12 }
 0x30a   :  { %4192 = vpow2.f32 %v982_v51  ;;  %v5360_v58 = vpop.permute.xlu0 %3073  ;;  %v984_v26 = vmul.f32 1.442695, %v915_v7 }
 0x30b   :  { %7301 = vst [vmem:[#allocation31_spill] sm:$0xff] %v5360_v58  ;;  %v861_v60 = vpop.f32.mrb[64].mxu1 }
 0x30c   :  { %v4189_v61 = vpop.eup %4188  ;;  %v5363_v4 = vadd.f32 %v5133_v53, %v861_v60  ;;  %v4009_v5 = vpop.f32.mrb[65].mxu1  ;;  %4194 = vpow2.f32 %v984_v26 }
 0x30d   :  { %1090 = vrot.lane.b32.xlu1 %v4187_v2, %s4734_s14  ;;  %1092 = vrot.lane.b32.xlu0 %v4189_v61, %s4734_s14  ;;  %v864_v11 = vpop.f32.mrb[66].mxu1 }
 0x30e   :  { %v916_v14 = vmul.f32 0.5, %v5363_v4  ;;  %v5372_v16 = vadd.f32 %v5133_v53, %v864_v11  ;;  %v4010_v19 = vpop.f32.mrb[67].mxu1  ;;  %v4191_v35 = vpop.eup %4190 }
 0x30f   :  { %v1037_v22 = vpop.permute.xlu0 %1036 }
 0x310   :  { %v986_v31 = vmul.f32 1.442695, %v916_v14  ;;  %v1150_v33 = vmul.f32 %v1037_v22, %v222_v21  ;;  %v5378_v34 = vpop.permute.xlu1 %3075 }
 0x311   :  { %3131 = vrot.lane.b32.xlu1 %v5363_v4, %s4724_s0  ;;  %3133 = vrot.lane.b32.xlu0 %v5372_v16, %s4724_s0  ;;  %7303 = vst [vmem:[#allocation33_spill] sm:$0xff] %v5378_v34 }
 0x312   :  { %4196 = vpow2.f32 %v986_v31  ;;  %v1188_v60 = vadd.f32 %v1150_v33, %v5136_v55  ;;  %v917_v55 = vmul.f32 0.5, %v5372_v16  ;;  %v225_v33 = vld [vmem:[#allocation6 + $0x18] sm:$0xff] }
 0x313   :  { %v1039_v40 = vpop.permute.xlu0 %1038  ;;  %v869_v41 = vpop.f32.mrb[68].mxu1 }
 0x314   :  { %v4193_v43 = vpop.eup %4192  ;;  %v1151_v47 = vmul.f32 %v1039_v40, %v223_v28  ;;  %v5381_v50 = vadd.f32 %v5133_v53, %v869_v41  ;;  %v4013_v51 = vpop.f32.mrb[69].mxu1  ;;  %v988_v41 = vmul.f32 1.442695, %v917_v55 }
 0x315   :  { %1094 = vrot.lane.b32.xlu1 %v4191_v35, %s4734_s14  ;;  %1096 = vrot.lane.b32.xlu0 %v4193_v43, %s4734_s14  ;;  %v872_v2 = vpop.f32.mrb[70].mxu1 }
 0x316   :  { %v1189_v61 = vadd.f32 %v1151_v47, %v5140_v59  ;;  %v4014_v5 = vpop.f32.mrb[71].mxu1  ;;  %v918_v19 = vmul.f32 0.5, %v5381_v50  ;;  %v5393_v21 = vadd.f32 %v5133_v53, %v872_v2  ;;  %v224_v59 = vld [vmem:[#allocation6 + $0x10] sm:$0xff]  ;;  %v4195_v51 = vpop.eup %4194 }
 0x317   :  { %v1041_v7 = vpop.permute.xlu1 %1040  ;;  %v5387_v11 = vpop.permute.xlu0 %3077 }
 0x318   :  { %7304 = vst [vmem:[#allocation34_spill] sm:$0xff] %v5387_v11  ;;  %v1226_v14 = vpack.c.bf16 %v1189_v61, %v1188_v60  ;;  %v990_v28 = vmul.f32 1.442695, %v918_v19  ;;  %v1152_v43 = vmul.f32 %v1041_v7, %v224_v59  ;;  %v919_v2 = vmul.f32 0.5, %v5393_v21 }
 0x319   :  { %3219 = vrot.lane.b32.xlu1 %v1188_v60, %s4735_s18  ;;  %3221 = vrot.lane.b32.xlu0 %v1189_v61, %s4735_s18 }
 0x31a   :  { %3747 = vmatmul.mubr.msk.bf16.vlgmr.msra.gmra.mrb[76].mxu1 %vm1269_vm3, %v1226_v14  ;;  %4198 = vpow2.f32 %v990_v28  ;;  %v1190_v55 = vadd.f32 %v1152_v43, %v5148_v0  ;;  %v992_v59 = vmul.f32 1.442695, %v919_v2  ;;  %v7309_v43 = vmov 0  }
 0x31b   :  { %v5397_v22 = vpop.permute.xlu1 %3079  ;;  %v5399_v26 = vpop.permute.xlu0 %3081  ;;  %1369 = vmatprep.mubr.bf16.mxu1 %v7275_v10  ;;  %4200 = vpow2.f32 %v988_v41  ;;  %v227_v41 = vld [vmem:[#allocation6 + $0x28] sm:$0xff] }
 0x31c   :  { %7305 = vst [vmem:[#allocation35_spill] sm:$0xff] %v5397_v22  ;;  %7306 = vst [vmem:[#allocation36_spill] sm:$0xff] %v5399_v26  ;;  %v877_v31 = vpop.f32.mrb[72].mxu1  ;;  %v4197_v5 = vpop.eup %4196  ;;  %4202 = vpow2.f32 %v992_v59 }
 0x31d   :  { %3135 = vrot.lane.b32.xlu1 %v5381_v50, %s4724_s0  ;;  %3137 = vrot.lane.b32.xlu0 %v5393_v21, %s4724_s0  ;;  %v5407_v35 = vadd.f32 %v5133_v53, %v877_v31  ;;  %v4017_v40 = vpop.f32.mrb[73].mxu1  ;;  %v226_v31 = vld [vmem:[#allocation6 + $0x20] sm:$0xff] }
 0x31e   :  { %v880_v47 = vpop.f32.mrb[74].mxu1 }
 0x31f   :  { %v1043_v60 = vpop.permute.xlu1 %1042  ;;  %v1045_v61 = vpop.permute.xlu0 %1044  ;;  %v920_v19 = vmul.f32 0.5, %v5407_v35 }
 0x320   :  { %v1153_v14 = vmul.f32 %v1043_v60, %v225_v33  ;;  %v4018_v1 = vpop.f32.mrb[75].mxu1 }
 0x321   :  { %1098 = vrot.lane.b32.xlu1 %v4195_v51, %s4734_s14  ;;  %1100 = vrot.lane.b32.xlu0 %v4197_v5, %s4734_s14  ;;  %v994_v33 = vmul.f32 1.442695, %v920_v19  ;;  %v5422_v1 = vadd.f32 %v5133_v53, %v880_v47  ;;  %v1154_v51 = vmul.f32 %v1045_v61, %v226_v31  ;;  %v228_v5 = vld [vmem:[#allocation6 + $0x30] sm:$0xff]  ;;  %v229_v31 = vld [vmem:[#allocation6 + $0x38] sm:$0xff] }
 0x322   :  { %v1191_v7 = vadd.f32 %v1153_v14, %v5152_v6 }
 0x323   :  { %v5415_v40 = vpop.permute.xlu1 %3083  ;;  %v5417_v10 = vpop.permute.xlu0 %3085  ;;  %4204 = vpow2.f32 %v994_v33  ;;  %v921_v2 = vmul.f32 0.5, %v5422_v1  ;;  %v1192_v47 = vadd.f32 %v1154_v51, %v5161_v13 }
 0x324   :  { %7307 = vst [vmem:[#allocation37_spill] sm:$0xff] %v5415_v40  ;;  %7308 = vst [vmem:[#allocation38_spill] sm:$0xff] %v5417_v10  ;;  %v1227_v28 = vpack.c.bf16 %v1191_v7, %v1190_v55  ;;  %v4199_v53 = vpop.eup %4198 }
 0x325   :  { %3223 = vrot.lane.b32.xlu1 %v1190_v55, %s4735_s18  ;;  %3225 = vrot.lane.b32.xlu0 %v1191_v7, %s4735_s18  ;;  %v4201_v55 = vpop.eup %4200  ;;  %v996_v7 = vmul.f32 1.442695, %v921_v2 }
 0x326   :  { %3748 = vmatmul.mubr.msk.bf16.gmra.mrb[80].mxu1 %vm1269_vm3, %v1227_v28 }
 0x327   :  { %v1047_v0 = vpop.permute.xlu1 %1046  ;;  %v1049_v6 = vpop.permute.xlu0 %1048  ;;  %1379 = vmatprep.mubr.bf16.mxu1 %v7309_v43  ;;  %4206 = vpow2.f32 %v996_v7 }
 0x328   :  { %v1155_v60 = vmul.f32 %v1047_v0, %v227_v41  ;;  %v1156_v28 = vmul.f32 %v1049_v6, %v228_v5  ;;  %v4203_v41 = vpop.eup %4202 }
 0x329   :  { %3139 = vrot.lane.b32.xlu1 %v5407_v35, %s4724_s0  ;;  %3141 = vrot.lane.b32.xlu0 %v5422_v1, %s4724_s0  ;;  %s4736_s0 = smov [#allocation21]  }
 0x32a   :  { %v1193_v61 = vadd.f32 %v1155_v60, %v5166_v18  ;;  %v1194_v0 = vadd.f32 %v1156_v28, %v5173_v25  ;;  %v230_v60 = vld [vmem:[#allocation6 + $0x40] sm:$0xff]  ;;  %v232_v28 = vld [vmem:[#allocation6 + $0x50] sm:$0xff]  ;;  %s3682_s19 = sshll.u32 %s4736_s0, 4  ;;  %s3683_s19 = int_to_ptr.vmem [resolvable:$true] %s3682_s19 }
 0x32b   :  { %v5433_v14 = vpop.permute.xlu1 %3087  ;;  %v5435_v19 = vpop.permute.xlu0 %3089  ;;  %s4679_s13 = scalar_lea.vmem %s3683_s19, 4864  ;;  %p4684_p5 = scmp.lt.s32.totalorder %s3683_s19, %s3683_s19 }
 0x32c   :  { %7310 = vst [vmem:[#allocation39_spill] sm:$0xff] %v5433_v14  ;;  %7311 = vst [vmem:[#allocation40_spill] sm:$0xff] %v5435_v19  ;;  %v1228_v59 = vpack.c.bf16 %v1193_v61, %v1192_v47  ;;  %p4680_p4 = scmp.ne.s32.totalorder %s3683_s19, %s4679_s13  ;;  %p4685_p6 = scmp.lt.s32.totalorder %s4679_s13, %s4679_s13 }
 0x32d   :  { %1102 = vrot.lane.b32.xlu1 %v4201_v55, %s4734_s14  ;;  %1104 = vrot.lane.b32.xlu0 %v4199_v53, %s4734_s14  ;;  %v4205_v51 = vpop.eup %4204  ;;  %v231_v55 = vld [vmem:[#allocation6 + $0x48] sm:$0xff] }
 0x32e   :  { %3749 = vmatmul.mubr.msk.bf16.gmra.mrb[84].mxu1 %vm1269_vm3, %v1228_v59  ;;  %p4686_p7 = por %p4685_p6, %p4684_p5 }
 0x32f   :  { %v1051_v33 = vpop.permute.xlu1 %1050  ;;  %v1053_v13 = vpop.permute.xlu0 %1052  ;;  %1389 = vmatprep.mubr.bf16.mxu1 %v7309_v43 }
 0x330   :  { %v1157_v18 = vmul.f32 %v1051_v33, %v229_v31  ;;  %v1158_v7 = vmul.f32 %v1053_v13, %v230_v60  ;;  %p4687_p8 = pnand %p4686_p7, %p4680_p4 }
 0x331   :  { %3227 = vrot.lane.b32.xlu1 %v1192_v47, %s4735_s18  ;;  %3229 = vrot.lane.b32.xlu0 %v1193_v61, %s4735_s18 }
 0x332   :  { %v1195_v2 = vadd.f32 %v1157_v18, %v5180_v30  ;;  %v4207_v30 = vpop.eup %4206  ;;  %v1196_v59 = vadd.f32 %v1158_v7, %v5188_v37 }
 0x333   :  { %v5445_v6 = vpop.permute.xlu1 %3091  ;;  %v5447_v53 = vpop.permute.xlu0 %3093 }
 0x334   :  { %7312 = vst [vmem:[#allocation41_spill] sm:$0xff] %v5445_v6  ;;  %7313 = vst [vmem:[#allocation42_spill] sm:$0xff] %v5447_v53  ;;  %v1229_v5 = vpack.c.bf16 %v1195_v2, %v1194_v0 }
 0x335   :  { %1106 = vrot.lane.b32.xlu1 %v4203_v41, %s4734_s14  ;;  %1108 = vrot.lane.b32.xlu0 %v4205_v51, %s4734_s14  ;;  %v233_v41 = vld [vmem:[#allocation6 + $0x58] sm:$0xff] }
 0x336   :  { %3750 = vmatmul.mubr.msk.bf16.gmra.mrb[88].mxu1 %vm1269_vm3, %v1229_v5 }
 0x337   :  { %v1055_v47 = vpop.permute.xlu1 %1054  ;;  %v1057_v61 = vpop.permute.xlu0 %1056  ;;  %1399 = vmatprep.mubr.bf16.mxu1 %v7309_v43 }
 0x338   :  { %v1159_v25 = vmul.f32 %v1055_v47, %v231_v55  ;;  %v1160_v51 = vmul.f32 %v1057_v61, %v232_v28 }
 0x339   :  { %3231 = vrot.lane.b32.xlu1 %v1194_v0, %s4735_s18  ;;  %3233 = vrot.lane.b32.xlu0 %v1195_v2, %s4735_s18 }
 0x33a   :  { %v1197_v31 = vadd.f32 %v1159_v25, %v5194_v42  ;;  %v234_v42 = vld [vmem:[#allocation6 + $0x60] sm:$0xff]  ;;  %v1198_v60 = vadd.f32 %v1160_v51, %v5202_v49  ;;  %v235_v25 = vld [vmem:[#allocation6 + $0x68] sm:$0xff] }
 0x33b   :  { %v5457_v33 = vpop.permute.xlu1 %3095  ;;  %v5459_v13 = vpop.permute.xlu0 %3097 }
 0x33c   :  { %7314 = vst [vmem:[#allocation43_spill] sm:$0xff] %v5457_v33  ;;  %7315 = vst [vmem:[#allocation44_spill] sm:$0xff] %v5459_v13  ;;  %v1230_v18 = vpack.c.bf16 %v1197_v31, %v1196_v59 }
 0x33d   :  { %3237 = vrot.lane.b32.xlu0 %v1197_v31, %s4735_s18  ;;  %1110 = vrot.lane.b32.xlu1 %v4207_v30, %s4734_s14  ;;  %v236_v30 = vld [vmem:[#allocation6 + $0x70] sm:$0xff] }
 0x33e   :  { %3751 = vmatmul.mubr.msk.bf16.gmra.mrb[92].mxu1 %vm1269_vm3, %v1230_v18 }
 0x33f   :  { %v1059_v0 = vpop.permute.xlu1 %1058  ;;  %v1061_v2 = vpop.permute.xlu0 %1060  ;;  %1409 = vmatprep.mubr.bf16.mxu1 %v7309_v43 }
 0x340   :  { %v1161_v37 = vmul.f32 %v1059_v0, %v233_v41  ;;  %v1162_v55 = vmul.f32 %v1061_v2, %v234_v42 }
 0x341   :  { %3235 = vrot.lane.b32.xlu1 %v1196_v59, %s4735_s18 }
 0x342   :  { %v1199_v5 = vadd.f32 %v1161_v37, %v5208_v56  ;;  %v1200_v59 = vadd.f32 %v1162_v55, %v5216_v63  ;;  %v237_v63 = vld [vmem:[#allocation6 + $0x78] sm:$0xff]  ;;  %v238_v37 = vld [vmem:[#allocation6 + $0x80] sm:$0xff] }
 0x343   :  { %v5468_v7 = vpop.permute.xlu1 %3099  ;;  %v5470_v47 = vpop.permute.xlu0 %3101 }
 0x344   :  { %7316 = vst [vmem:[#allocation45_spill] sm:$0xff] %v5468_v7  ;;  %7317 = vst [vmem:[#allocation46_spill] sm:$0xff] %v5470_v47  ;;  %v1231_v61 = vpack.c.bf16 %v1199_v5, %v1198_v60  ;;  %3241 = vrot.lane.b32.xlu0 %v1199_v5, %s4735_s18 }
 0x345   :  { %3239 = vrot.lane.b32.xlu1 %v1198_v60, %s4735_s18 }
 0x346   :  { %3752 = vmatmul.mubr.msk.bf16.gmra.mrb[96].mxu1 %vm1269_vm3, %v1231_v61 }
 0x347   :  { %v1063_v31 = vpop.permute.xlu1 %1062  ;;  %v1065_v49 = vpop.permute.xlu0 %1064  ;;  %1419 = vmatprep.mubr.bf16.mxu1 %v7309_v43 }
 0x348   :  { %v1163_v56 = vmul.f32 %v1063_v31, %v235_v25  ;;  %v1164_v28 = vmul.f32 %v1065_v49, %v236_v30  ;;  %v240_v31 = vld [vmem:[#allocation6 + $0x90] sm:$0xff] }
 0x349   :  { %3243 = vrot.lane.b32.xlu1 %v1200_v59, %s4735_s18 }
 0x34a   :  { %v1201_v18 = vadd.f32 %v1163_v56, %v5222_v8  ;;  %v1202_v41 = vadd.f32 %v1164_v28, %v5230_v17 }
 0x34b   :  { %v5480_v51 = vpop.permute.xlu1 %3103  ;;  %v5482_v0 = vpop.permute.xlu0 %3105 }
 0x34c   :  { %7318 = vst [vmem:[#allocation47_spill] sm:$0xff] %v5480_v51  ;;  %7319 = vst [vmem:[#allocation48_spill] sm:$0xff] %v5482_v0  ;;  %v1232_v2 = vpack.c.bf16 %v1201_v18, %v1200_v59  ;;  %3245 = vrot.lane.b32.xlu0 %v1201_v18, %s4735_s18  ;;  %v239_v59 = vld [vmem:[#allocation6 + $0x88] sm:$0xff] }
 0x34d   :  { %3247 = vrot.lane.b32.xlu1 %v1202_v41, %s4735_s18 }
 0x34e   :  { %3753 = vmatmul.mubr.msk.bf16.gmra.mrb[100].mxu1 %vm1269_vm3, %v1232_v2 }
 0x34f   :  { %v1067_v42 = vpop.permute.xlu1 %1066  ;;  %v1069_v60 = vpop.permute.xlu0 %1068  ;;  %1429 = vmatprep.mubr.bf16.mxu1 %v7309_v43 }
 0x350   :  { %v1165_v8 = vmul.f32 %v1067_v42, %v237_v63  ;;  %v1166_v5 = vmul.f32 %v1069_v60, %v238_v37  ;;  %v241_v37 = vld [vmem:[#allocation6 + $0x98] sm:$0xff]  ;;  %v242_v42 = vld [vmem:[#allocation6 + $0xa0] sm:$0xff] }
 0x352   :  { %v1203_v17 = vadd.f32 %v1165_v8, %v5236_v23  ;;  %v1204_v55 = vadd.f32 %v1166_v5, %v5244_v32 }
 0x353   :  { %v5490_v61 = vpop.permute.xlu1 %3107  ;;  %v5492_v25 = vpop.permute.xlu0 %3109 }
 0x354   :  { %7320 = vst [vmem:[#allocation49_spill] sm:$0xff] %v5490_v61  ;;  %7321 = vst [vmem:[#allocation50_spill] sm:$0xff] %v5492_v25  ;;  %v1233_v30 = vpack.c.bf16 %v1203_v17, %v1202_v41  ;;  %3249 = vrot.lane.b32.xlu0 %v1203_v17, %s4735_s18  ;;  %3251 = vrot.lane.b32.xlu1 %v1204_v55, %s4735_s18 }
 0x356   :  { %3754 = vmatmul.mubr.msk.bf16.gmra.mrb[104].mxu1 %vm1269_vm3, %v1233_v30 }
 0x357   :  { %v1071_v49 = vpop.permute.xlu1 %1070  ;;  %v1073_v56 = vpop.permute.xlu0 %1072  ;;  %1439 = vmatprep.mubr.bf16.mxu1 %v7309_v43 }
 0x358   :  { %v1167_v23 = vmul.f32 %v1071_v49, %v239_v59  ;;  %v1168_v28 = vmul.f32 %v1073_v56, %v240_v31  ;;  %v243_v31 = vld [vmem:[#allocation6 + $0xa8] sm:$0xff]  ;;  %v244_v49 = vld [vmem:[#allocation6 + $0xb0] sm:$0xff] }
 0x35a   :  { %v1205_v32 = vadd.f32 %v1167_v23, %v5250_v38  ;;  %v1206_v18 = vadd.f32 %v1168_v28, %v5258_v46 }
 0x35b   :  { %v5500_v2 = vpop.permute.xlu1 %3111  ;;  %v5502_v41 = vpop.permute.xlu0 %3113 }
 0x35c   :  { %7322 = vst [vmem:[#allocation51_spill] sm:$0xff] %v5500_v2  ;;  %7323 = vst [vmem:[#allocation52_spill] sm:$0xff] %v5502_v41  ;;  %v1234_v63 = vpack.c.bf16 %v1205_v32, %v1204_v55  ;;  %3253 = vrot.lane.b32.xlu0 %v1205_v32, %s4735_s18  ;;  %3255 = vrot.lane.b32.xlu1 %v1206_v18, %s4735_s18 }
 0x35e   :  { %3755 = vmatmul.mubr.msk.bf16.gmra.mrb[108].mxu1 %vm1269_vm3, %v1234_v63 }
 0x35f   :  { %v1075_v60 = vpop.permute.xlu1 %1074  ;;  %v1077_v8 = vpop.permute.xlu0 %1076  ;;  %1449 = vmatprep.mubr.bf16.mxu1 %v7309_v43 }
 0x360   :  { %v1169_v38 = vmul.f32 %v1075_v60, %v241_v37  ;;  %v1170_v5 = vmul.f32 %v1077_v8, %v242_v42  ;;  %v245_v42 = vld [vmem:[#allocation6 + $0xb8] sm:$0xff]  ;;  %v246_v60 = vld [vmem:[#allocation6 + $0xc0] sm:$0xff] }
 0x361   :  { %v4130_v8 = vld [vmem:[#allocation17] sm:$0xff]  }
 0x362   :  { %v1207_v46 = vadd.f32 %v1169_v38, %v5264_v52  ;;  %v1208_v17 = vadd.f32 %v1170_v5, %v5272_v62  ;;  %4020 = vmatpush3.bf16.msra.mxu0 %v4130_v8 }
 0x363   :  { %v5510_v30 = vpop.permute.xlu1 %3115  ;;  %v5512_v55 = vpop.permute.xlu0 %3117 }
 0x364   :  { %7324 = vst [vmem:[#allocation53_spill] sm:$0xff] %v5510_v30  ;;  %7325 = vst [vmem:[#allocation54_spill] sm:$0xff] %v5512_v55  ;;  %v1235_v59 = vpack.c.bf16 %v1207_v46, %v1206_v18  ;;  %3257 = vrot.lane.b32.xlu0 %v1207_v46, %s4735_s18  ;;  %3259 = vrot.lane.b32.xlu1 %v1208_v17, %s4735_s18  ;;  %v7328_v46 = vmov 0.0  }
 0x365   :  { %4021 = vmatprep.subr.bf16.mxu0 %v7328_v46 }
 0x366   :  { %3756 = vmatmul.mubr.msk.bf16.gmra.mrb[112].mxu1 %vm1269_vm3, %v1235_v59 }
 0x367   :  { %v1079_v56 = vpop.permute.xlu1 %1078  ;;  %v1081_v23 = vpop.permute.xlu0 %1080  ;;  %1459 = vmatprep.mubr.bf16.mxu1 %v7309_v43 }
 0x368   :  { %v1171_v52 = vmul.f32 %v1079_v56, %v243_v31  ;;  %v1172_v28 = vmul.f32 %v1081_v23, %v244_v49  ;;  %v4131_v31 = vld [vmem:[#allocation17 + $0x8] sm:$0xff]  }
 0x369   :  { %4022 = vmatpush3.bf16.msra.mxu0 %v4131_v31 }
 0x36a   :  { %v1209_v62 = vadd.f32 %v1171_v52, %v5278_v9  ;;  %v1210_v32 = vadd.f32 %v1172_v28, %v5286_v20  ;;  %v247_v52 = vld [vmem:[#allocation6 + $0xc8] sm:$0xff]  ;;  %v248_v28 = vld [vmem:[#allocation6 + $0xd0] sm:$0xff] }
 0x36b   :  { %v5520_v63 = vpop.permute.xlu1 %3119  ;;  %v5522_v18 = vpop.permute.xlu0 %3121 }
 0x36c   :  { %7326 = vst [vmem:[#allocation55_spill] sm:$0xff] %v5520_v63  ;;  %7327 = vst [vmem:[#allocation56_spill] sm:$0xff] %v5522_v18  ;;  %v1236_v37 = vpack.c.bf16 %v1209_v62, %v1208_v17  ;;  %3261 = vrot.lane.b32.xlu0 %v1209_v62, %s4735_s18  ;;  %3263 = vrot.lane.b32.xlu1 %v1210_v32, %s4735_s18 }
 0x36e   :  { %3757 = vmatmul.mubr.msk.bf16.gmra.mrb[116].mxu1 %vm1269_vm3, %v1236_v37 }
 0x36f   :  { %v1083_v38 = vpop.permute.xlu1 %1082  ;;  %v1085_v5 = vpop.permute.xlu0 %1084  ;;  %1469 = vmatprep.mubr.bf16.mxu1 %v7309_v43 }
 0x370   :  { %v1173_v9 = vmul.f32 %v1083_v38, %v245_v42  ;;  %v1174_v20 = vmul.f32 %v1085_v5, %v246_v60  ;;  %v249_v5 = vld [vmem:[#allocation6 + $0xd8] sm:$0xff] }
 0x372   :  { %v1211_v17 = vadd.f32 %v1173_v9, %v5292_v27  ;;  %v1212_v59 = vadd.f32 %v1174_v20, %v5300_v36  ;;  %v250_v9 = vld [vmem:[#allocation6 + $0xe0] sm:$0xff] }
 0x373   :  { %v5531_v49 = vpop.permute.xlu1 %3123  ;;  %v5533_v56 = vpop.permute.xlu0 %3125 }
 0x374   :  { %7329 = vst [vmem:[#allocation57_spill] sm:$0xff] %v5531_v49  ;;  %7330 = vst [vmem:[#allocation58_spill] sm:$0xff] %v5533_v56  ;;  %v1237_v23 = vpack.c.bf16 %v1211_v17, %v1210_v32  ;;  %3265 = vrot.lane.b32.xlu0 %v1211_v17, %s4735_s18  ;;  %3267 = vrot.lane.b32.xlu1 %v1212_v59, %s4735_s18 }
 0x376   :  { %3758 = vmatmul.mubr.msk.bf16.gmra.mrb[120].mxu1 %vm1269_vm3, %v1237_v23 }
 0x377   :  { %v1087_v62 = vpop.permute.xlu1 %1086  ;;  %v1089_v37 = vpop.permute.xlu0 %1088  ;;  %1479 = vmatprep.mubr.bf16.mxu1 %v7309_v43 }
 0x378   :  { %v1175_v27 = vmul.f32 %v1087_v62, %v247_v52  ;;  %v1176_v36 = vmul.f32 %v1089_v37, %v248_v28  ;;  %v251_v62 = vld [vmem:[#allocation6 + $0xe8] sm:$0xff]  ;;  %v252_v37 = vld [vmem:[#allocation6 + $0xf0] sm:$0xff] }
 0x37a   :  { %v1213_v42 = vadd.f32 %v1175_v27, %v5306_v44  ;;  %v1214_v60 = vadd.f32 %v1176_v36, %v5314_v57 }
 0x37b   :  { %v5541_v32 = vpop.permute.xlu1 %3127  ;;  %v5543_v8 = vpop.permute.xlu0 %3129 }
 0x37c   :  { %7331 = vst [vmem:[#allocation59_spill] sm:$0xff] %v5541_v32  ;;  %7332 = vst [vmem:[#allocation60_spill] sm:$0xff] %v5543_v8  ;;  %v1238_v38 = vpack.c.bf16 %v1213_v42, %v1212_v59  ;;  %3269 = vrot.lane.b32.xlu0 %v1213_v42, %s4735_s18  ;;  %3271 = vrot.lane.b32.xlu1 %v1214_v60, %s4735_s18 }
 0x37e   :  { %3759 = vmatmul.mubr.msk.bf16.gmra.mrb[124].mxu1 %vm1269_vm3, %v1238_v38 }
 0x37f   :  { %v1091_v20 = vpop.permute.xlu1 %1090  ;;  %v1093_v17 = vpop.permute.xlu0 %1092  ;;  %1489 = vmatprep.mubr.bf16.mxu1 %v7309_v43 }
 0x380   :  { %v1177_v44 = vmul.f32 %v1091_v20, %v249_v5  ;;  %v1178_v31 = vmul.f32 %v1093_v17, %v250_v9 }
 0x382   :  { %v1215_v57 = vadd.f32 %v1177_v44, %v5320_v3  ;;  %v1216_v23 = vadd.f32 %v1178_v31, %v5328_v15  ;;  %v254_v44 = vld [vmem:[#allocation6 + $0x100] sm:$0xff] }
 0x383   :  { %v5551_v52 = vpop.permute.xlu1 %3131  ;;  %v5553_v59 = vpop.permute.xlu0 %3133 }
 0x384   :  { %7333 = vst [vmem:[#allocation61_spill] sm:$0xff] %v5551_v52  ;;  %7334 = vst [vmem:[#allocation62_spill] sm:$0xff] %v5553_v59  ;;  %v1239_v28 = vpack.c.bf16 %v1215_v57, %v1214_v60  ;;  %3273 = vrot.lane.b32.xlu0 %v1215_v57, %s4735_s18  ;;  %3275 = vrot.lane.b32.xlu1 %v1216_v23, %s4735_s18 }
 0x386   :  { %3760 = vmatmul.mubr.msk.bf16.gmra.mrb[128].mxu1 %vm1269_vm3, %v1239_v28 }
 0x387   :  { %v1095_v27 = vpop.permute.xlu1 %1094  ;;  %v1097_v36 = vpop.permute.xlu0 %1096  ;;  %1499 = vmatprep.mubr.bf16.mxu1 %v7309_v43 }
 0x388   :  { %v1179_v3 = vmul.f32 %v1095_v27, %v251_v62  ;;  %v1180_v42 = vmul.f32 %v1097_v36, %v252_v37 }
 0x38a   :  { %v1217_v15 = vadd.f32 %v1179_v3, %v5334_v24  ;;  %v1218_v38 = vadd.f32 %v1180_v42, %v5344_v39  ;;  %v253_v24 = vld [vmem:[#allocation6 + $0xf8] sm:$0xff] }
 0x38b   :  { %v5561_v5 = vpop.permute.xlu1 %3219  ;;  %v5563_v60 = vpop.permute.xlu0 %3221 }
 0x38c   :  { %7335 = vst [vmem:[#allocation63_spill] sm:$0xff] %v5561_v5  ;;  %7336 = vst [vmem:[#allocation64_spill] sm:$0xff] %v5563_v60  ;;  %v1240_v9 = vpack.c.bf16 %v1217_v15, %v1216_v23  ;;  %3277 = vrot.lane.b32.xlu0 %v1217_v15, %s4735_s18  ;;  %3279 = vrot.lane.b32.xlu1 %v1218_v38, %s4735_s18  ;;  %v256_v15 = vld [vmem:[#allocation6 + $0x110] sm:$0xff] }
 0x38e   :  { %3761 = vmatmul.mubr.msk.bf16.gmra.mrb[132].mxu1 %vm1269_vm3, %v1240_v9 }
 0x38f   :  { %v5568_v20 = vpop.permute.xlu1 %3135  ;;  %v5570_v17 = vpop.permute.xlu0 %3137  ;;  %1509 = vmatprep.mubr.bf16.mxu1 %v7309_v43 }
 0x390   :  { %7337 = vst [vmem:[#allocation65_spill] sm:$0xff] %v5568_v20  ;;  %7338 = vst [vmem:[#allocation66_spill] sm:$0xff] %v5570_v17 }
 0x393   :  { %v1099_v39 = vpop.permute.xlu1 %1098  ;;  %v1101_v31 = vpop.permute.xlu0 %1100 }
 0x394   :  { %v1181_v57 = vmul.f32 %v1099_v39, %v253_v24  ;;  %v1182_v28 = vmul.f32 %v1101_v31, %v254_v44 }
 0x396   :  { %v1219_v23 = vadd.f32 %v1181_v57, %v5352_v48  ;;  %v1220_v62 = vadd.f32 %v1182_v28, %v5363_v4  ;;  %v255_v48 = vld [vmem:[#allocation6 + $0x108] sm:$0xff] }
 0x397   :  { %v5575_v37 = vpop.permute.xlu1 %3223  ;;  %v5577_v27 = vpop.permute.xlu0 %3225 }
 0x398   :  { %7339 = vst [vmem:[#allocation67_spill] sm:$0xff] %v5575_v37  ;;  %7340 = vst [vmem:[#allocation68_spill] sm:$0xff] %v5577_v27  ;;  %v1241_v36 = vpack.c.bf16 %v1219_v23, %v1218_v38  ;;  %3281 = vrot.lane.b32.xlu0 %v1219_v23, %s4735_s18  ;;  %3283 = vrot.lane.b32.xlu1 %v1220_v62, %s4735_s18  ;;  %v257_v23 = vld [vmem:[#allocation6 + $0x118] sm:$0xff] }
 0x39a   :  { %3762 = vmatmul.mubr.msk.bf16.gmra.mrb[136].mxu1 %vm1269_vm3, %v1241_v36  ;;  %v258_v36 = vld [vmem:[#allocation6 + $0x120] sm:$0xff] }
 0x39b   :  { %v5582_v3 = vpop.permute.xlu1 %3139  ;;  %v5584_v42 = vpop.permute.xlu0 %3141  ;;  %1519 = vmatprep.mubr.bf16.mxu1 %v7309_v43 }
 0x39c   :  { %7341 = vst [vmem:[#allocation69_spill] sm:$0xff] %v5582_v3  ;;  %7342 = vst [vmem:[#allocation70_spill] sm:$0xff] %v5584_v42 }
 0x39f   :  { %v1103_v4 = vpop.permute.xlu1 %1102  ;;  %v1105_v9 = vpop.permute.xlu0 %1104 }
 0x3a0   :  { %v1183_v24 = vmul.f32 %v1103_v4, %v255_v48  ;;  %v1184_v44 = vmul.f32 %v1105_v9, %v256_v15 }
 0x3a2   :  { %v1221_v38 = vadd.f32 %v1183_v24, %v5372_v16  ;;  %v1222_v39 = vadd.f32 %v1184_v44, %v5381_v50  ;;  %v259_v24 = vld [vmem:[#allocation6 + $0x128] sm:$0xff] }
 0x3a3   :  { %v5589_v31 = vpop.permute.xlu1 %3227  ;;  %v5591_v57 = vpop.permute.xlu0 %3229 }
 0x3a4   :  { %7343 = vst [vmem:[#allocation71_spill] sm:$0xff] %v5589_v31  ;;  %7344 = vst [vmem:[#allocation72_spill] sm:$0xff] %v5591_v57  ;;  %v1242_v28 = vpack.c.bf16 %v1221_v38, %v1220_v62  ;;  %3285 = vrot.lane.b32.xlu0 %v1221_v38, %s4735_s18  ;;  %3287 = vrot.lane.b32.xlu1 %v1222_v39, %s4735_s18 }
 0x3a6   :  { %3763 = vmatmul.mubr.msk.bf16.gmra.mrb[140].mxu1 %vm1269_vm3, %v1242_v28 }
 0x3a7   :  { %v1107_v3 = vpop.permute.xlu1 %1106  ;;  %v1109_v48 = vpop.permute.xlu0 %1108  ;;  %1529 = vmatprep.mubr.bf16.mxu1 %v7309_v43 }
 0x3a8   :  { %v1185_v16 = vmul.f32 %v1107_v3, %v257_v23  ;;  %v1186_v15 = vmul.f32 %v1109_v48, %v258_v36  ;;  %v1247_v23 = vld [vmem:[#allocation15] sm:$0x3] }
 0x3aa   :  { %v1223_v50 = vadd.f32 %v1185_v16, %v5393_v21  ;;  %v1224_v4 = vadd.f32 %v1186_v15, %v5407_v35  ;;  %v1249_v21 = vlaneseq }
 0x3ab   :  { %v5599_v9 = vpop.permute.xlu1 %3231 }
 0x3ac   :  { %7345 = vst [vmem:[#allocation73_spill] sm:$0xff] %v5599_v9  ;;  %v1243_v62 = vpack.c.bf16 %v1223_v50, %v1222_v39  ;;  %3289 = vrot.lane.b32.xlu0 %v1223_v50, %s4735_s18  ;;  %3291 = vrot.lane.b32.xlu1 %v1224_v4, %s4735_s18  ;;  %v1250_v35 = vshrl.u32 %v1249_v21, 7 }
 0x3ae   :  { %3764 = vmatmul.mubr.msk.bf16.gmra.mrb[144].mxu1 %vm1269_vm3, %v1243_v62  ;;  %v1251_v39 = vsub.s32 0, %v1250_v35  ;;  %v1255_v36 = vsub.s32 1, %v1250_v35 }
 0x3af   :  { %v1111_v44 = vpop.permute.xlu1 %1110  ;;  %1539 = vmatprep.mubr.bf16.mxu1 %v7309_v43 }
 0x3b0   :  { %v1187_v38 = vmul.f32 %v1111_v44, %v259_v24  ;;  %v5608_v48 = vrot.slane %v1247_v23, %v1251_v39  ;;  %v5610_v16 = vrot.slane %v1247_v23, %v1255_v36 }
 0x3b2   :  { %v1225_v3 = vadd.f32 %v1187_v38, %v5422_v1 }
 0x3b4   :  { %v1244_v28 = vpack.c.bf16 %v1225_v3, %v1224_v4  ;;  %3293 = vrot.lane.b32.xlu0 %v1225_v3, %s4735_s18 }
 0x3b6   :  { %3765 = vmatmul.mubr.msk.bf16.gmra.mrb[148].mxu1 %vm1269_vm3, %v1244_v28 }
 0x3ed   :  { %v1361_v15 = vpop.f32.mrb[76].mxu1 }
 0x3ee   :  { %v1362_v43 = vadd.f32 %v1361_v15, %v5608_v48  ;;  %v1363_v50 = vpop.f32.mrb[77].mxu1 }
 0x3ef   :  { %v1364_v1 = vadd.f32 %v1363_v50, %v5610_v16  ;;  %v1365_v4 = vpop.f32.mrb[78].mxu1 }
 0x3f0   :  { %v1550_v62 = vmax.f32 %v1362_v43, 0.0  ;;  %v1366_v24 = vadd.f32 %v1365_v4, %v5608_v48  ;;  %v1367_v44 = vpop.f32.mrb[79].mxu1 }
 0x3f1   :  { %v1551_v3 = vmax.f32 %v1364_v1, 0.0  ;;  %v1368_v28 = vadd.f32 %v1367_v44, %v5610_v16 }
 0x3f2   :  { %v1635_v38 = vmul.f32 %v5336_v29, %v1550_v62  ;;  %v1552_v21 = vmax.f32 %v1366_v24, 0.0 }
 0x3f3   :  { %v1636_v35 = vmul.f32 %v5336_v29, %v1551_v3  ;;  %v1553_v39 = vmax.f32 %v1368_v28, 0.0 }
 0x3f4   :  { %1787 = vrot.lane.b32.xlu1 %v1635_v38, %s4735_s18  ;;  %v2289_v23 = vpack.c.bf16 %v1552_v21, %v1550_v62  ;;  %v1637_v36 = vmul.f32 %v5336_v29, %v1552_v21 }
 0x3f5   :  { %1789 = vrot.lane.b32.xlu0 %v1636_v35, %s4735_s18  ;;  %v1638_v15 = vmul.f32 %v5336_v29, %v1553_v39 }
 0x3f6   :  { %4024 = vmatmul.mubr.msk.bf16.vlgmr.msra.gmra.mrb[76].mxu0 %vm641_vm2, %v2289_v23 }
 0x3f7   :  { %4027 = vmatprep.mubr.msk.bf16.mxu0 %vm4731_vm0, %v7328_v46 }
 0x3f8   :  { %1791 = vrot.lane.b32.xlu1 %v1637_v36, %s4735_s18 }
 0x3f9   :  { %v1371_v43 = vpop.f32.mrb[80].mxu1  ;;  %1793 = vrot.lane.b32.xlu0 %v1638_v15, %s4735_s18 }
 0x3fa   :  { %v1372_v50 = vadd.f32 %v1371_v43, %v5608_v48  ;;  %v1373_v1 = vpop.f32.mrb[81].mxu1 }
 0x3fb   :  { %v1374_v62 = vadd.f32 %v1373_v1, %v5610_v16  ;;  %v1375_v4 = vpop.f32.mrb[82].mxu1 }
 0x3fc   :  { %v1554_v24 = vmax.f32 %v1372_v50, 0.0  ;;  %v1376_v44 = vadd.f32 %v1375_v4, %v5608_v48  ;;  %v1377_v38 = vpop.f32.mrb[83].mxu1 }
 0x3fd   :  { %v1555_v3 = vmax.f32 %v1374_v62, 0.0  ;;  %v1378_v28 = vadd.f32 %v1377_v38, %v5610_v16 }
 0x3fe   :  { %v1639_v21 = vmul.f32 %v5336_v29, %v1554_v24  ;;  %v1556_v35 = vmax.f32 %v1376_v44, 0.0 }
 0x3ff   :  { %v1640_v39 = vmul.f32 %v5336_v29, %v1555_v3  ;;  %v1557_v23 = vmax.f32 %v1378_v28, 0.0 }
 0x400   :  { %v2290_v36 = vpack.c.bf16 %v1556_v35, %v1554_v24  ;;  %1795 = vrot.lane.b32.xlu1 %v1639_v21, %s4735_s18  ;;  %v1641_v43 = vmul.f32 %v5336_v29, %v1556_v35 }
 0x401   :  { %v1381_v15 = vpop.f32.mrb[84].mxu1  ;;  %1797 = vrot.lane.b32.xlu0 %v1640_v39, %s4735_s18  ;;  %v1642_v62 = vmul.f32 %v5336_v29, %v1557_v23 }
 0x402   :  { %v1382_v50 = vadd.f32 %v1381_v15, %v5608_v48  ;;  %v1383_v1 = vpop.f32.mrb[85].mxu1  ;;  %4028 = vmatmul.mubr.msk.bf16.gmra.mrb[80].mxu0 %vm641_vm2, %v2290_v36 }
 0x403   :  { %v1384_v4 = vadd.f32 %v1383_v1, %v5610_v16  ;;  %v1385_v44 = vpop.f32.mrb[86].mxu1  ;;  %4031 = vmatprep.mubr.msk.bf16.mxu0 %vm4731_vm0, %v7328_v46 }
 0x404   :  { %v1558_v24 = vmax.f32 %v1382_v50, 0.0  ;;  %v1386_v38 = vadd.f32 %v1385_v44, %v5608_v48  ;;  %v1387_v3 = vpop.f32.mrb[87].mxu1  ;;  %1799 = vrot.lane.b32.xlu1 %v1641_v43, %s4735_s18 }
 0x405   :  { %v1559_v28 = vmax.f32 %v1384_v4, 0.0  ;;  %v1388_v21 = vadd.f32 %v1387_v3, %v5610_v16  ;;  %1801 = vrot.lane.b32.xlu0 %v1642_v62, %s4735_s18 }
 0x406   :  { %v1643_v35 = vmul.f32 %v5336_v29, %v1558_v24  ;;  %v1560_v39 = vmax.f32 %v1386_v38, 0.0 }
 0x407   :  { %v1644_v23 = vmul.f32 %v5336_v29, %v1559_v28  ;;  %v1561_v36 = vmax.f32 %v1388_v21, 0.0 }
 0x408   :  { %v2291_v15 = vpack.c.bf16 %v1560_v39, %v1558_v24  ;;  %1803 = vrot.lane.b32.xlu1 %v1643_v35, %s4735_s18  ;;  %v1645_v1 = vmul.f32 %v5336_v29, %v1560_v39 }
 0x409   :  { %v1391_v50 = vpop.f32.mrb[88].mxu1  ;;  %1805 = vrot.lane.b32.xlu0 %v1644_v23, %s4735_s18  ;;  %v1646_v62 = vmul.f32 %v5336_v29, %v1561_v36 }
 0x40a   :  { %v1392_v43 = vadd.f32 %v1391_v50, %v5608_v48  ;;  %4032 = vmatmul.mubr.msk.bf16.gmra.mrb[84].mxu0 %vm641_vm2, %v2291_v15  ;;  %v1393_v4 = vpop.f32.mrb[89].mxu1 }
 0x40b   :  { %4035 = vmatprep.mubr.msk.bf16.mxu0 %vm4731_vm0, %v7328_v46  ;;  %v1394_v24 = vadd.f32 %v1393_v4, %v5610_v16  ;;  %v1395_v38 = vpop.f32.mrb[90].mxu1 }
 0x40c   :  { %v1562_v44 = vmax.f32 %v1392_v43, 0.0  ;;  %1807 = vrot.lane.b32.xlu1 %v1645_v1, %s4735_s18  ;;  %v1396_v3 = vadd.f32 %v1395_v38, %v5608_v48  ;;  %v1397_v28 = vpop.f32.mrb[91].mxu1 }
 0x40d   :  { %1809 = vrot.lane.b32.xlu0 %v1646_v62, %s4735_s18  ;;  %v1563_v35 = vmax.f32 %v1394_v24, 0.0  ;;  %v1398_v39 = vadd.f32 %v1397_v28, %v5610_v16 }
 0x40e   :  { %v1647_v21 = vmul.f32 %v5336_v29, %v1562_v44  ;;  %v1564_v23 = vmax.f32 %v1396_v3, 0.0 }
 0x40f   :  { %v1648_v36 = vmul.f32 %v5336_v29, %v1563_v35  ;;  %v1565_v15 = vmax.f32 %v1398_v39, 0.0 }
 0x410   :  { %1811 = vrot.lane.b32.xlu1 %v1647_v21, %s4735_s18  ;;  %v2292_v50 = vpack.c.bf16 %v1564_v23, %v1562_v44  ;;  %v1649_v1 = vmul.f32 %v5336_v29, %v1564_v23 }
 0x411   :  { %v1401_v43 = vpop.f32.mrb[92].mxu1  ;;  %1813 = vrot.lane.b32.xlu0 %v1648_v36, %s4735_s18  ;;  %v1650_v3 = vmul.f32 %v5336_v29, %v1565_v15 }
 0x412   :  { %v1402_v4 = vadd.f32 %v1401_v43, %v5608_v48  ;;  %v1403_v62 = vpop.f32.mrb[93].mxu1  ;;  %4036 = vmatmul.mubr.msk.bf16.gmra.mrb[88].mxu0 %vm641_vm2, %v2292_v50 }
 0x413   :  { %v1404_v38 = vadd.f32 %v1403_v62, %v5610_v16  ;;  %v1405_v24 = vpop.f32.mrb[94].mxu1  ;;  %4039 = vmatprep.mubr.msk.bf16.mxu0 %vm4731_vm0, %v7328_v46 }
 0x414   :  { %v1566_v28 = vmax.f32 %v1402_v4, 0.0  ;;  %v1406_v35 = vadd.f32 %v1405_v24, %v5608_v48  ;;  %v1407_v21 = vpop.f32.mrb[95].mxu1  ;;  %1815 = vrot.lane.b32.xlu1 %v1649_v1, %s4735_s18 }
 0x415   :  { %v1567_v44 = vmax.f32 %v1404_v38, 0.0  ;;  %v1408_v39 = vadd.f32 %v1407_v21, %v5610_v16  ;;  %1817 = vrot.lane.b32.xlu0 %v1650_v3, %s4735_s18 }
 0x416   :  { %v1651_v23 = vmul.f32 %v5336_v29, %v1566_v28  ;;  %v1568_v36 = vmax.f32 %v1406_v35, 0.0 }
 0x417   :  { %v1652_v50 = vmul.f32 %v5336_v29, %v1567_v44  ;;  %v1569_v43 = vmax.f32 %v1408_v39, 0.0 }
 0x418   :  { %v2293_v15 = vpack.c.bf16 %v1568_v36, %v1566_v28  ;;  %1819 = vrot.lane.b32.xlu1 %v1651_v23, %s4735_s18  ;;  %v1653_v1 = vmul.f32 %v5336_v29, %v1568_v36 }
 0x419   :  { %v1411_v4 = vpop.f32.mrb[96].mxu1  ;;  %1821 = vrot.lane.b32.xlu0 %v1652_v50, %s4735_s18  ;;  %v1654_v3 = vmul.f32 %v5336_v29, %v1569_v43 }
 0x41a   :  { %v1412_v62 = vadd.f32 %v1411_v4, %v5608_v48  ;;  %v1413_v38 = vpop.f32.mrb[97].mxu1  ;;  %4040 = vmatmul.mubr.msk.bf16.gmra.mrb[92].mxu0 %vm641_vm2, %v2293_v15 }
 0x41b   :  { %v1414_v24 = vadd.f32 %v1413_v38, %v5610_v16  ;;  %v1415_v35 = vpop.f32.mrb[98].mxu1  ;;  %4043 = vmatprep.mubr.msk.bf16.mxu0 %vm4731_vm0, %v7328_v46 }
 0x41c   :  { %v1570_v21 = vmax.f32 %v1412_v62, 0.0  ;;  %v1416_v28 = vadd.f32 %v1415_v35, %v5608_v48  ;;  %v1417_v44 = vpop.f32.mrb[99].mxu1  ;;  %1823 = vrot.lane.b32.xlu1 %v1653_v1, %s4735_s18 }
 0x41d   :  { %v1571_v39 = vmax.f32 %v1414_v24, 0.0  ;;  %v1418_v23 = vadd.f32 %v1417_v44, %v5610_v16  ;;  %1825 = vrot.lane.b32.xlu0 %v1654_v3, %s4735_s18 }
 0x41e   :  { %v1655_v36 = vmul.f32 %v5336_v29, %v1570_v21  ;;  %v1572_v50 = vmax.f32 %v1416_v28, 0.0 }
 0x41f   :  { %v1656_v15 = vmul.f32 %v5336_v29, %v1571_v39  ;;  %v1573_v4 = vmax.f32 %v1418_v23, 0.0 }
 0x420   :  { %v2294_v43 = vpack.c.bf16 %v1572_v50, %v1570_v21  ;;  %1827 = vrot.lane.b32.xlu1 %v1655_v36, %s4735_s18  ;;  %v1657_v1 = vmul.f32 %v5336_v29, %v1572_v50 }
 0x421   :  { %v1421_v62 = vpop.f32.mrb[100].mxu1  ;;  %1829 = vrot.lane.b32.xlu0 %v1656_v15, %s4735_s18  ;;  %v1658_v3 = vmul.f32 %v5336_v29, %v1573_v4 }
 0x422   :  { %v1422_v38 = vadd.f32 %v1421_v62, %v5608_v48  ;;  %v1423_v24 = vpop.f32.mrb[101].mxu1  ;;  %4044 = vmatmul.mubr.msk.bf16.gmra.mrb[96].mxu0 %vm641_vm2, %v2294_v43 }
 0x423   :  { %v1424_v35 = vadd.f32 %v1423_v24, %v5610_v16  ;;  %v1425_v28 = vpop.f32.mrb[102].mxu1  ;;  %4047 = vmatprep.mubr.msk.bf16.mxu0 %vm4731_vm0, %v7328_v46 }
 0x424   :  { %v1574_v44 = vmax.f32 %v1422_v38, 0.0  ;;  %v1426_v21 = vadd.f32 %v1425_v28, %v5608_v48  ;;  %v1427_v39 = vpop.f32.mrb[103].mxu1  ;;  %1831 = vrot.lane.b32.xlu1 %v1657_v1, %s4735_s18 }
 0x425   :  { %v1575_v23 = vmax.f32 %v1424_v35, 0.0  ;;  %v1428_v36 = vadd.f32 %v1427_v39, %v5610_v16  ;;  %1833 = vrot.lane.b32.xlu0 %v1658_v3, %s4735_s18 }
 0x426   :  { %v1659_v50 = vmul.f32 %v5336_v29, %v1574_v44  ;;  %v1576_v15 = vmax.f32 %v1426_v21, 0.0 }
 0x427   :  { %v1660_v43 = vmul.f32 %v5336_v29, %v1575_v23  ;;  %v1577_v62 = vmax.f32 %v1428_v36, 0.0 }
 0x428   :  { %v2295_v4 = vpack.c.bf16 %v1576_v15, %v1574_v44  ;;  %1835 = vrot.lane.b32.xlu1 %v1659_v50, %s4735_s18  ;;  %v1661_v1 = vmul.f32 %v5336_v29, %v1576_v15 }
 0x429   :  { %v1431_v38 = vpop.f32.mrb[104].mxu1  ;;  %1837 = vrot.lane.b32.xlu0 %v1660_v43, %s4735_s18  ;;  %v1662_v3 = vmul.f32 %v5336_v29, %v1577_v62 }
 0x42a   :  { %v1432_v24 = vadd.f32 %v1431_v38, %v5608_v48  ;;  %v1433_v35 = vpop.f32.mrb[105].mxu1  ;;  %4048 = vmatmul.mubr.msk.bf16.gmra.mrb[100].mxu0 %vm641_vm2, %v2295_v4 }
 0x42b   :  { %v1434_v28 = vadd.f32 %v1433_v35, %v5610_v16  ;;  %v1435_v21 = vpop.f32.mrb[106].mxu1  ;;  %4051 = vmatprep.mubr.msk.bf16.mxu0 %vm4731_vm0, %v7328_v46 }
 0x42c   :  { %v1578_v39 = vmax.f32 %v1432_v24, 0.0  ;;  %v1436_v44 = vadd.f32 %v1435_v21, %v5608_v48  ;;  %v1437_v23 = vpop.f32.mrb[107].mxu1  ;;  %1839 = vrot.lane.b32.xlu1 %v1661_v1, %s4735_s18 }
 0x42d   :  { %v1579_v36 = vmax.f32 %v1434_v28, 0.0  ;;  %v1438_v50 = vadd.f32 %v1437_v23, %v5610_v16  ;;  %1841 = vrot.lane.b32.xlu0 %v1662_v3, %s4735_s18 }
 0x42e   :  { %v1663_v15 = vmul.f32 %v5336_v29, %v1578_v39  ;;  %v1580_v43 = vmax.f32 %v1436_v44, 0.0 }
 0x42f   :  { %v1664_v4 = vmul.f32 %v5336_v29, %v1579_v36  ;;  %v1581_v38 = vmax.f32 %v1438_v50, 0.0 }
 0x430   :  { %v2296_v62 = vpack.c.bf16 %v1580_v43, %v1578_v39  ;;  %1843 = vrot.lane.b32.xlu1 %v1663_v15, %s4735_s18  ;;  %v1665_v1 = vmul.f32 %v5336_v29, %v1580_v43 }
 0x431   :  { %v1441_v24 = vpop.f32.mrb[108].mxu1  ;;  %1845 = vrot.lane.b32.xlu0 %v1664_v4, %s4735_s18  ;;  %v1666_v3 = vmul.f32 %v5336_v29, %v1581_v38 }
 0x432   :  { %v1442_v35 = vadd.f32 %v1441_v24, %v5608_v48  ;;  %v1443_v28 = vpop.f32.mrb[109].mxu1  ;;  %4052 = vmatmul.mubr.msk.bf16.gmra.mrb[104].mxu0 %vm641_vm2, %v2296_v62 }
 0x433   :  { %v1444_v21 = vadd.f32 %v1443_v28, %v5610_v16  ;;  %v1445_v44 = vpop.f32.mrb[110].mxu1  ;;  %4055 = vmatprep.mubr.msk.bf16.mxu0 %vm4731_vm0, %v7328_v46 }
 0x434   :  { %v1582_v23 = vmax.f32 %v1442_v35, 0.0  ;;  %v1446_v39 = vadd.f32 %v1445_v44, %v5608_v48  ;;  %v1447_v36 = vpop.f32.mrb[111].mxu1  ;;  %1847 = vrot.lane.b32.xlu1 %v1665_v1, %s4735_s18 }
 0x435   :  { %v1583_v50 = vmax.f32 %v1444_v21, 0.0  ;;  %v1448_v15 = vadd.f32 %v1447_v36, %v5610_v16  ;;  %1849 = vrot.lane.b32.xlu0 %v1666_v3, %s4735_s18 }
 0x436   :  { %v1667_v43 = vmul.f32 %v5336_v29, %v1582_v23  ;;  %v1584_v4 = vmax.f32 %v1446_v39, 0.0 }
 0x437   :  { %v1668_v62 = vmul.f32 %v5336_v29, %v1583_v50  ;;  %v1585_v24 = vmax.f32 %v1448_v15, 0.0 }
 0x438   :  { %v2297_v38 = vpack.c.bf16 %v1584_v4, %v1582_v23  ;;  %1851 = vrot.lane.b32.xlu1 %v1667_v43, %s4735_s18  ;;  %v1669_v1 = vmul.f32 %v5336_v29, %v1584_v4 }
 0x439   :  { %v1451_v35 = vpop.f32.mrb[112].mxu1  ;;  %1853 = vrot.lane.b32.xlu0 %v1668_v62, %s4735_s18  ;;  %v1670_v3 = vmul.f32 %v5336_v29, %v1585_v24  ;;  %v5753_v24 = vpop.permute.xlu1 %3235 }
 0x43a   :  { %v1452_v28 = vadd.f32 %v1451_v35, %v5608_v48  ;;  %v1453_v21 = vpop.f32.mrb[113].mxu1  ;;  %4056 = vmatmul.mubr.msk.bf16.gmra.mrb[108].mxu0 %vm641_vm2, %v2297_v38  ;;  %7346 = vst [vmem:[#allocation74_spill] sm:$0xff] %v5753_v24 }
 0x43b   :  { %v1454_v44 = vadd.f32 %v1453_v21, %v5610_v16  ;;  %v1455_v39 = vpop.f32.mrb[114].mxu1  ;;  %4059 = vmatprep.mubr.msk.bf16.mxu0 %vm4731_vm0, %v7328_v46 }
 0x43c   :  { %v1586_v36 = vmax.f32 %v1452_v28, 0.0  ;;  %v1456_v23 = vadd.f32 %v1455_v39, %v5608_v48  ;;  %v1457_v50 = vpop.f32.mrb[115].mxu1  ;;  %1855 = vrot.lane.b32.xlu1 %v1669_v1, %s4735_s18  ;;  %v5756_v1 = vpop.permute.xlu0 %3233 }
 0x43d   :  { %v1587_v15 = vmax.f32 %v1454_v44, 0.0  ;;  %v1458_v43 = vadd.f32 %v1457_v50, %v5610_v16  ;;  %1857 = vrot.lane.b32.xlu0 %v1670_v3, %s4735_s18  ;;  %7347 = vst [vmem:[#allocation75_spill] sm:$0xff] %v5756_v1 }
 0x43e   :  { %v1671_v4 = vmul.f32 %v5336_v29, %v1586_v36  ;;  %v1588_v62 = vmax.f32 %v1456_v23, 0.0 }
 0x43f   :  { %v1672_v38 = vmul.f32 %v5336_v29, %v1587_v15  ;;  %v1589_v28 = vmax.f32 %v1458_v43, 0.0 }
 0x440   :  { %v2298_v35 = vpack.c.bf16 %v1588_v62, %v1586_v36  ;;  %1859 = vrot.lane.b32.xlu1 %v1671_v4, %s4735_s18  ;;  %v1673_v44 = vmul.f32 %v5336_v29, %v1588_v62 }
 0x441   :  { %v1461_v21 = vpop.f32.mrb[116].mxu1  ;;  %1861 = vrot.lane.b32.xlu0 %v1672_v38, %s4735_s18  ;;  %v1674_v36 = vmul.f32 %v5336_v29, %v1589_v28  ;;  %v5773_v28 = vpop.permute.xlu0 %3237 }
 0x442   :  { %v1462_v39 = vadd.f32 %v1461_v21, %v5608_v48  ;;  %v1463_v23 = vpop.f32.mrb[117].mxu1  ;;  %4060 = vmatmul.mubr.msk.bf16.gmra.mrb[112].mxu0 %vm641_vm2, %v2298_v35  ;;  %v5769_v21 = vpop.permute.xlu1 %3239  ;;  %7349 = vst [vmem:[#allocation77_spill] sm:$0xff] %v5773_v28 }
 0x443   :  { %v1464_v3 = vadd.f32 %v1463_v23, %v5610_v16  ;;  %v1465_v50 = vpop.f32.mrb[118].mxu1  ;;  %4063 = vmatprep.mubr.msk.bf16.mxu0 %vm4731_vm0, %v7328_v46  ;;  %7348 = vst [vmem:[#allocation76_spill] sm:$0xff] %v5769_v21 }
 0x444   :  { %v1590_v15 = vmax.f32 %v1462_v39, 0.0  ;;  %v1466_v43 = vadd.f32 %v1465_v50, %v5608_v48  ;;  %v1467_v4 = vpop.f32.mrb[119].mxu1  ;;  %1863 = vrot.lane.b32.xlu1 %v1673_v44, %s4735_s18 }
 0x445   :  { %v1591_v62 = vmax.f32 %v1464_v3, 0.0  ;;  %v1468_v38 = vadd.f32 %v1467_v4, %v5610_v16  ;;  %1865 = vrot.lane.b32.xlu0 %v1674_v36, %s4735_s18  ;;  %v5780_v32 = vpop.permute.xlu0 %3241 }
 0x446   :  { %v1675_v23 = vmul.f32 %v5336_v29, %v1590_v15  ;;  %v1592_v35 = vmax.f32 %v1466_v43, 0.0  ;;  %7350 = vst [vmem:[#allocation78_spill] sm:$0xff] %v5780_v32 }
 0x447   :  { %v1676_v39 = vmul.f32 %v5336_v29, %v1591_v62  ;;  %v1593_v20 = vmax.f32 %v1468_v38, 0.0  ;;  %v5784_v62 = vpop.permute.xlu1 %3243 }
 0x448   :  { %v2299_v50 = vpack.c.bf16 %v1592_v35, %v1590_v15  ;;  %1867 = vrot.lane.b32.xlu1 %v1675_v23, %s4735_s18  ;;  %v1677_v3 = vmul.f32 %v5336_v29, %v1592_v35  ;;  %7351 = vst [vmem:[#allocation79_spill] sm:$0xff] %v5784_v62 }
 0x449   :  { %v1471_v44 = vpop.f32.mrb[120].mxu1  ;;  %1869 = vrot.lane.b32.xlu0 %v1676_v39, %s4735_s18  ;;  %v1678_v15 = vmul.f32 %v5336_v29, %v1593_v20  ;;  %v5794_v42 = vpop.permute.xlu0 %3245 }
 0x44a   :  { %v1472_v4 = vadd.f32 %v1471_v44, %v5608_v48  ;;  %v1473_v52 = vpop.f32.mrb[121].mxu1  ;;  %4064 = vmatmul.mubr.msk.bf16.gmra.mrb[116].mxu0 %vm641_vm2, %v2299_v50  ;;  %7352 = vst [vmem:[#allocation80_spill] sm:$0xff] %v5794_v42 }
 0x44b   :  { %v1474_v36 = vadd.f32 %v1473_v52, %v5610_v16  ;;  %v1475_v43 = vpop.f32.mrb[122].mxu1  ;;  %4067 = vmatprep.mubr.msk.bf16.mxu0 %vm4731_vm0, %v7328_v46  ;;  %v5798_v49 = vpop.permute.xlu1 %3247 }
 0x44c   :  { %v1594_v38 = vmax.f32 %v1472_v4, 0.0  ;;  %v1476_v23 = vadd.f32 %v1475_v43, %v5608_v48  ;;  %v1477_v35 = vpop.f32.mrb[123].mxu1  ;;  %1871 = vrot.lane.b32.xlu1 %v1677_v3, %s4735_s18  ;;  %7353 = vst [vmem:[#allocation81_spill] sm:$0xff] %v5798_v49 }
 0x44d   :  { %v1595_v39 = vmax.f32 %v1474_v36, 0.0  ;;  %v1478_v44 = vadd.f32 %v1477_v35, %v5610_v16  ;;  %1873 = vrot.lane.b32.xlu0 %v1678_v15, %s4735_s18  ;;  %v5803_v63 = vpop.permute.xlu0 %3249 }
 0x44e   :  { %v1679_v52 = vmul.f32 %v5336_v29, %v1594_v38  ;;  %v1596_v50 = vmax.f32 %v1476_v23, 0.0  ;;  %7354 = vst [vmem:[#allocation82_spill] sm:$0xff] %v5803_v63 }
 0x44f   :  { %v1680_v20 = vmul.f32 %v5336_v29, %v1595_v39  ;;  %v1597_v43 = vmax.f32 %v1478_v44, 0.0 }
 0x450   :  { %v2300_v4 = vpack.c.bf16 %v1596_v50, %v1594_v38  ;;  %1875 = vrot.lane.b32.xlu1 %v1679_v52, %s4735_s18  ;;  %v1681_v36 = vmul.f32 %v5336_v29, %v1596_v50 }
 0x451   :  { %v1481_v3 = vpop.f32.mrb[124].mxu1  ;;  %1877 = vrot.lane.b32.xlu0 %v1680_v20, %s4735_s18  ;;  %v1682_v39 = vmul.f32 %v5336_v29, %v1597_v43  ;;  %v5817_v43 = vpop.permute.xlu0 %3253 }
 0x452   :  { %v1482_v35 = vadd.f32 %v1481_v3, %v5608_v48  ;;  %v1483_v23 = vpop.f32.mrb[125].mxu1  ;;  %4068 = vmatmul.mubr.msk.bf16.gmra.mrb[120].mxu0 %vm641_vm2, %v2300_v4  ;;  %v5813_v3 = vpop.permute.xlu1 %3251  ;;  %7356 = vst [vmem:[#allocation84_spill] sm:$0xff] %v5817_v43 }
 0x453   :  { %v1484_v15 = vadd.f32 %v1483_v23, %v5610_v16  ;;  %v1485_v38 = vpop.f32.mrb[126].mxu1  ;;  %4071 = vmatprep.mubr.msk.bf16.mxu0 %vm4731_vm0, %v7328_v46  ;;  %7355 = vst [vmem:[#allocation83_spill] sm:$0xff] %v5813_v3 }
 0x454   :  { %v1598_v44 = vmax.f32 %v1482_v35, 0.0  ;;  %v1486_v52 = vadd.f32 %v1485_v38, %v5608_v48  ;;  %v1487_v30 = vpop.f32.mrb[127].mxu1  ;;  %1879 = vrot.lane.b32.xlu1 %v1681_v36, %s4735_s18 }
 0x455   :  { %v1599_v50 = vmax.f32 %v1484_v15, 0.0  ;;  %v1488_v20 = vadd.f32 %v1487_v30, %v5610_v16  ;;  %1881 = vrot.lane.b32.xlu0 %v1682_v39, %s4735_s18  ;;  %v5826_v51 = vpop.permute.xlu0 %3257 }
 0x456   :  { %v1683_v23 = vmul.f32 %v5336_v29, %v1598_v44  ;;  %v1600_v4 = vmax.f32 %v1486_v52, 0.0  ;;  %v5821_v61 = vpop.permute.xlu1 %3255  ;;  %7358 = vst [vmem:[#allocation86_spill] sm:$0xff] %v5826_v51 }
 0x457   :  { %v1684_v35 = vmul.f32 %v5336_v29, %v1599_v50  ;;  %v1601_v2 = vmax.f32 %v1488_v20, 0.0  ;;  %7357 = vst [vmem:[#allocation85_spill] sm:$0xff] %v5821_v61 }
 0x458   :  { %v2301_v38 = vpack.c.bf16 %v1600_v4, %v1598_v44  ;;  %1883 = vrot.lane.b32.xlu1 %v1683_v23, %s4735_s18  ;;  %v1685_v30 = vmul.f32 %v5336_v29, %v1600_v4 }
 0x459   :  { %v1491_v36 = vpop.f32.mrb[128].mxu1  ;;  %1885 = vrot.lane.b32.xlu0 %v1684_v35, %s4735_s18  ;;  %v1686_v50 = vmul.f32 %v5336_v29, %v1601_v2  ;;  %v5840_v2 = vpop.permute.xlu0 %3261 }
 0x45a   :  { %v1492_v15 = vadd.f32 %v1491_v36, %v5608_v48  ;;  %v1493_v52 = vpop.f32.mrb[129].mxu1  ;;  %4072 = vmatmul.mubr.msk.bf16.gmra.mrb[124].mxu0 %vm641_vm2, %v2301_v38  ;;  %v5836_v36 = vpop.permute.xlu1 %3259  ;;  %7360 = vst [vmem:[#allocation88_spill] sm:$0xff] %v5840_v2 }
 0x45b   :  { %v1494_v39 = vadd.f32 %v1493_v52, %v5610_v16  ;;  %v1495_v44 = vpop.f32.mrb[130].mxu1  ;;  %4075 = vmatprep.mubr.msk.bf16.mxu0 %vm4731_vm0, %v7328_v46  ;;  %7359 = vst [vmem:[#allocation87_spill] sm:$0xff] %v5836_v36 }
 0x45c   :  { %v1602_v20 = vmax.f32 %v1492_v15, 0.0  ;;  %v1496_v23 = vadd.f32 %v1495_v44, %v5608_v48  ;;  %v1497_v61 = vpop.f32.mrb[131].mxu1  ;;  %1887 = vrot.lane.b32.xlu1 %v1685_v30, %s4735_s18 }
 0x45d   :  { %v1603_v4 = vmax.f32 %v1494_v39, 0.0  ;;  %v1498_v35 = vadd.f32 %v1497_v61, %v5610_v16  ;;  %1889 = vrot.lane.b32.xlu0 %v1686_v50, %s4735_s18  ;;  %v5849_v36 = vpop.permute.xlu0 %3265 }
 0x45e   :  { %v1687_v52 = vmul.f32 %v5336_v29, %v1602_v20  ;;  %v1604_v38 = vmax.f32 %v1496_v23, 0.0  ;;  %v5844_v7 = vpop.permute.xlu1 %3263  ;;  %7362 = vst [vmem:[#allocation90_spill] sm:$0xff] %v5849_v36 }
 0x45f   :  { %v1688_v15 = vmul.f32 %v5336_v29, %v1603_v4  ;;  %v1605_v3 = vmax.f32 %v1498_v35, 0.0  ;;  %7361 = vst [vmem:[#allocation89_spill] sm:$0xff] %v5844_v7 }
 0x460   :  { %v2302_v44 = vpack.c.bf16 %v1604_v38, %v1602_v20  ;;  %1891 = vrot.lane.b32.xlu1 %v1687_v52, %s4735_s18  ;;  %v1689_v61 = vmul.f32 %v5336_v29, %v1604_v38 }
 0x461   :  { %v1501_v30 = vpop.f32.mrb[132].mxu1  ;;  %1893 = vrot.lane.b32.xlu0 %v1688_v15, %s4735_s18  ;;  %v1690_v4 = vmul.f32 %v5336_v29, %v1605_v3  ;;  %v5863_v3 = vpop.permute.xlu0 %3269 }
 0x462   :  { %v1502_v39 = vadd.f32 %v1501_v30, %v5608_v48  ;;  %v1503_v23 = vpop.f32.mrb[133].mxu1  ;;  %4076 = vmatmul.mubr.msk.bf16.gmra.mrb[128].mxu0 %vm641_vm2, %v2302_v44  ;;  %v5859_v30 = vpop.permute.xlu1 %3267  ;;  %7364 = vst [vmem:[#allocation92_spill] sm:$0xff] %v5863_v3 }
 0x463   :  { %v1504_v50 = vadd.f32 %v1503_v23, %v5610_v16  ;;  %v1505_v20 = vpop.f32.mrb[134].mxu1  ;;  %4079 = vmatprep.mubr.msk.bf16.mxu0 %vm4731_vm0, %v7328_v46  ;;  %7363 = vst [vmem:[#allocation91_spill] sm:$0xff] %v5859_v30 }
 0x464   :  { %v1606_v35 = vmax.f32 %v1502_v39, 0.0  ;;  %v1506_v52 = vadd.f32 %v1505_v20, %v5608_v48  ;;  %v1507_v7 = vpop.f32.mrb[135].mxu1  ;;  %1895 = vrot.lane.b32.xlu1 %v1689_v61, %s4735_s18 }
 0x465   :  { %v1607_v38 = vmax.f32 %v1504_v50, 0.0  ;;  %v1508_v15 = vadd.f32 %v1507_v7, %v5610_v16  ;;  %1897 = vrot.lane.b32.xlu0 %v1690_v4, %s4735_s18  ;;  %v5871_v7 = vpop.permute.xlu0 %3273 }
 0x466   :  { %v1691_v23 = vmul.f32 %v5336_v29, %v1606_v35  ;;  %v1608_v44 = vmax.f32 %v1506_v52, 0.0  ;;  %v5867_v61 = vpop.permute.xlu1 %3271  ;;  %7366 = vst [vmem:[#allocation94_spill] sm:$0xff] %v5871_v7 }
 0x467   :  { %v1692_v39 = vmul.f32 %v5336_v29, %v1607_v38  ;;  %v1609_v49 = vmax.f32 %v1508_v15, 0.0  ;;  %7365 = vst [vmem:[#allocation93_spill] sm:$0xff] %v5867_v61 }
 0x468   :  { %v2303_v20 = vpack.c.bf16 %v1608_v44, %v1606_v35  ;;  %1899 = vrot.lane.b32.xlu1 %v1691_v23, %s4735_s18  ;;  %v1693_v50 = vmul.f32 %v5336_v29, %v1608_v44 }
 0x469   :  { %1901 = vrot.lane.b32.xlu0 %v1692_v39, %s4735_s18  ;;  %v1694_v4 = vmul.f32 %v5336_v29, %v1609_v49  ;;  %v5884_v23 = vpop.permute.xlu0 %3277 }
 0x46a   :  { %4080 = vmatmul.mubr.msk.bf16.gmra.mrb[132].mxu0 %vm641_vm2, %v2303_v20  ;;  %v5878_v52 = vpop.permute.xlu1 %3275  ;;  %7368 = vst [vmem:[#allocation96_spill] sm:$0xff] %v5884_v23 }
 0x46b   :  { %4083 = vmatprep.mubr.msk.bf16.mxu0 %vm4731_vm0, %v7328_v46  ;;  %7367 = vst [vmem:[#allocation95_spill] sm:$0xff] %v5878_v52 }
 0x46c   :  { %1903 = vrot.lane.b32.xlu1 %v1693_v50, %s4735_s18 }
 0x46d   :  { %v1511_v35 = vpop.f32.mrb[136].mxu1  ;;  %1905 = vrot.lane.b32.xlu0 %v1694_v4, %s4735_s18  ;;  %v5893_v52 = vpop.permute.xlu0 %3281 }
 0x46e   :  { %v5881_v38 = vadd.f32 %v1511_v35, %v5608_v48  ;;  %v1513_v15 = vpop.f32.mrb[137].mxu1  ;;  %v5889_v20 = vpop.permute.xlu1 %3279  ;;  %7370 = vst [vmem:[#allocation98_spill] sm:$0xff] %v5893_v52 }
 0x46f   :  { %v1515_v44 = vpop.f32.mrb[138].mxu1  ;;  %7369 = vst [vmem:[#allocation97_spill] sm:$0xff] %v5889_v20 }
 0x470   :  { %v5887_v39 = vadd.f32 %v1515_v44, %v5608_v48  ;;  %v1517_v49 = vpop.f32.mrb[139].mxu1  ;;  %v1610_v50 = vmax.f32 %v5881_v38, 0.0 }
 0x471   :  { %v5898_v4 = vpop.permute.xlu0 %3285 }
 0x472   :  { %v1612_v61 = vmax.f32 %v5887_v39, 0.0  ;;  %v5895_v30 = vpop.permute.xlu1 %3283  ;;  %7372 = vst [vmem:[#allocation100_spill] sm:$0xff] %v5898_v4 }
 0x473   :  { %7371 = vst [vmem:[#allocation99_spill] sm:$0xff] %v5895_v30 }
 0x474   :  { %v2304_v35 = vpack.c.bf16 %v1612_v61, %v1610_v50 }
 0x475   :  { %v5909_v39 = vpop.permute.xlu0 %3289 }
 0x476   :  { %4084 = vmatmul.mubr.msk.bf16.gmra.mrb[136].mxu0 %vm641_vm2, %v2304_v35  ;;  %v5902_v33 = vpop.permute.xlu1 %3287  ;;  %7374 = vst [vmem:[#allocation102_spill] sm:$0xff] %v5909_v39 }
 0x477   :  { %4087 = vmatprep.mubr.msk.bf16.mxu0 %vm4731_vm0, %v7328_v46  ;;  %7373 = vst [vmem:[#allocation101_spill] sm:$0xff] %v5902_v33 }
 0x479   :  { %v1521_v44 = vpop.f32.mrb[140].mxu1  ;;  %v5920_v33 = vpop.permute.xlu0 %3293 }
 0x47a   :  { %v5905_v20 = vadd.f32 %v1521_v44, %v5608_v48  ;;  %v5907_v38 = vpop.f32.mrb[141].mxu1  ;;  %v5916_v62 = vpop.permute.xlu1 %3291  ;;  %7376 = vst [vmem:[#allocation104_spill] sm:$0xff] %v5920_v33 }
 0x47b   :  { %v1525_v17 = vpop.f32.mrb[142].mxu1  ;;  %7375 = vst [vmem:[#allocation103_spill] sm:$0xff] %v5916_v62 }
 0x47c   :  { %v5912_v30 = vadd.f32 %v1525_v17, %v5608_v48  ;;  %v5914_v35 = vpop.f32.mrb[143].mxu1  ;;  %v7278_v6 = vmax.f32 %v5905_v20, 0.0 }
 0x47d   :  { %v1790_v62 = vpop.permute.xlu0 %1789 }
 0x47e   :  { %v7277_v4 = vmax.f32 %v5912_v30, 0.0  ;;  %v1788_v59 = vpop.permute.xlu1 %1787 }
 0x47f   :  { %v1940_v41 = vsel %vm1939_vm4, %v1788_v59, %v1790_v62  ;;  %v1697_v59 = vmul.f32 %v5336_v29, %v1612_v61 }
 0x480   :  { %v2305_v44 = vpack.c.bf16 %v7277_v4, %v7278_v6 }
 0x481   :  { %v1531_v39 = vpop.f32.mrb[144].mxu1  ;;  %v1794_v56 = vpop.permute.xlu0 %1793 }
 0x482   :  { %v5927_v17 = vadd.f32 %v1531_v39, %v5608_v48  ;;  %v5929_v52 = vpop.f32.mrb[145].mxu1  ;;  %4088 = vmatmul.mubr.msk.bf16.gmra.mrb[140].mxu0 %vm641_vm2, %v2305_v44  ;;  %v1792_v39 = vpop.permute.xlu1 %1791 }
 0x483   :  { %v1535_v8 = vpop.f32.mrb[146].mxu1  ;;  %4091 = vmatprep.mubr.msk.bf16.mxu0 %vm4731_vm0, %v7328_v46 }
 0x484   :  { %v5935_v33 = vadd.f32 %v1535_v8, %v5608_v48  ;;  %v5937_v23 = vpop.f32.mrb[147].mxu1  ;;  %v7280_v4 = vmax.f32 %v5927_v17, 0.0 }
 0x486   :  { %v7279_v6 = vmax.f32 %v5935_v33, 0.0  ;;  %v1796_v62 = vpop.permute.xlu1 %1795 }
 0x488   :  { %v2306_v44 = vpack.c.bf16 %v7279_v6, %v7280_v4  ;;  %v1941_v6 = vsel %vm1939_vm4, %v1792_v39, %v1794_v56  ;;  %v1518_v56 = vadd.f32 %v1517_v49, %v5610_v16 }
 0x489   :  { %v1541_v7 = vpop.f32.mrb[148].mxu1 }
 0x48a   :  { %v5946_v18 = vadd.f32 %v1541_v7, %v5608_v48  ;;  %v5948_v3 = vpop.f32.mrb[149].mxu1  ;;  %4092 = vmatmul.mubr.msk.bf16.gmra.mrb[144].mxu0 %vm641_vm2, %v2306_v44  ;;  %v1800_v49 = vpop.permute.xlu1 %1799 }
 0x48b   :  { %v1545_v8 = vpop.f32.mrb[150].mxu1  ;;  %4095 = vmatprep.mubr.msk.bf16.mxu0 %vm4731_vm0, %v7328_v46  ;;  %v1514_v46 = vadd.f32 %v1513_v15, %v5610_v16  ;;  %v1798_v15 = vpop.permute.xlu0 %1797 }
 0x48c   :  { %v5954_v55 = vadd.f32 %v1545_v8, %v5608_v48  ;;  %v5956_v36 = vpop.f32.mrb[151].mxu1  ;;  %2018 = vadd.xlane.f32.xlu0 %v1941_v6  ;;  %v7282_v7 = vmax.f32 %v5946_v18, 0.0  ;;  %v1695_v6 = vmul.f32 %v5336_v29, %v1610_v50  ;;  %v1613_v8 = vmax.f32 %v1518_v56, 0.0 }
 0x48d   :  { %v1611_v48 = vmax.f32 %v1514_v46, 0.0  ;;  %v1942_v50 = vsel %vm1939_vm4, %v1796_v62, %v1798_v15 }
 0x48e   :  { %v7281_v4 = vmax.f32 %v5954_v55, 0.0 }
 0x48f   :  { %v1696_v39 = vmul.f32 %v5336_v29, %v1611_v48 }
 0x490   :  { %v2307_v44 = vpack.c.bf16 %v7281_v4, %v7282_v7  ;;  %2016 = vadd.xlane.f32.xlu1 %v1940_v41  ;;  %v1698_v41 = vmul.f32 %v5336_v29, %v1613_v8  ;;  %v1804_v4 = vpop.permute.xlu1 %1803 }
 0x492   :  { %4096 = vmatmul.mubr.msk.bf16.gmra.mrb[148].mxu0 %vm641_vm2, %v2307_v44  ;;  %v1802_v44 = vpop.permute.xlu0 %1801 }
 0x493   :  { %v1943_v46 = vsel %vm1939_vm4, %v1800_v49, %v1802_v44  ;;  %v7377_v49 = vmax.f32 %v5905_v20, 0.0 }
 0x494   :  { %v1808_v2 = vpop.permute.xlu1 %1807 }
 0x495   :  { %v1699_v44 = vmul.f32 %v5336_v29, %v7377_v49 }
 0x4a1   :  { %1907 = vrot.lane.b32.xlu1 %v1695_v6, %s4735_s18 }
 0x4a2   :  { %1909 = vrot.lane.b32.xlu0 %v1696_v39, %s4735_s18  ;;  %v1524_v39 = vadd.f32 %v5907_v38, %v5610_v16  ;;  %v7378_v38 = vmax.f32 %v5912_v30, 0.0 }
 0x4a5   :  { %1911 = vrot.lane.b32.xlu1 %v1697_v59, %s4735_s18  ;;  %v1615_v59 = vmax.f32 %v1524_v39, 0.0 }
 0x4a6   :  { %1913 = vrot.lane.b32.xlu0 %v1698_v41, %s4735_s18  ;;  %v1528_v41 = vadd.f32 %v5914_v35, %v5610_v16 }
 0x4c5   :  { %2020 = vadd.xlane.f32.xlu0 %v1942_v50 }
 0x4c9   :  { %2022 = vadd.xlane.f32.xlu1 %v1943_v46  ;;  %v5979_v48 = vpop.f32.mrb[76].mxu0  ;;  %v1700_v46 = vmul.f32 %v5336_v29, %v1615_v59 }
 0x4ca   :  { %v4025_v61 = vpop.f32.mrb[77].mxu0 }
 0x4cb   :  { %v5981_v56 = vpop.f32.mrb[78].mxu0  ;;  %v1617_v61 = vmax.f32 %v1528_v41, 0.0 }
 0x4cc   :  { %v4026_v6 = vpop.f32.mrb[79].mxu0 }
 0x4cd   :  { %v1701_v6 = vmul.f32 %v5336_v29, %v7378_v38  ;;  %v1702_v39 = vmul.f32 %v5336_v29, %v1617_v61 }
 0x4d5   :  { %v5985_v8 = vpop.f32.mrb[80].mxu0 }
 0x4d6   :  { %v4029_v62 = vpop.f32.mrb[81].mxu0 }
 0x4d7   :  { %v5989_v15 = vpop.f32.mrb[82].mxu0 }
 0x4d8   :  { %v4030_v50 = vpop.f32.mrb[83].mxu0 }
 0x4da   :  { %1915 = vrot.lane.b32.xlu1 %v1699_v44, %s4735_s18 }
 0x4db   :  { %1917 = vrot.lane.b32.xlu0 %v1700_v46, %s4735_s18 }
 0x4dd   :  { %v6000_v35 = vpop.f32.mrb[84].mxu0 }
 0x4de   :  { %1919 = vrot.lane.b32.xlu1 %v1701_v6, %s4735_s18  ;;  %v4033_v20 = vpop.f32.mrb[85].mxu0  ;;  %v1806_v6 = vpop.permute.xlu0 %1805 }
 0x4df   :  { %v6004_v62 = vpop.f32.mrb[86].mxu0  ;;  %1921 = vrot.lane.b32.xlu0 %v1702_v39, %s4735_s18 }
 0x4e0   :  { %v4034_v59 = vpop.f32.mrb[87].mxu0 }
 0x4e2   :  { %v1810_v25 = vpop.permute.xlu0 %1809 }
 0x4e3   :  { %v1945_v47 = vsel %vm1939_vm4, %v1808_v2, %v1810_v25 }
 0x4e5   :  { %v6007_v41 = vpop.f32.mrb[88].mxu0 }
 0x4e6   :  { %v4037_v49 = vpop.f32.mrb[89].mxu0  ;;  %v1814_v0 = vpop.permute.xlu0 %1813 }
 0x4e7   :  { %v6009_v30 = vpop.f32.mrb[90].mxu0  ;;  %v6019_v49 = vpop.permute.xlu1 %1811 }
 0x4e8   :  { %v4038_v44 = vpop.f32.mrb[91].mxu0 }
 0x4e9   :  { %v1944_v44 = vsel %vm1939_vm4, %v1804_v4, %v1806_v6  ;;  %v1534_v4 = vadd.f32 %v5929_v52, %v5610_v16 }
 0x4ea   :  { %v1818_v63 = vpop.permute.xlu0 %1817 }
 0x4ed   :  { %v6011_v50 = vpop.f32.mrb[92].mxu0 }
 0x4ee   :  { %v4041_v46 = vpop.f32.mrb[93].mxu0  ;;  %v6035_v6 = vpop.permute.xlu0 %1821 }
 0x4ef   :  { %v6013_v38 = vpop.f32.mrb[94].mxu0 }
 0x4f0   :  { %v4042_v61 = vpop.f32.mrb[95].mxu0 }
 0x4f2   :  { %v6048_v21 = vpop.permute.xlu0 %1825 }
 0x4f5   :  { %v6015_v20 = vpop.f32.mrb[96].mxu0 }
 0x4f6   :  { %v4045_v7 = vpop.f32.mrb[97].mxu0 }
 0x4f7   :  { %v6017_v39 = vpop.f32.mrb[98].mxu0  ;;  %v1816_v7 = vpop.permute.xlu1 %1815 }
 0x4f8   :  { %v4046_v59 = vpop.f32.mrb[99].mxu0  ;;  %v1947_v12 = vsel %vm1939_vm4, %v1816_v7, %v1818_v63 }
 0x4fb   :  { %v6031_v32 = vpop.permute.xlu1 %1819 }
 0x4fd   :  { %v6021_v51 = vpop.f32.mrb[100].mxu0 }
 0x4fe   :  { %2024 = vadd.xlane.f32.xlu0 %v1944_v44  ;;  %v4049_v46 = vpop.f32.mrb[101].mxu0 }
 0x4ff   :  { %v6024_v61 = vpop.f32.mrb[102].mxu0  ;;  %v6041_v2 = vpop.permute.xlu1 %1823 }
 0x500   :  { %v4050_v43 = vpop.f32.mrb[103].mxu0 }
 0x501   :  { %v1619_v43 = vmax.f32 %v1534_v4, 0.0  ;;  %v7380_v4 = vmax.f32 %v5935_v33, 0.0 }
 0x502   :  { %2026 = vadd.xlane.f32.xlu1 %v1945_v47  ;;  %v1538_v47 = vadd.f32 %v5937_v23, %v5610_v16 }
 0x503   :  { %v1704_v52 = vmul.f32 %v5336_v29, %v1619_v43  ;;  %v1705_v23 = vmul.f32 %v5336_v29, %v7380_v4 }
 0x504   :  { %v1621_v14 = vmax.f32 %v1538_v47, 0.0 }
 0x505   :  { %v6027_v13 = vpop.f32.mrb[104].mxu0 }
 0x506   :  { %v4053_v59 = vpop.f32.mrb[105].mxu0 }
 0x507   :  { %v6029_v42 = vpop.f32.mrb[106].mxu0 }
 0x508   :  { %v4054_v53 = vpop.f32.mrb[107].mxu0 }
 0x509   :  { %v7379_v53 = vmax.f32 %v5927_v17, 0.0  ;;  %v1706_v17 = vmul.f32 %v5336_v29, %v1621_v14 }
 0x50b   :  { %v1703_v59 = vmul.f32 %v5336_v29, %v7379_v53  ;;  %v6062_v53 = vpop.permute.xlu0 %1829 }
 0x50d   :  { %v6037_v44 = vpop.f32.mrb[108].mxu0 }
 0x50e   :  { %v4057_v25 = vpop.f32.mrb[109].mxu0 }
 0x50f   :  { %v6043_v46 = vpop.f32.mrb[110].mxu0  ;;  %v6056_v25 = vpop.permute.xlu1 %1827 }
 0x510   :  { %v4058_v19 = vpop.f32.mrb[111].mxu0 }
 0x513   :  { %1923 = vrot.lane.b32.xlu1 %v1703_v59, %s4735_s18  ;;  %v6067_v47 = vpop.permute.xlu1 %1831  ;;  %v6069_v59 = vpop.permute.xlu0 %1833 }
 0x514   :  { %1925 = vrot.lane.b32.xlu0 %v1704_v52, %s4735_s18 }
 0x515   :  { %v6058_v28 = vpop.f32.mrb[112].mxu0 }
 0x516   :  { %v4061_v19 = vpop.f32.mrb[113].mxu0 }
 0x517   :  { %1927 = vrot.lane.b32.xlu1 %v1705_v23, %s4735_s18  ;;  %v6064_v43 = vpop.f32.mrb[114].mxu0  ;;  %v6075_v19 = vpop.permute.xlu1 %1835 }
 0x518   :  { %1929 = vrot.lane.b32.xlu0 %v1706_v17, %s4735_s18  ;;  %v4062_v33 = vpop.f32.mrb[115].mxu0  ;;  %v6077_v23 = vpop.permute.xlu0 %1837 }
 0x51b   :  { %v6081_v1 = vpop.permute.xlu1 %1839 }
 0x51c   :  { %v6085_v26 = vpop.permute.xlu0 %1841 }
 0x51d   :  { %v6071_v52 = vpop.f32.mrb[116].mxu0 }
 0x51e   :  { %v4065_v4 = vpop.f32.mrb[117].mxu0 }
 0x51f   :  { %v6073_v10 = vpop.f32.mrb[118].mxu0  ;;  %v6087_v9 = vpop.permute.xlu1 %1843 }
 0x520   :  { %7381 = vst [vmem:[#allocation105_spill] sm:$0xff] %v6073_v10  ;;  %v4066_v14 = vpop.f32.mrb[119].mxu0 }
 0x521   :  { %v6091_v14 = vpop.permute.xlu0 %1845 }
 0x523   :  { %v6095_v31 = vpop.permute.xlu1 %1847 }
 0x525   :  { %v6079_v24 = vpop.f32.mrb[120].mxu0 }
 0x526   :  { %7382 = vst [vmem:[#allocation106_spill] sm:$0xff] %v6079_v24  ;;  %v4069_v40 = vpop.f32.mrb[121].mxu0 }
 0x527   :  { %v6083_v17 = vpop.f32.mrb[122].mxu0  ;;  %v6097_v40 = vpop.permute.xlu0 %1849 }
 0x528   :  { %7383 = vst [vmem:[#allocation107_spill] sm:$0xff] %v6083_v17  ;;  %v4070_v33 = vpop.f32.mrb[123].mxu0 }
 0x529   :  { %v1946_v33 = vsel %vm1939_vm4, %v6019_v49, %v1814_v0 }
 0x52d   :  { %v6089_v4 = vpop.f32.mrb[124].mxu0 }
 0x52e   :  { %7384 = vst [vmem:[#allocation108_spill] sm:$0xff] %v6089_v4  ;;  %v4073_v22 = vpop.f32.mrb[125].mxu0 }
 0x52f   :  { %v6093_v57 = vpop.f32.mrb[126].mxu0  ;;  %v6105_v22 = vpop.permute.xlu1 %1851 }
 0x530   :  { %7385 = vst [vmem:[#allocation109_spill] sm:$0xff] %v6093_v57  ;;  %v4074_v11 = vpop.f32.mrb[127].mxu0 }
 0x531   :  { %v6108_v11 = vpop.permute.xlu0 %1853 }
 0x533   :  { %v6112_v5 = vpop.permute.xlu1 %1855 }
 0x535   :  { %v6099_v34 = vpop.f32.mrb[128].mxu0  ;;  %v6116_v0 = vpop.permute.xlu0 %1857 }
 0x536   :  { %7386 = vst [vmem:[#allocation110_spill] sm:$0xff] %v6099_v34  ;;  %v4077_v27 = vpop.f32.mrb[129].mxu0 }
 0x537   :  { %2028 = vadd.xlane.f32.xlu0 %v1946_v33  ;;  %v6103_v58 = vpop.f32.mrb[130].mxu0  ;;  %v6120_v49 = vpop.permute.xlu1 %1859 }
 0x538   :  { %7387 = vst [vmem:[#allocation111_spill] sm:$0xff] %v6103_v58  ;;  %v4078_v37 = vpop.f32.mrb[131].mxu0 }
 0x539   :  { %v1544_v37 = vadd.f32 %v5948_v3, %v5610_v16  ;;  %v6124_v63 = vpop.permute.xlu0 %1861 }
 0x53b   :  { %2030 = vadd.xlane.f32.xlu1 %v1947_v12  ;;  %v1623_v33 = vmax.f32 %v1544_v37, 0.0  ;;  %v1548_v12 = vadd.f32 %v5956_v36, %v5610_v16  ;;  %v1864_v34 = vpop.permute.xlu1 %1863  ;;  %v7393_v16 = vmax.f32 %v5954_v55, 0.0 }
 0x53d   :  { %v6110_v60 = vpop.f32.mrb[132].mxu0  ;;  %v1708_v58 = vmul.f32 %v5336_v29, %v1623_v33  ;;  %v1625_v3 = vmax.f32 %v1548_v12, 0.0  ;;  %v1709_v36 = vmul.f32 %v5336_v29, %v7393_v16  ;;  %v1866_v57 = vpop.permute.xlu0 %1865 }
 0x53e   :  { %7388 = vst [vmem:[#allocation112_spill] sm:$0xff] %v6110_v60  ;;  %v4081_v54 = vpop.f32.mrb[133].mxu0 }
 0x53f   :  { %v6114_v27 = vpop.f32.mrb[134].mxu0  ;;  %v7391_v54 = vmax.f32 %v5946_v18, 0.0  ;;  %v1710_v18 = vmul.f32 %v5336_v29, %v1625_v3 }
 0x540   :  { %7389 = vst [vmem:[#allocation113_spill] sm:$0xff] %v6114_v27  ;;  %v4082_v45 = vpop.f32.mrb[135].mxu0 }
 0x541   :  { %v1707_v27 = vmul.f32 %v5336_v29, %v7391_v54  ;;  %v1868_v54 = vpop.permute.xlu1 %1867  ;;  %v1870_v33 = vpop.permute.xlu0 %1869 }
 0x549   :  { %v6126_v7 = vpop.f32.mrb[136].mxu0 }
 0x54a   :  { %7390 = vst [vmem:[#allocation114_spill] sm:$0xff] %v6126_v7  ;;  %v4085_v45 = vpop.f32.mrb[137].mxu0 }
 0x54b   :  { %v6131_v60 = vpop.f32.mrb[138].mxu0 }
 0x54c   :  { %7392 = vst [vmem:[#allocation115_spill] sm:$0xff] %v6131_v60  ;;  %1931 = vrot.lane.b32.xlu1 %v1707_v27, %s4735_s18  ;;  %v4086_v37 = vpop.f32.mrb[139].mxu0  ;;  %v1874_v60 = vpop.permute.xlu0 %1873 }
 0x54d   :  { %1933 = vrot.lane.b32.xlu0 %v1708_v58, %s4735_s18  ;;  %v1872_v37 = vpop.permute.xlu1 %1871 }
 0x550   :  { %1935 = vrot.lane.b32.xlu1 %v1709_v36, %s4735_s18  ;;  %v1878_v29 = vpop.permute.xlu0 %1877 }
 0x551   :  { %1937 = vrot.lane.b32.xlu0 %v1710_v18, %s4735_s18  ;;  %v1876_v7 = vpop.permute.xlu1 %1875 }
 0x554   :  { %v1882_v18 = vpop.permute.xlu0 %1881 }
 0x555   :  { %v6142_v12 = vpop.f32.mrb[140].mxu0  ;;  %v1880_v36 = vpop.permute.xlu1 %1879 }
 0x556   :  { %7394 = vst [vmem:[#allocation116_spill] sm:$0xff] %v6142_v12  ;;  %v4089_v45 = vpop.f32.mrb[141].mxu0 }
 0x557   :  { %v6144_v27 = vpop.f32.mrb[142].mxu0 }
 0x558   :  { %7395 = vst [vmem:[#allocation117_spill] sm:$0xff] %v6144_v27  ;;  %v4090_v55 = vpop.f32.mrb[143].mxu0  ;;  %v1886_v10 = vpop.permute.xlu0 %1885 }
 0x559   :  { %v1884_v27 = vpop.permute.xlu1 %1883 }
 0x55d   :  { %v6146_v16 = vpop.f32.mrb[144].mxu0  ;;  %v1888_v55 = vpop.permute.xlu1 %1887 }
 0x55e   :  { %7396 = vst [vmem:[#allocation118_spill] sm:$0xff] %v6146_v16  ;;  %v4093_v58 = vpop.f32.mrb[145].mxu0  ;;  %v1948_v16 = vsel %vm1939_vm4, %v6031_v32, %v6035_v6  ;;  %v1952_v32 = vsel %vm1939_vm4, %v6075_v19, %v6077_v23  ;;  %v1960_v23 = vsel %vm1939_vm4, %v1868_v54, %v1870_v33 }
 0x55f   :  { %v6148_v4 = vpop.f32.mrb[146].mxu0  ;;  %v1890_v58 = vpop.permute.xlu0 %1889 }
 0x560   :  { %v4094_v3 = vpop.f32.mrb[147].mxu0 }
 0x561   :  { %v1949_v3 = vsel %vm1939_vm4, %v6041_v2, %v6048_v21  ;;  %v1953_v21 = vsel %vm1939_vm4, %v6081_v1, %v6085_v26  ;;  %v1954_v2 = vsel %vm1939_vm4, %v6087_v9, %v6091_v14  ;;  %v1957_v26 = vsel %vm1939_vm4, %v6112_v5, %v6116_v0 }
 0x562   :  { %v1958_v9 = vsel %vm1939_vm4, %v6120_v49, %v6124_v63  ;;  %v1962_v5 = vsel %vm1939_vm4, %v1876_v7, %v1878_v29  ;;  %v1964_v49 = vsel %vm1939_vm4, %v1884_v27, %v1886_v10  ;;  %v1965_v7 = vsel %vm1939_vm4, %v1888_v55, %v1890_v58 }
 0x565   :  { %v6150_v17 = vpop.f32.mrb[148].mxu0 }
 0x566   :  { %7397 = vst [vmem:[#allocation119_spill] sm:$0xff] %v6150_v17  ;;  %v4097_v24 = vpop.f32.mrb[149].mxu0  ;;  %v1894_v17 = vpop.permute.xlu0 %1893 }
 0x567   :  { %v6152_v12 = vpop.f32.mrb[150].mxu0  ;;  %v1950_v24 = vsel %vm1939_vm4, %v6056_v25, %v6062_v53  ;;  %v1955_v53 = vsel %vm1939_vm4, %v6095_v31, %v6097_v40  ;;  %v1959_v31 = vsel %vm1939_vm4, %v1864_v34, %v1866_v57  ;;  %v1961_v40 = vsel %vm1939_vm4, %v1872_v37, %v1874_v60 }
 0x568   :  { %7398 = vst [vmem:[#allocation120_spill] sm:$0xff] %v6152_v12  ;;  %v4098_v45 = vpop.f32.mrb[151].mxu0  ;;  %v1951_v12 = vsel %vm1939_vm4, %v6067_v47, %v6069_v59  ;;  %v1956_v47 = vsel %vm1939_vm4, %v6105_v22, %v6108_v11  ;;  %v6193_v11 = vld [vmem:[#allocation18] ss:$0 sm:$0xff]  ;;  %v1963_v34 = vsel %vm1939_vm4, %v1880_v36, %v1882_v18 }
 0x569   :  { %v1892_v45 = vpop.permute.xlu1 %1891  ;;  %v6200_v57 = vadd.f32 %v6193_v11, %v5979_v48  ;;  %v6205_v63 = vadd.f32 %v6193_v11, %v5981_v56  ;;  %v6214_v10 = vadd.f32 %v6193_v11, %v5985_v8  ;;  %v6219_v37 = vadd.f32 %v6193_v11, %v5989_v15 }
 0x56a   :  { %v1898_v25 = vpop.permute.xlu0 %1897  ;;  %v1966_v27 = vsel %vm1939_vm4, %v1892_v45, %v1894_v17  ;;  %v6232_v18 = vadd.f32 %v6193_v11, %v6000_v35  ;;  %v6237_v58 = vadd.f32 %v6193_v11, %v6004_v62 }
 0x56b   :  { %v2573_v33 = vsel %vm318_vm1, %v6200_v57, -inf  ;;  %v2576_v48 = vsel %vm318_vm1, %v6205_v63, -inf  ;;  %v2579_v36 = vsel %vm318_vm1, %v6214_v10, -inf  ;;  %v2582_v17 = vsel %vm318_vm1, %v6219_v37, -inf }
 0x56c   :  { %v2585_v45 = vsel %vm318_vm1, %v6232_v18, -inf  ;;  %v2588_v35 = vsel %vm318_vm1, %v6237_v58, -inf }
 0x56d   :  { %v1896_v6 = vpop.permute.xlu1 %1895 }
 0x56e   :  { %v1902_v1 = vpop.permute.xlu0 %1901 }
 0x570   :  { %2032 = vadd.xlane.f32.xlu0 %v1948_v16  ;;  %v1967_v16 = vsel %vm1939_vm4, %v1896_v6, %v1898_v25 }
 0x571   :  { %v1900_v59 = vpop.permute.xlu1 %1899 }
 0x572   :  { %v1906_v14 = vpop.permute.xlu0 %1905  ;;  %v1968_v15 = vsel %vm1939_vm4, %v1900_v59, %v1902_v1 }
 0x574   :  { %2034 = vadd.xlane.f32.xlu1 %v1949_v3  ;;  %2036 = vadd.xlane.f32.xlu0 %v1950_v24 }
 0x575   :  { %v1904_v19 = vpop.permute.xlu1 %1903 }
 0x576   :  { %v6195_v0 = vpop.xlane.xlu0 %2018  ;;  %v1969_v3 = vsel %vm1939_vm4, %v1904_v19, %v1906_v14  ;;  %v6278_v14 = vadd.f32 %v6193_v11, %v6015_v20 }
 0x578   :  { %2038 = vadd.xlane.f32.xlu1 %v1951_v12  ;;  %2040 = vadd.xlane.f32.xlu0 %v1952_v32  ;;  %v6246_v32 = vadd.f32 %v6193_v11, %v6007_v41 }
 0x579   :  { %v6190_v22 = vpop.xlane.xlu1 %2016 }
 0x57a   :  { %v1910_v54 = vpop.permute.xlu0 %1909 }
 0x57c   :  { %2042 = vadd.xlane.f32.xlu1 %v1953_v21  ;;  %2044 = vadd.xlane.f32.xlu0 %v1954_v2  ;;  %v6251_v2 = vadd.f32 %v6193_v11, %v6009_v30 }
 0x57d   :  { %v1908_v60 = vpop.permute.xlu1 %1907 }
 0x57e   :  { %v1914_v56 = vpop.permute.xlu0 %1913  ;;  %v1970_v6 = vsel %vm1939_vm4, %v1908_v60, %v1910_v54  ;;  %v2594_v59 = vsel %vm318_vm1, %v6251_v2, -inf  ;;  %v2603_v60 = vsel %vm318_vm1, %v6278_v14, -inf }
 0x580   :  { %2046 = vadd.xlane.f32.xlu1 %v1955_v53  ;;  %2048 = vadd.xlane.f32.xlu0 %v1956_v47  ;;  %v2591_v47 = vsel %vm318_vm1, %v6246_v32, -inf }
 0x581   :  { %v1912_v12 = vpop.permute.xlu1 %1911 }
 0x582   :  { %v6226_v8 = vpop.xlane.xlu0 %2020  ;;  %v1971_v25 = vsel %vm1939_vm4, %v1912_v12, %v1914_v56  ;;  %v6303_v56 = vadd.f32 %v6193_v11, %v6024_v61 }
 0x584   :  { %2050 = vadd.xlane.f32.xlu1 %v1957_v26  ;;  %2052 = vadd.xlane.f32.xlu0 %v1958_v9  ;;  %v6264_v26 = vadd.f32 %v6193_v11, %v6011_v50  ;;  %v6269_v9 = vadd.f32 %v6193_v11, %v6013_v38 }
 0x585   :  { %v6222_v29 = vpop.xlane.xlu1 %2022 }
 0x586   :  { %v1918_v24 = vpop.permute.xlu0 %1917  ;;  %v2600_v50 = vsel %vm318_vm1, %v6269_v9, -inf }
 0x588   :  { %2054 = vadd.xlane.f32.xlu1 %v1959_v31  ;;  %2056 = vadd.xlane.f32.xlu0 %v1960_v23  ;;  %v2597_v23 = vsel %vm318_vm1, %v6264_v26, -inf }
 0x589   :  { %v1916_v55 = vpop.permute.xlu1 %1915 }
 0x58a   :  { %v1922_v62 = vpop.permute.xlu0 %1921  ;;  %v1972_v30 = vsel %vm1939_vm4, %v1916_v55, %v1918_v24 }
 0x58c   :  { %2058 = vadd.xlane.f32.xlu1 %v1961_v40  ;;  %2060 = vadd.xlane.f32.xlu0 %v1962_v5 }
 0x58d   :  { %v1920_v21 = vpop.permute.xlu1 %1919 }
 0x58e   :  { %v6258_v41 = vpop.xlane.xlu0 %2024  ;;  %v1973_v31 = vsel %vm1939_vm4, %v1920_v21, %v1922_v62 }
 0x590   :  { %2062 = vadd.xlane.f32.xlu1 %v1963_v34  ;;  %2064 = vadd.xlane.f32.xlu0 %v1964_v49  ;;  %v6283_v34 = vadd.f32 %v6193_v11, %v6017_v39  ;;  %v6296_v39 = vadd.f32 %v6193_v11, %v6021_v51 }
 0x591   :  { %v6254_v53 = vpop.xlane.xlu1 %2026 }
 0x592   :  { %v1926_v19 = vpop.permute.xlu0 %1925  ;;  %v2606_v20 = vsel %vm318_vm1, %v6283_v34, -inf  ;;  %7399 = vst [vmem:[#allocation121_spill] sm:$0xff] %v6296_v39 }
 0x594   :  { %2066 = vadd.xlane.f32.xlu1 %v1965_v7  ;;  %2574 = vmax.xlane.f32.xlu0 %v2573_v33 }
 0x595   :  { %v1924_v1 = vpop.permute.xlu1 %1923 }
 0x596   :  { %v1974_v5 = vsel %vm1939_vm4, %v1924_v1, %v1926_v19  ;;  %v1930_v38 = vpop.permute.xlu0 %1929 }
 0x598   :  { %2577 = vmax.xlane.f32.xlu1 %v2576_v48  ;;  %2068 = vadd.xlane.f32.xlu0 %v1966_v27  ;;  %v6299_v27 = vld [vmem:[#allocation2] ss:$0 sm:$0xff] }
 0x599   :  { %v1928_v40 = vpop.permute.xlu1 %1927  ;;  %v2100_v51 = vadd.f32 %v6299_v27, %v6195_v0 }
 0x59a   :  { %v1975_v49 = vsel %vm1939_vm4, %v1928_v40, %v1930_v38 }
 0x59b   :  { %v2138_v24 = vmul.f32 0.5, %v2100_v51 }
 0x59c   :  { %2070 = vadd.xlane.f32.xlu1 %v1967_v16  ;;  %2580 = vmax.xlane.f32.xlu0 %v2579_v36  ;;  %v2099_v16 = vadd.f32 %v6299_v27, %v6190_v22  ;;  %v6318_v22 = vadd.f32 %v6193_v11, %v6029_v42 }
 0x59e   :  { %v2137_v61 = vmul.f32 0.5, %v2099_v16  ;;  %v2618_v0 = vsel %vm318_vm1, %v6318_v22, -inf }
 0x5a0   :  { %2583 = vmax.xlane.f32.xlu1 %v2582_v17  ;;  %2072 = vadd.xlane.f32.xlu0 %v1968_v15  ;;  %v6309_v15 = vadd.f32 %v6193_v11, %v6027_v13  ;;  %v2612_v13 = vsel %vm318_vm1, %v6303_v56, -inf  ;;  %4208 = vtanh.f32 %v2137_v61 }
 0x5a1   :  { %4210 = vtanh.f32 %v2138_v24  ;;  %v7404_v24 = vld [vmem:[#allocation105_spill] sm:$0xff] }
 0x5a2   :  { %7400 = vst [vmem:[#allocation122_spill] sm:$0xff] %v6309_v15 }
 0x5a4   :  { %2074 = vadd.xlane.f32.xlu1 %v1969_v3  ;;  %2586 = vmax.xlane.f32.xlu0 %v2585_v45  ;;  %v2609_v3 = vsel %vm318_vm1, %v6296_v39, -inf  ;;  %v2615_v45 = vsel %vm318_vm1, %v6309_v15, -inf }
 0x5a8   :  { %2589 = vmax.xlane.f32.xlu1 %v2588_v35  ;;  %2076 = vadd.xlane.f32.xlu0 %v1970_v6 }
 0x5aa   :  { %v4209_v35 = vpop.eup %4208 }
 0x5ab   :  { %v4211_v21 = vpop.eup %4210  ;;  %v2213_v6 = vadd.f32 1.0, %v4209_v35 }
 0x5ac   :  { %2078 = vadd.xlane.f32.xlu1 %v1971_v25  ;;  %2592 = vmax.xlane.f32.xlu0 %v2591_v47  ;;  %v2214_v42 = vadd.f32 1.0, %v4211_v21  ;;  %v2101_v47 = vadd.f32 %v6299_v27, %v6226_v8 }
 0x5ad   :  { %v2251_v62 = vmul.f32 0.5, %v2213_v6 }
 0x5ae   :  { %v2252_v25 = vmul.f32 0.5, %v2214_v42  ;;  %v2139_v1 = vmul.f32 0.5, %v2101_v47 }
 0x5b0   :  { %2595 = vmax.xlane.f32.xlu1 %v2594_v59  ;;  %2080 = vadd.xlane.f32.xlu0 %v1972_v30  ;;  %v6332_v59 = vadd.f32 %v6193_v11, %v6037_v44  ;;  %v2102_v30 = vadd.f32 %v6299_v27, %v6222_v29  ;;  %4212 = vtanh.f32 %v2139_v1 }
 0x5b2   :  { %7401 = vst [vmem:[#allocation123_spill] sm:$0xff] %v6332_v59  ;;  %v2140_v19 = vmul.f32 0.5, %v2102_v30  ;;  %v7405_v30 = vld [vmem:[#allocation106_spill] sm:$0xff] }
 0x5b3   :  { %v6385_v1 = vadd.f32 %v6193_v11, %v7405_v30 }
 0x5b4   :  { %2082 = vadd.xlane.f32.xlu1 %v1973_v31  ;;  %2598 = vmax.xlane.f32.xlu0 %v2597_v23  ;;  %v6338_v31 = vadd.f32 %v6193_v11, %v6043_v46  ;;  %v2621_v23 = vsel %vm318_vm1, %v6332_v59, -inf  ;;  %4214 = vtanh.f32 %v2140_v19  ;;  %v2103_v46 = vadd.f32 %v6299_v27, %v6258_v41 }
 0x5b5   :  { %7406 = vst [vmem:[#allocation105_spill] sm:$0xff] %v6385_v1 }
 0x5b6   :  { %v2624_v8 = vsel %vm318_vm1, %v6338_v31, -inf }
 0x5b8   :  { %2601 = vmax.xlane.f32.xlu1 %v2600_v50  ;;  %2084 = vadd.xlane.f32.xlu0 %v1974_v5 }
 0x5ba   :  { %v4213_v44 = vpop.eup %4212 }
 0x5bb   :  { %v2215_v40 = vadd.f32 1.0, %v4213_v44 }
 0x5bc   :  { %2086 = vadd.xlane.f32.xlu1 %v1975_v49  ;;  %2604 = vmax.xlane.f32.xlu0 %v2603_v60  ;;  %v6350_v49 = vadd.f32 %v6193_v11, %v6058_v28  ;;  %v2104_v60 = vadd.f32 %v6299_v27, %v6254_v53 }
 0x5bd   :  { %v2253_v5 = vmul.f32 0.5, %v2215_v40  ;;  %v2639_v40 = vsel %vm318_vm1, %v6385_v1, -inf }
 0x5be   :  { %v4215_v50 = vpop.eup %4214  ;;  %7402 = vst [vmem:[#allocation124_spill] sm:$0xff] %v6350_v49 }
 0x5bf   :  { %v2216_v29 = vadd.f32 1.0, %v4215_v50 }
 0x5c0   :  { %2607 = vmax.xlane.f32.xlu1 %v2606_v20  ;;  %v2141_v20 = vmul.f32 0.5, %v2103_v46 }
 0x5c1   :  { %v2254_v38 = vmul.f32 0.5, %v2216_v29 }
 0x5c2   :  { %4216 = vtanh.f32 %v2141_v20 }
 0x5c4   :  { %v6290_v7 = vpop.xlane.xlu0 %2028 }
 0x5c8   :  { %v6292_v54 = vpop.xlane.xlu1 %2030  ;;  %v1934_v33 = vpop.permute.xlu0 %1933 }
 0x5cc   :  { %v1932_v48 = vpop.permute.xlu1 %1931  ;;  %v1938_v36 = vpop.permute.xlu0 %1937 }
 0x5cd   :  { %v1976_v12 = vsel %vm1939_vm4, %v1932_v48, %v1934_v33  ;;  %v6356_v33 = vadd.f32 %v6193_v11, %v6064_v43  ;;  %v2142_v48 = vmul.f32 0.5, %v2104_v60  ;;  %v4217_v28 = vpop.eup %4216  ;;  %v2105_v43 = vadd.f32 %v6299_v27, %v6290_v7 }
 0x5ce   :  { %2088 = vadd.xlane.f32.xlu0 %v1976_v12  ;;  %v2627_v12 = vsel %vm318_vm1, %v6350_v49, -inf }
 0x5cf   :  { %4218 = vtanh.f32 %v2142_v48  ;;  %v2630_v41 = vsel %vm318_vm1, %v6356_v33, -inf  ;;  %v2143_v61 = vmul.f32 0.5, %v2105_v43 }
 0x5d0   :  { %v1936_v17 = vpop.permute.xlu1 %1935 }
 0x5d1   :  { %v1977_v55 = vsel %vm1939_vm4, %v1936_v17, %v1938_v36  ;;  %v2217_v36 = vadd.f32 1.0, %v4217_v28  ;;  %4220 = vtanh.f32 %v2143_v61 }
 0x5d2   :  { %2090 = vadd.xlane.f32.xlu1 %v1977_v55  ;;  %2610 = vmax.xlane.f32.xlu0 %v2609_v3  ;;  %v6368_v55 = vadd.f32 %v6193_v11, %v6071_v52  ;;  %v2106_v3 = vadd.f32 %v6299_v27, %v6292_v54 }
 0x5d3   :  { %v2255_v17 = vmul.f32 0.5, %v2217_v36 }
 0x5d4   :  { %7403 = vst [vmem:[#allocation125_spill] sm:$0xff] %v6368_v55 }
 0x5d6   :  { %2613 = vmax.xlane.f32.xlu1 %v2612_v13  ;;  %2616 = vmax.xlane.f32.xlu0 %v2615_v45  ;;  %v6374_v13 = vadd.f32 %v6193_v11, %v7404_v24  ;;  %v2144_v45 = vmul.f32 0.5, %v2106_v3 }
 0x5d8   :  { %4222 = vtanh.f32 %v2144_v45  ;;  %v2636_v7 = vsel %vm318_vm1, %v6374_v13, -inf }
 0x5d9   :  { %v4219_v16 = vpop.eup %4218 }
 0x5da   :  { %2619 = vmax.xlane.f32.xlu1 %v2618_v0  ;;  %v2218_v53 = vadd.f32 1.0, %v4219_v16  ;;  %v2633_v0 = vsel %vm318_vm1, %v6368_v55, -inf  ;;  %v7408_v16 = vld [vmem:[#allocation108_spill] sm:$0xff] }
 0x5db   :  { %v4221_v52 = vpop.eup %4220  ;;  %v6401_v36 = vadd.f32 %v6193_v11, %v7408_v16 }
 0x5dc   :  { %v2256_v51 = vmul.f32 0.5, %v2218_v53  ;;  %v2219_v21 = vadd.f32 1.0, %v4221_v52 }
 0x5dd   :  { %7409 = vst [vmem:[#allocation106_spill] sm:$0xff] %v6401_v36  ;;  %v2645_v61 = vsel %vm318_vm1, %v6401_v36, -inf }
 0x5de   :  { %v2257_v6 = vmul.f32 0.5, %v2219_v21 }
 0x5e2   :  { %v4223_v35 = vpop.eup %4222 }
 0x5e3   :  { %v2220_v54 = vadd.f32 1.0, %v4223_v35 }
 0x5e5   :  { %v2258_v42 = vmul.f32 0.5, %v2220_v54 }
 0x5eb   :  { %3371 = vrot.lane.b32.xlu1 %v2251_v62, %s4734_s14 }
 0x5ec   :  { %3373 = vrot.lane.b32.xlu0 %v2252_v25, %s4734_s14 }
 0x5fd   :  { %v2033_v62 = vpop.xlane.xlu0 %2032 }
 0x5fe   :  { %v2107_v47 = vadd.f32 %v6299_v27, %v2033_v62  ;;  %v7411_v62 = vld [vmem:[#allocation110_spill] sm:$0xff] }
 0x601   :  { %v2035_v25 = vpop.xlane.xlu1 %2034 }
 0x602   :  { %v2108_v19 = vadd.f32 %v6299_v27, %v2035_v25  ;;  %v6417_v25 = vadd.f32 %v6193_v11, %v7411_v62 }
 0x604   :  { %v2146_v50 = vmul.f32 0.5, %v2108_v19  ;;  %v7413_v19 = vld [vmem:[#allocation111_spill] sm:$0xff] }
 0x60b   :  { %2622 = vmax.xlane.f32.xlu0 %v2621_v23  ;;  %v2145_v23 = vmul.f32 0.5, %v2107_v47 }
 0x60d   :  { %4224 = vtanh.f32 %v2145_v23  ;;  %v6422_v23 = vadd.f32 %v6193_v11, %v7413_v19 }
 0x60e   :  { %4226 = vtanh.f32 %v2146_v50  ;;  %v2651_v50 = vsel %vm318_vm1, %v6417_v25, -inf }
 0x60f   :  { %2625 = vmax.xlane.f32.xlu1 %v2624_v8  ;;  %v7407_v8 = vld [vmem:[#allocation107_spill] sm:$0xff] }
 0x610   :  { %v6390_v44 = vadd.f32 %v6193_v11, %v7407_v8  ;;  %7412 = vst [vmem:[#allocation107_spill] sm:$0xff] %v6417_v25 }
 0x612   :  { %v2642_v29 = vsel %vm318_vm1, %v6390_v44, -inf }
 0x620   :  { %3375 = vrot.lane.b32.xlu1 %v2253_v5, %s4734_s14  ;;  %v4225_v5 = vpop.eup %4224 }
 0x621   :  { %3377 = vrot.lane.b32.xlu0 %v2254_v38, %s4734_s14  ;;  %v4227_v38 = vpop.eup %4226  ;;  %v2221_v46 = vadd.f32 1.0, %v4225_v5 }
 0x622   :  { %v2222_v60 = vadd.f32 1.0, %v4227_v38 }
 0x623   :  { %v2259_v20 = vmul.f32 0.5, %v2221_v46 }
 0x624   :  { %v2260_v48 = vmul.f32 0.5, %v2222_v60 }
 0x640   :  { %2628 = vmax.xlane.f32.xlu0 %v2627_v12  ;;  %v2037_v12 = vpop.xlane.xlu0 %2036 }
 0x641   :  { %v2109_v28 = vadd.f32 %v6299_v27, %v2037_v12 }
 0x644   :  { %2631 = vmax.xlane.f32.xlu1 %v2630_v41  ;;  %v2039_v41 = vpop.xlane.xlu1 %2038  ;;  %v2041_v54 = vpop.xlane.xlu0 %2040 }
 0x645   :  { %v2110_v53 = vadd.f32 %v6299_v27, %v2039_v41 }
 0x647   :  { %v2148_v3 = vmul.f32 0.5, %v2110_v53 }
 0x655   :  { %3379 = vrot.lane.b32.xlu1 %v2255_v17, %s4734_s14  ;;  %v2147_v17 = vmul.f32 0.5, %v2109_v28  ;;  %v7414_v28 = vld [vmem:[#allocation112_spill] sm:$0xff] }
 0x656   :  { %3381 = vrot.lane.b32.xlu0 %v2256_v51, %s4734_s14  ;;  %v7410_v51 = vld [vmem:[#allocation109_spill] sm:$0xff]  ;;  %v6433_v16 = vadd.f32 %v6193_v11, %v7414_v28 }
 0x657   :  { %v6406_v43 = vadd.f32 %v6193_v11, %v7410_v51  ;;  %4228 = vtanh.f32 %v2147_v17  ;;  %v7416_v51 = vld [vmem:[#allocation113_spill] sm:$0xff] }
 0x658   :  { %4230 = vtanh.f32 %v2148_v3  ;;  %7415 = vst [vmem:[#allocation108_spill] sm:$0xff] %v6433_v16  ;;  %v6438_v3 = vadd.f32 %v6193_v11, %v7416_v51  ;;  %v7420_v51 = vld [vmem:[#allocation116_spill] sm:$0xff] }
 0x659   :  { %v2648_v24 = vsel %vm318_vm1, %v6406_v43, -inf }
 0x661   :  { %v4229_v45 = vpop.eup %4228 }
 0x675   :  { %2634 = vmax.xlane.f32.xlu0 %v2633_v0  ;;  %v4231_v0 = vpop.eup %4230 }
 0x676   :  { %v2224_v52 = vadd.f32 1.0, %v4231_v0 }
 0x678   :  { %v2262_v21 = vmul.f32 0.5, %v2224_v52 }
 0x679   :  { %2637 = vmax.xlane.f32.xlu1 %v2636_v7  ;;  %v2223_v7 = vadd.f32 1.0, %v4229_v45  ;;  %v2660_v45 = vsel %vm318_vm1, %v6438_v3, -inf }
 0x67b   :  { %v2261_v35 = vmul.f32 0.5, %v2223_v7 }
 0x68a   :  { %3383 = vrot.lane.b32.xlu1 %v2257_v6, %s4734_s14  ;;  %v2043_v6 = vpop.xlane.xlu1 %2042 }
 0x68b   :  { %3385 = vrot.lane.b32.xlu0 %v2258_v42, %s4734_s14  ;;  %v2111_v42 = vadd.f32 %v6299_v27, %v2041_v54  ;;  %v2112_v47 = vadd.f32 %v6299_v27, %v2043_v6 }
 0x68d   :  { %v2149_v30 = vmul.f32 0.5, %v2111_v42  ;;  %v2150_v8 = vmul.f32 0.5, %v2112_v47  ;;  %v7417_v47 = vld [vmem:[#allocation114_spill] sm:$0xff] }
 0x68e   :  { %v2047_v12 = vpop.xlane.xlu1 %2046 }
 0x68f   :  { %4232 = vtanh.f32 %v2149_v30  ;;  %v2114_v53 = vadd.f32 %v6299_v27, %v2047_v12  ;;  %v6449_v30 = vadd.f32 %v6193_v11, %v7417_v47 }
 0x690   :  { %4234 = vtanh.f32 %v2150_v8 }
 0x691   :  { %7418 = vst [vmem:[#allocation109_spill] sm:$0xff] %v6449_v30 }
 0x692   :  { %v2051_v42 = vpop.xlane.xlu1 %2050 }
 0x693   :  { %v2116_v19 = vadd.f32 %v6299_v27, %v2051_v42 }
 0x6aa   :  { %2640 = vmax.xlane.f32.xlu0 %v2639_v40  ;;  %v2654_v40 = vsel %vm318_vm1, %v6422_v23, -inf }
 0x6ae   :  { %2643 = vmax.xlane.f32.xlu1 %v2642_v29  ;;  %v4233_v29 = vpop.eup %4232 }
 0x6af   :  { %v4235_v5 = vpop.eup %4234  ;;  %v2225_v38 = vadd.f32 1.0, %v4233_v29  ;;  %v2154_v29 = vmul.f32 0.5, %v2116_v19 }
 0x6b0   :  { %v2226_v46 = vadd.f32 1.0, %v4235_v5  ;;  %v2663_v5 = vsel %vm318_vm1, %v6449_v30, -inf }
 0x6b1   :  { %v2263_v60 = vmul.f32 0.5, %v2225_v38 }
 0x6bf   :  { %3387 = vrot.lane.b32.xlu1 %v2259_v20, %s4734_s14  ;;  %v2264_v20 = vmul.f32 0.5, %v2226_v46 }
 0x6c0   :  { %3389 = vrot.lane.b32.xlu0 %v2260_v48, %s4734_s14  ;;  %v2045_v48 = vpop.xlane.xlu0 %2044 }
 0x6c1   :  { %v2113_v41 = vadd.f32 %v6299_v27, %v2045_v48 }
 0x6c3   :  { %v2151_v17 = vmul.f32 0.5, %v2113_v41 }
 0x6c4   :  { %v2049_v6 = vpop.xlane.xlu0 %2048 }
 0x6c5   :  { %4236 = vtanh.f32 %v2151_v17  ;;  %v2115_v62 = vadd.f32 %v6299_v27, %v2049_v6 }
 0x6c7   :  { %v2153_v8 = vmul.f32 0.5, %v2115_v62 }
 0x6c8   :  { %v2053_v28 = vpop.xlane.xlu0 %2052 }
 0x6c9   :  { %v2117_v17 = vadd.f32 %v6299_v27, %v2053_v28 }
 0x6cf   :  { %v4237_v0 = vpop.eup %4236 }
 0x6d0   :  { %v2227_v52 = vadd.f32 1.0, %v4237_v0  ;;  %v7422_v0 = vld [vmem:[#allocation117_spill] sm:$0xff] }
 0x6df   :  { %2646 = vmax.xlane.f32.xlu0 %v2645_v61  ;;  %v2152_v61 = vmul.f32 0.5, %v2114_v53  ;;  %v2055_v53 = vpop.xlane.xlu1 %2054 }
 0x6e1   :  { %4238 = vtanh.f32 %v2152_v61  ;;  %v6465_v61 = vadd.f32 %v6193_v11, %v7420_v51 }
 0x6e2   :  { %4240 = vtanh.f32 %v2153_v8  ;;  %v2057_v8 = vpop.xlane.xlu0 %2056 }
 0x6e3   :  { %2649 = vmax.xlane.f32.xlu1 %v2648_v24  ;;  %v2657_v24 = vsel %vm318_vm1, %v6433_v16, -inf  ;;  %4242 = vtanh.f32 %v2154_v29  ;;  %7421 = vst [vmem:[#allocation110_spill] sm:$0xff] %v6465_v61  ;;  %v2119_v29 = vadd.f32 %v6299_v27, %v2057_v8  ;;  %v7429_v8 = vld [vmem:[#allocation120_spill] sm:$0xff] }
 0x6eb   :  { %v4239_v7 = vpop.eup %4238 }
 0x6ec   :  { %v4241_v46 = vpop.eup %4240 }
 0x6f4   :  { %3391 = vrot.lane.b32.xlu1 %v2261_v35, %s4734_s14  ;;  %v2228_v35 = vadd.f32 1.0, %v4239_v7  ;;  %v6470_v7 = vadd.f32 %v6193_v11, %v7422_v0 }
 0x6f5   :  { %3393 = vrot.lane.b32.xlu0 %v2262_v21, %s4734_s14  ;;  %v2265_v21 = vmul.f32 0.5, %v2227_v52 }
 0x6f6   :  { %v2266_v54 = vmul.f32 0.5, %v2228_v35  ;;  %7423 = vst [vmem:[#allocation111_spill] sm:$0xff] %v6470_v7  ;;  %v2669_v35 = vsel %vm318_vm1, %v6465_v61, -inf }
 0x714   :  { %2652 = vmax.xlane.f32.xlu0 %v2651_v50  ;;  %v7419_v50 = vld [vmem:[#allocation115_spill] sm:$0xff] }
 0x718   :  { %2655 = vmax.xlane.f32.xlu1 %v2654_v40  ;;  %v6454_v40 = vadd.f32 %v6193_v11, %v7419_v50  ;;  %v2059_v50 = vpop.xlane.xlu1 %2058 }
 0x71a   :  { %v2666_v38 = vsel %vm318_vm1, %v6454_v40, -inf }
 0x71c   :  { %v2063_v0 = vpop.xlane.xlu1 %2062 }
 0x729   :  { %3395 = vrot.lane.b32.xlu1 %v2263_v60, %s4734_s14  ;;  %v4243_v60 = vpop.eup %4242 }
 0x72a   :  { %3397 = vrot.lane.b32.xlu0 %v2264_v20, %s4734_s14  ;;  %v2229_v20 = vadd.f32 1.0, %v4241_v46  ;;  %v2230_v48 = vadd.f32 1.0, %v4243_v60  ;;  %v2120_v46 = vadd.f32 %v6299_v27, %v2059_v50  ;;  %v2157_v60 = vmul.f32 0.5, %v2119_v29 }
 0x72b   :  { %v6503_v50 = vadd.f32 %v6193_v11, %v7429_v8 }
 0x72c   :  { %v2267_v12 = vmul.f32 0.5, %v2229_v20  ;;  %v2268_v41 = vmul.f32 0.5, %v2230_v48  ;;  %v6486_v20 = vadd.f32 %v6193_v11, %v6148_v4  ;;  %v2158_v48 = vmul.f32 0.5, %v2120_v46  ;;  %v2061_v4 = vpop.xlane.xlu0 %2060 }
 0x72d   :  { %7430 = vst [vmem:[#allocation115_spill] sm:$0xff] %v6503_v50 }
 0x72e   :  { %7426 = vst [vmem:[#allocation113_spill] sm:$0xff] %v6486_v20 }
 0x749   :  { %2658 = vmax.xlane.f32.xlu0 %v2657_v24  ;;  %v2118_v24 = vadd.f32 %v6299_v27, %v2055_v53 }
 0x74b   :  { %v2156_v52 = vmul.f32 0.5, %v2118_v24 }
 0x74d   :  { %2661 = vmax.xlane.f32.xlu1 %v2660_v45  ;;  %v2155_v45 = vmul.f32 0.5, %v2117_v17 }
 0x74f   :  { %4244 = vtanh.f32 %v2155_v45 }
 0x750   :  { %4246 = vtanh.f32 %v2156_v52  ;;  %v2065_v52 = vpop.xlane.xlu0 %2064 }
 0x751   :  { %4248 = vtanh.f32 %v2157_v60 }
 0x752   :  { %4250 = vtanh.f32 %v2158_v48  ;;  %v2684_v48 = vsel %vm318_vm1, %v6503_v50, -inf }
 0x75e   :  { %3399 = vrot.lane.b32.xlu1 %v2265_v21, %s4734_s14  ;;  %v2672_v21 = vsel %vm318_vm1, %v6470_v7, -inf }
 0x75f   :  { %3401 = vrot.lane.b32.xlu0 %v2266_v54, %s4734_s14  ;;  %v4245_v54 = vpop.eup %4244 }
 0x760   :  { %v4247_v6 = vpop.eup %4246  ;;  %v2231_v42 = vadd.f32 1.0, %v4245_v54  ;;  %v7427_v54 = vld [vmem:[#allocation119_spill] sm:$0xff] }
 0x761   :  { %v2232_v62 = vadd.f32 1.0, %v4247_v6  ;;  %v4249_v28 = vpop.eup %4248  ;;  %v6497_v6 = vadd.f32 %v6193_v11, %v7427_v54 }
 0x762   :  { %v2269_v47 = vmul.f32 0.5, %v2231_v42  ;;  %v4251_v53 = vpop.eup %4250  ;;  %v2233_v17 = vadd.f32 1.0, %v4249_v28  ;;  %v2122_v42 = vadd.f32 %v6299_v27, %v2063_v0 }
 0x763   :  { %v2270_v19 = vmul.f32 0.5, %v2232_v62  ;;  %v2234_v51 = vadd.f32 1.0, %v4251_v53  ;;  %7428 = vst [vmem:[#allocation114_spill] sm:$0xff] %v6497_v6 }
 0x764   :  { %v2271_v24 = vmul.f32 0.5, %v2233_v17  ;;  %v2160_v29 = vmul.f32 0.5, %v2122_v42 }
 0x765   :  { %v2272_v45 = vmul.f32 0.5, %v2234_v51 }
 0x77e   :  { %2664 = vmax.xlane.f32.xlu0 %v2663_v5  ;;  %v7424_v5 = vld [vmem:[#allocation118_spill] sm:$0xff] }
 0x782   :  { %2667 = vmax.xlane.f32.xlu1 %v2666_v38  ;;  %v6481_v38 = vadd.f32 %v6193_v11, %v7424_v5  ;;  %v2681_v5 = vsel %vm318_vm1, %v6497_v6, -inf }
 0x784   :  { %7425 = vst [vmem:[#allocation112_spill] sm:$0xff] %v6481_v38 }
 0x793   :  { %3403 = vrot.lane.b32.xlu1 %v2267_v12, %s4734_s14  ;;  %v2675_v12 = vsel %vm318_vm1, %v6481_v38, -inf }
 0x794   :  { %3405 = vrot.lane.b32.xlu0 %v2268_v41, %s4734_s14  ;;  %v2678_v41 = vsel %vm318_vm1, %v6486_v20, -inf }
 0x7b3   :  { %2670 = vmax.xlane.f32.xlu0 %v2669_v35  ;;  %v2121_v35 = vadd.f32 %v6299_v27, %v2061_v4 }
 0x7b5   :  { %v2159_v62 = vmul.f32 0.5, %v2121_v35 }
 0x7b7   :  { %2673 = vmax.xlane.f32.xlu1 %v2672_v21  ;;  %v2067_v21 = vpop.xlane.xlu1 %2066  ;;  %4252 = vtanh.f32 %v2159_v62 }
 0x7b8   :  { %4254 = vtanh.f32 %v2160_v29 }
 0x7bb   :  { %v2578_v46 = vpop.xlane.xlu1 %2577 }
 0x7c1   :  { %v4253_v11 = vpop.eup %4252 }
 0x7c2   :  { %v4255_v17 = vpop.eup %4254  ;;  %v2235_v51 = vadd.f32 1.0, %v4253_v11 }
 0x7c8   :  { %3407 = vrot.lane.b32.xlu1 %v2269_v47, %s4734_s14  ;;  %v2123_v47 = vadd.f32 %v6299_v27, %v2065_v52  ;;  %v2273_v52 = vmul.f32 0.5, %v2235_v51 }
 0x7c9   :  { %3409 = vrot.lane.b32.xlu0 %v2270_v19, %s4734_s14  ;;  %v2575_v19 = vpop.xlane.xlu0 %2574 }
 0x7ca   :  { %v2161_v60 = vmul.f32 0.5, %v2123_v47 }
 0x7cc   :  { %4256 = vtanh.f32 %v2161_v60 }
 0x7e8   :  { %2676 = vmax.xlane.f32.xlu0 %v2675_v12  ;;  %v2069_v12 = vpop.xlane.xlu0 %2068 }
 0x7ec   :  { %2679 = vmax.xlane.f32.xlu1 %v2678_v41  ;;  %v6509_v41 = vpop.xlane.xlu1 %2070  ;;  %v6511_v28 = vpop.xlane.xlu0 %2580 }
 0x7f0   :  { %v6513_v53 = vpop.xlane.xlu1 %2583  ;;  %v6515_v4 = vpop.xlane.xlu0 %2072 }
 0x7f4   :  { %v6517_v0 = vpop.xlane.xlu1 %2074  ;;  %v6520_v42 = vpop.xlane.xlu0 %2586 }
 0x7f8   :  { %v6523_v47 = vpop.xlane.xlu1 %2589  ;;  %v6526_v8 = vpop.xlane.xlu0 %2076 }
 0x7fc   :  { %v6528_v29 = vpop.xlane.xlu1 %2078  ;;  %v6531_v60 = vpop.xlane.xlu0 %2592 }
 0x7fd   :  { %3411 = vrot.lane.b32.xlu1 %v2271_v24, %s4734_s14  ;;  %v4257_v24 = vpop.eup %4256 }
 0x7fe   :  { %3413 = vrot.lane.b32.xlu0 %v2272_v45, %s4734_s14  ;;  %v2236_v45 = vadd.f32 1.0, %v4255_v17  ;;  %v2237_v35 = vadd.f32 1.0, %v4257_v24  ;;  %v2688_v17 = vsub.f32 %v6205_v63, %v2578_v46 }
 0x800   :  { %v2274_v54 = vmul.f32 0.5, %v2236_v45  ;;  %v2275_v62 = vmul.f32 0.5, %v2237_v35  ;;  %v6533_v11 = vpop.xlane.xlu1 %2595  ;;  %v6536_v51 = vpop.xlane.xlu0 %2080  ;;  %v2727_v45 = vmul.f32 1.442695, %v2688_v17  ;;  %v2124_v35 = vadd.f32 %v6299_v27, %v2067_v21 }
 0x804   :  { %v6538_v24 = vpop.xlane.xlu1 %2082 }
 0x81d   :  { %2682 = vmax.xlane.f32.xlu0 %v2681_v5  ;;  %v2687_v5 = vsub.f32 %v6200_v57, %v2575_v19  ;;  %v2125_v19 = vadd.f32 %v6299_v27, %v2069_v12 }
 0x821   :  { %2685 = vmax.xlane.f32.xlu1 %v2684_v48  ;;  %v2725_v48 = vmul.f32 1.442695, %v2687_v5 }
 0x823   :  { %4258 = vpow2.f32 %v2725_v48  ;;  %v2163_v48 = vmul.f32 0.5, %v2125_v19 }
 0x824   :  { %4260 = vpow2.f32 %v2727_v45 }
 0x82d   :  { %v6545_v57 = vpop.eup %4258 }
 0x82e   :  { %v2801_v63 = vsel %vm318_vm1, %v6545_v57, 0.0  ;;  %v6554_v17 = vpop.eup %4260 }
 0x82f   :  { %v2804_v12 = vsel %vm318_vm1, %v6554_v17, 0.0 }
 0x832   :  { %3415 = vrot.lane.b32.xlu1 %v2273_v52, %s4734_s14  ;;  %v6540_v52 = vpop.xlane.xlu0 %2598 }
 0x833   :  { %3417 = vrot.lane.b32.xlu0 %v2274_v54, %s4734_s14  ;;  %v6543_v54 = vpop.xlane.xlu1 %2601 }
 0x836   :  { %3419 = vrot.lane.b32.xlu1 %v2275_v62, %s4734_s14  ;;  %v2162_v62 = vmul.f32 0.5, %v2124_v35  ;;  %v6548_v5 = vpop.xlane.xlu0 %2084 }
 0x837   :  { %v6552_v46 = vpop.xlane.xlu1 %2086 }
 0x838   :  { %4262 = vtanh.f32 %v2162_v62 }
 0x839   :  { %4264 = vtanh.f32 %v2163_v48 }
 0x83a   :  { %v6556_v21 = vpop.xlane.xlu0 %2604 }
 0x83b   :  { %v6558_v45 = vpop.xlane.xlu1 %2607 }
 0x83e   :  { %v6562_v35 = vpop.xlane.xlu0 %2088 }
 0x83f   :  { %7431 = vst [vmem:[#allocation116_spill] sm:$0xff] %v6562_v35  ;;  %v6564_v6 = vpop.xlane.xlu1 %2090 }
 0x840   :  { %7432 = vst [vmem:[#allocation117_spill] sm:$0xff] %v6564_v6 }
 0x842   :  { %v6566_v38 = vpop.xlane.xlu0 %2610 }
 0x843   :  { %7433 = vst [vmem:[#allocation118_spill] sm:$0xff] %v6566_v38  ;;  %v6568_v61 = vpop.xlane.xlu1 %2613 }
 0x846   :  { %v6570_v48 = vpop.xlane.xlu0 %2616 }
 0x847   :  { %7434 = vst [vmem:[#allocation119_spill] sm:$0xff] %v6570_v48  ;;  %v6573_v36 = vpop.xlane.xlu1 %2619 }
 0x84b   :  { %v6578_v6 = vpop.permute.xlu1 %3371 }
 0x852   :  { %2802 = vadd.xlane.f32.xlu0 %v2801_v63  ;;  %v4263_v63 = vpop.eup %4262 }
 0x853   :  { %v4265_v19 = vpop.eup %4264  ;;  %v2238_v62 = vadd.f32 1.0, %v4263_v63  ;;  %v2689_v63 = vsub.f32 %v6214_v10, %v6511_v28  ;;  %v2126_v28 = vadd.f32 %v6299_v27, %v6509_v41 }
 0x854   :  { %v2239_v30 = vadd.f32 1.0, %v4265_v19  ;;  %v6584_v19 = vpop.xlane.xlu1 %2625 }
 0x855   :  { %v2276_v16 = vmul.f32 0.5, %v2238_v62  ;;  %v2729_v62 = vmul.f32 1.442695, %v2689_v63 }
 0x856   :  { %v2277_v25 = vmul.f32 0.5, %v2239_v30 }
 0x857   :  { %4266 = vpow2.f32 %v2729_v62  ;;  %v2164_v62 = vmul.f32 0.5, %v2126_v28 }
 0x858   :  { %v6590_v30 = vpop.permute.xlu1 %3375 }
 0x85a   :  { %2805 = vadd.xlane.f32.xlu1 %v2804_v12  ;;  %v6576_v12 = vpop.permute.xlu0 %3373 }
 0x85c   :  { %v6594_v49 = vpop.xlane.xlu1 %2631 }
 0x85e   :  { %v6582_v1 = vpop.xlane.xlu0 %2622 }
 0x85f   :  { %7435 = vst [vmem:[#allocation120_spill] sm:$0xff] %v6582_v1 }
 0x860   :  { %v6602_v50 = vpop.permute.xlu1 %3379 }
 0x861   :  { %v6600_v63 = vpop.eup %4266 }
 0x862   :  { %v6586_v35 = vpop.permute.xlu0 %3377 }
 0x868   :  { %3421 = vrot.lane.b32.xlu0 %v2276_v16, %s4734_s14  ;;  %v2690_v16 = vsub.f32 %v6219_v37, %v6513_v53  ;;  %v2127_v37 = vadd.f32 %v6299_v27, %v6515_v4 }
 0x86a   :  { %v2731_v55 = vmul.f32 1.442695, %v2690_v16  ;;  %v2807_v16 = vsel %vm318_vm1, %v6600_v63, 0.0 }
 0x86b   :  { %3423 = vrot.lane.b32.xlu1 %v2277_v25, %s4734_s14  ;;  %v6592_v25 = vpop.xlane.xlu0 %2628 }
 0x86c   :  { %7436 = vst [vmem:[#allocation126_spill] sm:$0xff] %v6592_v25  ;;  %4268 = vpow2.f32 %v2731_v55  ;;  %v6610_v25 = vpop.xlane.xlu1 %2637  ;;  %v2165_v55 = vmul.f32 0.5, %v2127_v37 }
 0x86d   :  { %4270 = vtanh.f32 %v2164_v62 }
 0x86e   :  { %4272 = vtanh.f32 %v2165_v55 }
 0x86f   :  { %v6596_v10 = vpop.permute.xlu0 %3381 }
 0x870   :  { %v6616_v1 = vpop.permute.xlu1 %3383 }
 0x871   :  { %7439 = vst [vmem:[#allocation129_spill] sm:$0xff] %v6616_v1 }
 0x873   :  { %v6606_v53 = vpop.xlane.xlu0 %2634 }
 0x874   :  { %7437 = vst [vmem:[#allocation127_spill] sm:$0xff] %v6606_v53  ;;  %v6622_v28 = vpop.xlane.xlu1 %2643 }
 0x876   :  { %v6612_v59 = vpop.eup %4268 }
 0x877   :  { %v6614_v41 = vpop.permute.xlu0 %3385  ;;  %v2810_v4 = vsel %vm318_vm1, %v6612_v59, 0.0  ;;  %v4271_v15 = vpop.eup %4270 }
 0x878   :  { %7438 = vst [vmem:[#allocation128_spill] sm:$0xff] %v6614_v41  ;;  %v4273_v37 = vpop.eup %4272  ;;  %v2240_v62 = vadd.f32 1.0, %v4271_v15 }
 0x879   :  { %v2241_v55 = vadd.f32 1.0, %v4273_v37 }
 0x87a   :  { %v2278_v41 = vmul.f32 0.5, %v2240_v62 }
 0x87b   :  { %v6620_v53 = vpop.xlane.xlu0 %2640  ;;  %v2279_v39 = vmul.f32 0.5, %v2241_v55 }
 0x87c   :  { %7440 = vst [vmem:[#allocation130_spill] sm:$0xff] %v6620_v53 }
 0x87f   :  { %v6624_v48 = vpop.permute.xlu0 %3389 }
 0x880   :  { %7441 = vst [vmem:[#allocation131_spill] sm:$0xff] %v6624_v48 }
 0x883   :  { %v6628_v20 = vpop.xlane.xlu0 %2646 }
 0x884   :  { %7443 = vst [vmem:[#allocation133_spill] sm:$0xff] %v6628_v20 }
 0x887   :  { %2808 = vadd.xlane.f32.xlu0 %v2807_v16  ;;  %v6626_v16 = vpop.permute.xlu1 %3387  ;;  %v6633_v53 = vpop.permute.xlu0 %3393 }
 0x888   :  { %7442 = vst [vmem:[#allocation132_spill] sm:$0xff] %v6626_v16  ;;  %7444 = vst [vmem:[#allocation134_spill] sm:$0xff] %v6633_v53  ;;  %v2691_v16 = vsub.f32 %v6232_v18, %v6520_v42  ;;  %v2128_v18 = vadd.f32 %v6299_v27, %v6517_v0 }
 0x88a   :  { %v2733_v62 = vmul.f32 1.442695, %v2691_v16 }
 0x88b   :  { %v6630_v1 = vpop.xlane.xlu1 %2649  ;;  %v6638_v48 = vpop.xlane.xlu0 %2652 }
 0x88c   :  { %7446 = vst [vmem:[#allocation136_spill] sm:$0xff] %v6638_v48  ;;  %4274 = vpow2.f32 %v2733_v62 }
 0x88f   :  { %2811 = vadd.xlane.f32.xlu1 %v2810_v4  ;;  %v6636_v4 = vpop.permute.xlu1 %3391  ;;  %v6644_v37 = vpop.permute.xlu0 %3397 }
 0x890   :  { %7445 = vst [vmem:[#allocation135_spill] sm:$0xff] %v6636_v4  ;;  %7447 = vst [vmem:[#allocation137_spill] sm:$0xff] %v6644_v37 }
 0x893   :  { %v6640_v15 = vpop.xlane.xlu1 %2655 }
 0x896   :  { %v6662_v16 = vpop.eup %4274 }
 0x897   :  { %v6646_v20 = vpop.permute.xlu1 %3395  ;;  %v2813_v62 = vsel %vm318_vm1, %v6662_v16, 0.0 }
 0x898   :  { %7448 = vst [vmem:[#allocation138_spill] sm:$0xff] %v6646_v20 }
 0x89b   :  { %v6652_v55 = vpop.xlane.xlu1 %2661 }
 0x89d   :  { %3425 = vrot.lane.b32.xlu0 %v2278_v41, %s4734_s14  ;;  %v6648_v41 = vpop.xlane.xlu0 %2658 }
 0x89e   :  { %7449 = vst [vmem:[#allocation139_spill] sm:$0xff] %v6648_v41 }
 0x89f   :  { %v6656_v48 = vpop.permute.xlu1 %3399 }
 0x8a0   :  { %3427 = vrot.lane.b32.xlu1 %v2279_v39, %s4734_s14  ;;  %v2692_v39 = vsub.f32 %v6237_v58, %v6523_v47  ;;  %7451 = vst [vmem:[#allocation141_spill] sm:$0xff] %v6656_v48  ;;  %v2129_v58 = vadd.f32 %v6299_v27, %v6526_v8  ;;  %v2166_v47 = vmul.f32 0.5, %v2128_v18 }
 0x8a1   :  { %v6654_v4 = vpop.permute.xlu0 %3401 }
 0x8a2   :  { %v2735_v53 = vmul.f32 1.442695, %v2692_v39  ;;  %7450 = vst [vmem:[#allocation140_spill] sm:$0xff] %v6654_v4 }
 0x8a3   :  { %v6664_v20 = vpop.xlane.xlu1 %2667 }
 0x8a4   :  { %4276 = vpow2.f32 %v2735_v53  ;;  %v2167_v53 = vmul.f32 0.5, %v2129_v58 }
 0x8a5   :  { %v6660_v42 = vpop.xlane.xlu0 %2664  ;;  %4278 = vtanh.f32 %v2166_v47 }
 0x8a6   :  { %7452 = vst [vmem:[#allocation142_spill] sm:$0xff] %v6660_v42  ;;  %4280 = vtanh.f32 %v2167_v53 }
 0x8a7   :  { %v6672_v48 = vpop.permute.xlu1 %3403 }
 0x8a8   :  { %7454 = vst [vmem:[#allocation144_spill] sm:$0xff] %v6672_v48 }
 0x8a9   :  { %v6670_v39 = vpop.permute.xlu0 %3405 }
 0x8aa   :  { %7453 = vst [vmem:[#allocation143_spill] sm:$0xff] %v6670_v39 }
 0x8ab   :  { %v6678_v37 = vpop.xlane.xlu1 %2673 }
 0x8ad   :  { %v6676_v4 = vpop.xlane.xlu0 %2670 }
 0x8ae   :  { %v6674_v0 = vpop.eup %4276  ;;  %7455 = vst [vmem:[#allocation145_spill] sm:$0xff] %v6676_v4 }
 0x8af   :  { %v2816_v8 = vsel %vm318_vm1, %v6674_v0, 0.0  ;;  %v6684_v42 = vpop.permute.xlu1 %3407 }
 0x8b0   :  { %7457 = vst [vmem:[#allocation147_spill] sm:$0xff] %v6684_v42 }
 0x8b1   :  { %v6682_v18 = vpop.permute.xlu0 %3409 }
 0x8b2   :  { %7456 = vst [vmem:[#allocation146_spill] sm:$0xff] %v6682_v18 }
 0x8b3   :  { %v6688_v39 = vpop.xlane.xlu1 %2679 }
 0x8b5   :  { %v6686_v58 = vpop.xlane.xlu0 %2676 }
 0x8b7   :  { %v6693_v7 = vpop.permute.xlu1 %3411 }
 0x8b8   :  { %7459 = vst [vmem:[#allocation149_spill] sm:$0xff] %v6693_v7 }
 0x8b9   :  { %v6690_v53 = vpop.permute.xlu0 %3413 }
 0x8ba   :  { %7458 = vst [vmem:[#allocation148_spill] sm:$0xff] %v6690_v53 }
 0x8bb   :  { %v6698_v42 = vpop.xlane.xlu1 %2685 }
 0x8bc   :  { %2814 = vadd.xlane.f32.xlu0 %v2813_v62  ;;  %v4279_v62 = vpop.eup %4278 }
 0x8bd   :  { %v4281_v47 = vpop.eup %4280  ;;  %v2242_v48 = vadd.f32 1.0, %v4279_v62  ;;  %v2693_v62 = vsub.f32 %v6246_v32, %v6531_v60  ;;  %v2130_v60 = vadd.f32 %v6299_v27, %v6528_v29 }
 0x8be   :  { %v2243_v41 = vadd.f32 1.0, %v4281_v47 }
 0x8bf   :  { %v2280_v4 = vmul.f32 0.5, %v2242_v48  ;;  %v6704_v47 = vpop.permute.xlu1 %3415  ;;  %v2737_v48 = vmul.f32 1.442695, %v2693_v62 }
 0x8c0   :  { %v2281_v38 = vmul.f32 0.5, %v2243_v41 }
 0x8c3   :  { %v6708_v41 = vpop.permute.xlu1 %3419 }
 0x8c4   :  { %2817 = vadd.xlane.f32.xlu1 %v2816_v8  ;;  %v6695_v8 = vpop.xlane.xlu0 %2682  ;;  %7461 = vst [vmem:[#allocation151_spill] sm:$0xff] %v6708_v41 }
 0x8c5   :  { %7460 = vst [vmem:[#allocation150_spill] sm:$0xff] %v6695_v8 }
 0x8c8   :  { %v6702_v18 = vpop.permute.xlu0 %3417 }
 0x8d2   :  { %3429 = vrot.lane.b32.xlu0 %v2280_v4, %s4734_s14  ;;  %v2694_v4 = vsub.f32 %v6251_v2, %v6533_v11  ;;  %v7463_v2 = vld [vmem:[#allocation63_spill] sm:$0xff] }
 0x8d4   :  { %v2739_v7 = vmul.f32 1.442695, %v2694_v4  ;;  %v2131_v4 = vadd.f32 %v6299_v27, %v6536_v51 }
 0x8d5   :  { %3431 = vrot.lane.b32.xlu1 %v2281_v38, %s4734_s14 }
 0x8d6   :  { %v2169_v41 = vmul.f32 0.5, %v2131_v4 }
 0x8df   :  { %v2803_v53 = vpop.xlane.xlu0 %2802 }
 0x8e0   :  { %4282 = vrcp.f32 %v2803_v53  ;;  %v7462_v53 = vld [vmem:[#allocation29_spill] sm:$0xff] }
 0x8e1   :  { %4284 = vpow2.f32 %v2737_v48 }
 0x8e7   :  { %v2806_v38 = vpop.xlane.xlu1 %2805 }
 0x8e8   :  { %4286 = vrcp.f32 %v2806_v38 }
 0x8e9   :  { %4288 = vpow2.f32 %v2739_v7 }
 0x8ea   :  { %v4283_v8 = vpop.eup %4282 }
 0x8eb   :  { %v2991_v32 = vmul.f32 %v4283_v8, %v6545_v57  ;;  %v6713_v62 = vpop.eup %4284  ;;  %v2168_v57 = vmul.f32 0.5, %v2130_v60 }
 0x8ec   :  { %v2819_v29 = vsel %vm318_vm1, %v6713_v62, 0.0 }
 0x8ed   :  { %v3485_v48 = vsel %vm318_vm1, %v2991_v32, %v7462_v53  ;;  %4290 = vtanh.f32 %v2168_v57 }
 0x8ee   :  { %v3523_v11 = vsel %vm1939_vm4, %v3485_v48, %v7463_v2  ;;  %v7464_v48 = vld [vmem:[#allocation30_spill] sm:$0xff]  ;;  %v7465_v2 = vld [vmem:[#allocation64_spill] sm:$0xff]  ;;  %4292 = vtanh.f32 %v2169_v41  ;;  %v6742_v41 = vpop.permute.xlu0 %3421 }
 0x8ef   :  { %v3562_v7 = vsel %vm3561_vm5, %v3523_v11, %v6578_v6 }
 0x8f0   :  { %v3601_v8 = vsel %vm3600_vm6, %v3562_v7, 0.0 }
 0x8f1   :  { %3639 = vst [vmem:[#allocation21] sm:$0xff] %v3601_v8  ;;  %2820 = vadd.xlane.f32.xlu0 %v2819_v29 }
 0x8f2   :  { %v4287_v38 = vpop.eup %4286 }
 0x8f3   :  { %v2992_v32 = vmul.f32 %v4287_v38, %v6554_v17  ;;  %v6727_v53 = vpop.eup %4288 }
 0x8f4   :  { %v2822_v4 = vsel %vm318_vm1, %v6727_v53, 0.0 }
 0x8f5   :  { %v3486_v51 = vsel %vm318_vm1, %v2992_v32, %v7464_v48 }
 0x8f6   :  { %v3524_v6 = vsel %vm1939_vm4, %v3486_v51, %v7465_v2  ;;  %v2696_v51 = vsub.f32 %v6269_v9, %v6543_v54  ;;  %v6746_v2 = vpop.permute.xlu1 %3423  ;;  %v2133_v54 = vadd.f32 %v6299_v27, %v6548_v5  ;;  %v7469_v5 = vld [vmem:[#allocation68_spill] sm:$0xff] }
 0x8f7   :  { %v3563_v60 = vsel %vm3561_vm5, %v3524_v6, %v6576_v12  ;;  %v4291_v17 = vpop.eup %4290  ;;  %v2695_v12 = vsub.f32 %v6264_v26, %v6540_v52  ;;  %v2132_v26 = vadd.f32 %v6299_v27, %v6538_v24 }
 0x8f8   :  { %v3602_v11 = vsel %vm3600_vm6, %v3563_v60, 0.0  ;;  %v4293_v7 = vpop.eup %4292  ;;  %v2244_v57 = vadd.f32 1.0, %v4291_v17  ;;  %v2743_v6 = vmul.f32 1.442695, %v2696_v51  ;;  %v7466_v17 = vld [vmem:[#allocation32_spill] sm:$0xff]  ;;  %v7468_v51 = vld [vmem:[#allocation31_spill] sm:$0xff] }
 0x8f9   :  { %3640 = vst [vmem:[#allocation21 + $0x8] sm:$0xff] %v3602_v11  ;;  %2823 = vadd.xlane.f32.xlu1 %v2822_v4  ;;  %v2245_v8 = vadd.f32 1.0, %v4293_v7  ;;  %v2741_v32 = vmul.f32 1.442695, %v2695_v12  ;;  %v2171_v12 = vmul.f32 0.5, %v2133_v54 }
 0x8fa   :  { %v2282_v29 = vmul.f32 0.5, %v2244_v57  ;;  %v7467_v57 = vld [vmem:[#allocation67_spill] sm:$0xff] }
 0x8fb   :  { %v2283_v38 = vmul.f32 0.5, %v2245_v8 }
 0x907   :  { %3433 = vrot.lane.b32.xlu0 %v2282_v29, %s4734_s14  ;;  %v2170_v29 = vmul.f32 0.5, %v2132_v26 }
 0x90a   :  { %3435 = vrot.lane.b32.xlu1 %v2283_v38, %s4734_s14 }
 0x914   :  { %v2809_v48 = vpop.xlane.xlu0 %2808 }
 0x915   :  { %4294 = vrcp.f32 %v2809_v48 }
 0x916   :  { %4296 = vpow2.f32 %v2741_v32 }
 0x91c   :  { %v2812_v60 = vpop.xlane.xlu1 %2811 }
 0x91d   :  { %4298 = vrcp.f32 %v2812_v60 }
 0x91e   :  { %4300 = vpow2.f32 %v2743_v6 }
 0x91f   :  { %v4295_v11 = vpop.eup %4294  ;;  %4302 = vtanh.f32 %v2170_v29  ;;  %v2698_v29 = vsub.f32 %v6283_v34, %v6558_v45 }
 0x920   :  { %v2993_v4 = vmul.f32 %v4295_v11, %v6600_v63  ;;  %v6751_v52 = vpop.eup %4296  ;;  %4304 = vtanh.f32 %v2171_v12 }
 0x921   :  { %v2825_v24 = vsel %vm318_vm1, %v6751_v52, 0.0 }
 0x922   :  { %v3487_v7 = vsel %vm318_vm1, %v2993_v4, %v7466_v17 }
 0x923   :  { %v3525_v9 = vsel %vm1939_vm4, %v3487_v7, %v7467_v57 }
 0x924   :  { %v3564_v8 = vsel %vm3561_vm5, %v3525_v9, %v6590_v30  ;;  %v6780_v9 = vpop.permute.xlu0 %3425 }
 0x925   :  { %v3603_v63 = vsel %vm3600_vm6, %v3564_v8, 0.0 }
 0x926   :  { %3641 = vst [vmem:[#allocation21 + $0x10] sm:$0xff] %v3603_v63  ;;  %2826 = vadd.xlane.f32.xlu0 %v2825_v24  ;;  %v6784_v63 = vpop.permute.xlu1 %3427  ;;  %v2747_v24 = vmul.f32 1.442695, %v2698_v29  ;;  %v2710_v29 = vsub.f32 %v6390_v44, %v6622_v28  ;;  %v2714_v28 = vsub.f32 %v6422_v23, %v6640_v15  ;;  %v2718_v15 = vsub.f32 %v6454_v40, %v6664_v20 }
 0x927   :  { %v4299_v38 = vpop.eup %4298 }
 0x928   :  { %v2994_v32 = vmul.f32 %v4299_v38, %v6612_v59  ;;  %v6765_v48 = vpop.eup %4300  ;;  %v2700_v38 = vsub.f32 %v6303_v56, %v6568_v61  ;;  %v7471_v61 = vld [vmem:[#allocation71_spill] sm:$0xff] }
 0x929   :  { %v2828_v11 = vsel %vm318_vm1, %v6765_v48, 0.0  ;;  %v4303_v59 = vpop.eup %4302 }
 0x92a   :  { %v3488_v27 = vsel %vm318_vm1, %v2994_v32, %v7468_v51  ;;  %v4305_v4 = vpop.eup %4304  ;;  %v2246_v26 = vadd.f32 1.0, %v4303_v59 }
 0x92b   :  { %v3526_v30 = vsel %vm1939_vm4, %v3488_v27, %v7469_v5  ;;  %v2247_v17 = vadd.f32 1.0, %v4305_v4  ;;  %v6791_v27 = vld [vmem:[#allocation2] ss:$0 sm:$0xff]  ;;  %v7470_v5 = vld [vmem:[#allocation33_spill] sm:$0xff]  ;;  %v2706_v4 = vsub.f32 %v6356_v33, %v6594_v49 }
 0x92c   :  { %v3565_v6 = vsel %vm3561_vm5, %v3526_v30, %v6586_v35  ;;  %v2284_v7 = vmul.f32 0.5, %v2246_v26  ;;  %v2697_v35 = vsub.f32 %v6278_v14, %v6556_v21  ;;  %v2751_v14 = vmul.f32 1.442695, %v2700_v38 }
 0x92d   :  { %v3604_v60 = vsel %vm3600_vm6, %v3565_v6, 0.0  ;;  %v2285_v57 = vmul.f32 0.5, %v2247_v17  ;;  %v2702_v21 = vsub.f32 %v6318_v22, %v6573_v36  ;;  %v2134_v34 = vadd.f32 %v6791_v27, %v6552_v46  ;;  %v7473_v17 = vld [vmem:[#allocation72_spill] sm:$0xff] }
 0x92e   :  { %3642 = vst [vmem:[#allocation21 + $0x18] sm:$0xff] %v3604_v60  ;;  %2829 = vadd.xlane.f32.xlu1 %v2828_v11  ;;  %v2745_v54 = vmul.f32 1.442695, %v2697_v35  ;;  %v2704_v22 = vsub.f32 %v6338_v31, %v6584_v19  ;;  %v2708_v35 = vsub.f32 %v6374_v13, %v6610_v25  ;;  %v2712_v38 = vsub.f32 %v6406_v43, %v6630_v1 }
 0x92f   :  { %v2755_v6 = vmul.f32 1.442695, %v2702_v21  ;;  %v2779_v1 = vmul.f32 1.442695, %v2714_v28  ;;  %v2716_v43 = vsub.f32 %v6438_v3, %v6652_v55  ;;  %v2787_v3 = vmul.f32 1.442695, %v2718_v15 }
 0x930   :  { %v2759_v59 = vmul.f32 1.442695, %v2704_v22  ;;  %v2775_v44 = vmul.f32 1.442695, %v2712_v38  ;;  %v7474_v55 = vld [vmem:[#allocation111_spill] sm:$0xff]  ;;  %v7475_v22 = vld [vmem:[#allocation118_spill] sm:$0xff] }
 0x931   :  { %v2783_v23 = vmul.f32 1.442695, %v2716_v43  ;;  %v7485_v43 = vld [vmem:[#allocation127_spill] sm:$0xff] }
 0x93c   :  { %3437 = vrot.lane.b32.xlu0 %v2284_v7, %s4734_s14 }
 0x93f   :  { %3439 = vrot.lane.b32.xlu1 %v2285_v57, %s4734_s14  ;;  %v2763_v57 = vmul.f32 1.442695, %v2706_v4 }
 0x949   :  { %v2815_v8 = vpop.xlane.xlu0 %2814 }
 0x94a   :  { %4306 = vrcp.f32 %v2815_v8  ;;  %v2767_v8 = vmul.f32 1.442695, %v2708_v35  ;;  %v7481_v35 = vld [vmem:[#allocation123_spill] sm:$0xff] }
 0x94b   :  { %4308 = vpow2.f32 %v2745_v54 }
 0x951   :  { %v2818_v12 = vpop.xlane.xlu1 %2817 }
 0x952   :  { %4310 = vrcp.f32 %v2818_v12 }
 0x953   :  { %4312 = vpow2.f32 %v2747_v24  ;;  %v2771_v24 = vmul.f32 1.442695, %v2710_v29 }
 0x954   :  { %v4307_v32 = vpop.eup %4306  ;;  %4314 = vpow2.f32 %v2751_v14 }
 0x955   :  { %v2995_v51 = vmul.f32 %v4307_v32, %v6662_v16  ;;  %v6795_v45 = vpop.eup %4308  ;;  %v2172_v16 = vmul.f32 0.5, %v2134_v34  ;;  %4316 = vpow2.f32 %v2755_v6  ;;  %v2720_v6 = vsub.f32 %v7474_v55, %v6678_v37  ;;  %v6879_v29 = vpop.permute.xlu1 %3431 }
 0x956   :  { %v2831_v46 = vsel %vm318_vm1, %v6795_v45, 0.0 }
 0x957   :  { %v3489_v56 = vsel %vm318_vm1, %v2995_v51, %v7470_v5  ;;  %4318 = vtanh.f32 %v2172_v16  ;;  %v2791_v20 = vmul.f32 1.442695, %v2720_v6  ;;  %v7487_v6 = vld [vmem:[#allocation116_spill] sm:$0xff] }
 0x958   :  { %v3527_v30 = vsel %vm1939_vm4, %v3489_v56, %v7471_v61  ;;  %4320 = vpow2.f32 %v2759_v59 }
 0x959   :  { %v3566_v36 = vsel %vm3561_vm5, %v3527_v30, %v6602_v50  ;;  %v7472_v50 = vld [vmem:[#allocation34_spill] sm:$0xff]  ;;  %4322 = vpow2.f32 %v2763_v57  ;;  %v7480_v57 = vld [vmem:[#allocation120_spill] sm:$0xff] }
 0x95a   :  { %v3605_v60 = vsel %vm3600_vm6, %v3566_v36, 0.0  ;;  %4324 = vpow2.f32 %v2767_v8  ;;  %v7476_v36 = vld [vmem:[#allocation121_spill] sm:$0xff] }
 0x95b   :  { %3643 = vst [vmem:[#allocation21 + $0x20] sm:$0xff] %v3605_v60  ;;  %2832 = vadd.xlane.f32.xlu0 %v2831_v46  ;;  %4326 = vpow2.f32 %v2771_v24  ;;  %v2699_v16 = vsub.f32 %v7476_v36, %v7475_v22  ;;  %v6861_v60 = vpop.permute.xlu0 %3429  ;;  %v2135_v22 = vadd.f32 %v6791_v27, %v7487_v6  ;;  %v7488_v36 = vld [vmem:[#allocation35_spill] sm:$0xff] }
 0x95c   :  { %v4311_v11 = vpop.eup %4310  ;;  %4328 = vpow2.f32 %v2775_v44 }
 0x95d   :  { %v2996_v26 = vmul.f32 %v4311_v11, %v6674_v0  ;;  %v6811_v31 = vpop.eup %4312  ;;  %4330 = vpow2.f32 %v2779_v1  ;;  %v7477_v11 = vld [vmem:[#allocation113_spill] sm:$0xff]  ;;  %v2749_v4 = vmul.f32 1.442695, %v2699_v16 }
 0x95e   :  { %v2834_v33 = vsel %vm318_vm1, %v6811_v31, 0.0  ;;  %v6824_v0 = vpop.eup %4314  ;;  %4332 = vpow2.f32 %v2783_v23  ;;  %v2722_v59 = vsub.f32 %v7477_v11, %v6688_v39 }
 0x95f   :  { %v3490_v19 = vsel %vm318_vm1, %v2996_v26, %v7472_v50  ;;  %v2840_v13 = vsel %vm318_vm1, %v6824_v0, 0.0  ;;  %v6830_v25 = vpop.eup %4316  ;;  %4334 = vpow2.f32 %v2787_v3  ;;  %v7478_v26 = vld [vmem:[#allocation119_spill] sm:$0xff]  ;;  %v7479_v50 = vld [vmem:[#allocation122_spill] sm:$0xff] }
 0x960   :  { %v3528_v7 = vsel %vm1939_vm4, %v3490_v19, %v7473_v17  ;;  %v2846_v12 = vsel %vm318_vm1, %v6830_v25, 0.0  ;;  %v2701_v37 = vsub.f32 %v7479_v50, %v7478_v26  ;;  %v7492_v26 = vld [vmem:[#allocation129_spill] sm:$0xff] }
 0x961   :  { %v3567_v54 = vsel %vm3561_vm5, %v3528_v7, %v6596_v10  ;;  %v4319_v10 = vpop.eup %4318 }
 0x962   :  { %v3606_v49 = vsel %vm3600_vm6, %v3567_v54, 0.0  ;;  %v6836_v32 = vpop.eup %4320  ;;  %v2248_v14 = vadd.f32 1.0, %v4319_v10  ;;  %v2703_v54 = vsub.f32 %v7481_v35, %v7480_v57  ;;  %v2753_v8 = vmul.f32 1.442695, %v2701_v37 }
 0x963   :  { %3644 = vst [vmem:[#allocation21 + $0x28] sm:$0xff] %v3606_v49  ;;  %2835 = vadd.xlane.f32.xlu1 %v2834_v33  ;;  %v2852_v21 = vsel %vm318_vm1, %v6836_v32, 0.0  ;;  %v6842_v51 = vpop.eup %4322  ;;  %v2795_v49 = vmul.f32 1.442695, %v2722_v59  ;;  %v7482_v33 = vld [vmem:[#allocation115_spill] sm:$0xff]  ;;  %v7491_v59 = vld [vmem:[#allocation73_spill] sm:$0xff] }
 0x964   :  { %v2286_v34 = vmul.f32 0.5, %v2248_v14  ;;  %v2858_v5 = vsel %vm318_vm1, %v6842_v51, 0.0  ;;  %v6849_v56 = vpop.eup %4324  ;;  %v2724_v39 = vsub.f32 %v7482_v33, %v6698_v42  ;;  %v2757_v24 = vmul.f32 1.442695, %v2703_v54  ;;  %v7484_v14 = vld [vmem:[#allocation124_spill] sm:$0xff] }
 0x965   :  { %v2864_v61 = vsel %vm318_vm1, %v6849_v56, 0.0  ;;  %v6855_v30 = vpop.eup %4326  ;;  %v2173_v54 = vmul.f32 0.5, %v2135_v22 }
 0x966   :  { %v2870_v46 = vsel %vm318_vm1, %v6855_v30, 0.0  ;;  %v6865_v40 = vpop.eup %4328  ;;  %v2799_v38 = vmul.f32 1.442695, %v2724_v39 }
 0x967   :  { %2841 = vadd.xlane.f32.xlu1 %v2840_v13  ;;  %v2876_v17 = vsel %vm318_vm1, %v6865_v40, 0.0  ;;  %v6873_v7 = vpop.eup %4330 }
 0x968   :  { %v2882_v13 = vsel %vm318_vm1, %v6873_v7, 0.0  ;;  %v6883_v10 = vpop.eup %4332 }
 0x969   :  { %v2888_v42 = vsel %vm318_vm1, %v6883_v10, 0.0 }
 0x96b   :  { %2847 = vadd.xlane.f32.xlu1 %v2846_v12  ;;  %v7483_v12 = vld [vmem:[#allocation126_spill] sm:$0xff] }
 0x96c   :  { %v2705_v44 = vsub.f32 %v7484_v14, %v7483_v12 }
 0x96e   :  { %v2761_v1 = vmul.f32 1.442695, %v2705_v44 }
 0x96f   :  { %2853 = vadd.xlane.f32.xlu1 %v2852_v21  ;;  %v6889_v21 = vpop.eup %4334 }
 0x971   :  { %3441 = vrot.lane.b32.xlu0 %v2286_v34, %s4734_s14 }
 0x973   :  { %2859 = vadd.xlane.f32.xlu1 %v2858_v5  ;;  %v7486_v5 = vld [vmem:[#allocation125_spill] sm:$0xff] }
 0x974   :  { %v2707_v23 = vsub.f32 %v7486_v5, %v7485_v43  ;;  %v7498_v5 = vld [vmem:[#allocation107_spill] sm:$0xff] }
 0x977   :  { %2865 = vadd.xlane.f32.xlu1 %v2864_v61  ;;  %v2894_v61 = vsel %vm318_vm1, %v6889_v21, 0.0 }
 0x97b   :  { %2871 = vadd.xlane.f32.xlu1 %v2870_v46  ;;  %v7489_v46 = vld [vmem:[#allocation130_spill] sm:$0xff] }
 0x97e   :  { %v2821_v19 = vpop.xlane.xlu0 %2820 }
 0x97f   :  { %4336 = vrcp.f32 %v2821_v19  ;;  %2877 = vadd.xlane.f32.xlu1 %v2876_v17 }
 0x980   :  { %4338 = vpow2.f32 %v2791_v20  ;;  %v7490_v20 = vld [vmem:[#allocation105_spill] sm:$0xff] }
 0x981   :  { %4340 = vpow2.f32 %v2749_v4  ;;  %v2709_v11 = vsub.f32 %v7490_v20, %v7489_v46  ;;  %v2765_v4 = vmul.f32 1.442695, %v2707_v23  ;;  %v7500_v20 = vld [vmem:[#allocation139_spill] sm:$0xff] }
 0x982   :  { %4342 = vpow2.f32 %v2795_v49 }
 0x983   :  { %2883 = vadd.xlane.f32.xlu1 %v2882_v13  ;;  %4344 = vpow2.f32 %v2753_v8  ;;  %v2769_v33 = vmul.f32 1.442695, %v2709_v11  ;;  %v7493_v8 = vld [vmem:[#allocation133_spill] sm:$0xff]  ;;  %v7494_v13 = vld [vmem:[#allocation106_spill] sm:$0xff]  ;;  %v7501_v11 = vld [vmem:[#allocation108_spill] sm:$0xff] }
 0x986   :  { %v2824_v28 = vpop.xlane.xlu1 %2823 }
 0x987   :  { %4346 = vrcp.f32 %v2824_v28  ;;  %2889 = vadd.xlane.f32.xlu1 %v2888_v42  ;;  %v7495_v28 = vld [vmem:[#allocation36_spill] sm:$0xff] }
 0x988   :  { %4348 = vpow2.f32 %v2757_v24  ;;  %v2711_v24 = vsub.f32 %v7494_v13, %v7493_v8  ;;  %v7504_v13 = vld [vmem:[#allocation145_spill] sm:$0xff] }
 0x989   :  { %v4337_v34 = vpop.eup %4336  ;;  %4350 = vpow2.f32 %v2799_v38 }
 0x98a   :  { %v2997_v15 = vmul.f32 %v4337_v34, %v6713_v62  ;;  %v6896_v3 = vpop.eup %4338  ;;  %4352 = vpow2.f32 %v2761_v1  ;;  %v7496_v34 = vld [vmem:[#allocation75_spill] sm:$0xff]  ;;  %v2773_v43 = vmul.f32 1.442695, %v2711_v24  ;;  %v7505_v24 = vld [vmem:[#allocation110_spill] sm:$0xff] }
 0x98b   :  { %2895 = vadd.xlane.f32.xlu1 %v2894_v61  ;;  %v6898_v55 = vpop.eup %4340  ;;  %v2900_v37 = vsel %vm318_vm1, %v6896_v3, 0.0  ;;  %4354 = vpow2.f32 %v2765_v4 }
 0x98c   :  { %v3491_v16 = vsel %vm318_vm1, %v2997_v15, %v7488_v36  ;;  %v6912_v19 = vpop.eup %4342  ;;  %v2837_v57 = vsel %vm318_vm1, %v6898_v55, 0.0  ;;  %4356 = vtanh.f32 %v2173_v54  ;;  %v7499_v15 = vld [vmem:[#allocation128_spill] sm:$0xff] }
 0x98d   :  { %v3529_v62 = vsel %vm1939_vm4, %v3491_v16, %v7491_v59  ;;  %v6917_v35 = vpop.eup %4344  ;;  %v2906_v12 = vsel %vm318_vm1, %v6912_v19, 0.0  ;;  %4358 = vpow2.f32 %v2769_v33  ;;  %v2715_v59 = vsub.f32 %v7501_v11, %v7500_v20 }
 0x98e   :  { %v3568_v50 = vsel %vm3561_vm5, %v3529_v62, %v7492_v26  ;;  %v2843_v44 = vsel %vm318_vm1, %v6917_v35, 0.0  ;;  %4360 = vpow2.f32 %v2773_v43 }
 0x98f   :  { %v3607_v17 = vsel %vm3600_vm6, %v3568_v50, 0.0  ;;  %2901 = vadd.xlane.f32.xlu1 %v2900_v37  ;;  %v2781_v50 = vmul.f32 1.442695, %v2715_v59  ;;  %v7502_v37 = vld [vmem:[#allocation142_spill] sm:$0xff] }
 0x990   :  { %3645 = vst [vmem:[#allocation21 + $0x30] sm:$0xff] %v3607_v17  ;;  %2838 = vadd.xlane.f32.xlu0 %v2837_v57  ;;  %v7503_v17 = vld [vmem:[#allocation109_spill] sm:$0xff] }
 0x991   :  { %v4347_v49 = vpop.eup %4346  ;;  %v2717_v57 = vsub.f32 %v7503_v17, %v7502_v37  ;;  %v7509_v17 = vld [vmem:[#allocation117_spill] sm:$0xff] }
 0x992   :  { %v6919_v39 = vpop.eup %4348  ;;  %v2998_v38 = vmul.f32 %v4347_v49, %v6727_v53  ;;  %v7497_v53 = vld [vmem:[#allocation136_spill] sm:$0xff] }
 0x993   :  { %v6926_v14 = vpop.eup %4350  ;;  %2907 = vadd.xlane.f32.xlu1 %v2906_v12  ;;  %v2713_v23 = vsub.f32 %v7498_v5, %v7497_v53  ;;  %v2849_v36 = vsel %vm318_vm1, %v6919_v39, 0.0  ;;  %v2785_v8 = vmul.f32 1.442695, %v2717_v57  ;;  %v2136_v57 = vadd.f32 %v6791_v27, %v7509_v17  ;;  %v7511_v27 = vld [vmem:[#allocation74_spill] sm:$0xff] }
 0x994   :  { %v3492_v42 = vsel %vm318_vm1, %v2998_v38, %v7495_v28  ;;  %2844 = vadd.xlane.f32.xlu0 %v2843_v44  ;;  %v2912_v6 = vsel %vm318_vm1, %v6926_v14, 0.0  ;;  %v6943_v16 = vpop.eup %4352  ;;  %v2719_v38 = vsub.f32 %v7505_v24, %v7504_v13 }
 0x995   :  { %v3530_v1 = vsel %vm1939_vm4, %v3492_v42, %v7496_v34  ;;  %v2777_v46 = vmul.f32 1.442695, %v2713_v23  ;;  %v2855_v62 = vsel %vm318_vm1, %v6943_v16, 0.0  ;;  %v6949_v4 = vpop.eup %4354  ;;  %v7506_v34 = vld [vmem:[#allocation112_spill] sm:$0xff]  ;;  %v7507_v23 = vld [vmem:[#allocation150_spill] sm:$0xff]  ;;  %v2174_v24 = vmul.f32 0.5, %v2136_v57 }
 0x996   :  { %v3569_v61 = vsel %vm3561_vm5, %v3530_v1, %v7499_v15  ;;  %v4357_v26 = vpop.eup %4356  ;;  %v2861_v49 = vsel %vm318_vm1, %v6949_v4, 0.0  ;;  %v2789_v42 = vmul.f32 1.442695, %v2719_v38  ;;  %v2721_v1 = vsub.f32 %v7506_v34, %v6686_v58  ;;  %v7508_v15 = vld [vmem:[#allocation114_spill] sm:$0xff] }
 0x997   :  { %v3608_v22 = vsel %vm3600_vm6, %v3569_v61, 0.0  ;;  %2913 = vadd.xlane.f32.xlu1 %v2912_v6  ;;  %4362 = vpow2.f32 %v2777_v46  ;;  %v6953_v54 = vpop.eup %4358  ;;  %v2249_v33 = vadd.f32 1.0, %v4357_v26  ;;  %v2723_v61 = vsub.f32 %v7508_v15, %v7507_v23  ;;  %v6986_v26 = vpop.permute.xlu1 %3435  ;;  %v7513_v15 = vld [vmem:[#allocation38_spill] sm:$0xff] }
 0x998   :  { %3646 = vst [vmem:[#allocation21 + $0x38] sm:$0xff] %v3608_v22  ;;  %2850 = vadd.xlane.f32.xlu0 %v2849_v36  ;;  %4364 = vpow2.f32 %v2781_v50  ;;  %v2867_v12 = vsel %vm318_vm1, %v6953_v54, 0.0  ;;  %v6961_v44 = vpop.eup %4360  ;;  %v2793_v5 = vmul.f32 1.442695, %v2721_v1  ;;  %v6976_v36 = vpop.permute.xlu0 %3433  ;;  %v7512_v1 = vld [vmem:[#allocation132_spill] sm:$0xff] }
 0x999   :  { %v2287_v28 = vmul.f32 0.5, %v2249_v33  ;;  %4366 = vpow2.f32 %v2785_v8  ;;  %v2873_v43 = vsel %vm318_vm1, %v6961_v44, 0.0  ;;  %v2797_v58 = vmul.f32 1.442695, %v2723_v61 }
 0x99a   :  { %4368 = vpow2.f32 %v2789_v42 }
 0x99b   :  { %4370 = vpow2.f32 %v2793_v5 }
 0x99c   :  { %2856 = vadd.xlane.f32.xlu0 %v2855_v62  ;;  %4372 = vpow2.f32 %v2797_v58 }
 0x9a0   :  { %2862 = vadd.xlane.f32.xlu0 %v2861_v49 }
 0x9a1   :  { %v6967_v53 = vpop.eup %4362 }
 0x9a2   :  { %v2879_v6 = vsel %vm318_vm1, %v6967_v53, 0.0  ;;  %v6974_v22 = vpop.eup %4364 }
 0x9a3   :  { %v2885_v46 = vsel %vm318_vm1, %v6974_v22, 0.0  ;;  %v6980_v20 = vpop.eup %4366 }
 0x9a4   :  { %2868 = vadd.xlane.f32.xlu0 %v2867_v12  ;;  %v2891_v59 = vsel %vm318_vm1, %v6980_v20, 0.0  ;;  %v6984_v62 = vpop.eup %4368 }
 0x9a5   :  { %v2897_v50 = vsel %vm318_vm1, %v6984_v62, 0.0  ;;  %v6990_v37 = vpop.eup %4370 }
 0x9a6   :  { %v2903_v33 = vsel %vm318_vm1, %v6990_v37, 0.0  ;;  %v6996_v8 = vpop.eup %4372 }
 0x9a7   :  { %v2909_v12 = vsel %vm318_vm1, %v6996_v8, 0.0 }
 0x9a8   :  { %2874 = vadd.xlane.f32.xlu0 %v2873_v43  ;;  %3443 = vrot.lane.b32.xlu1 %v2287_v28, %s4734_s14  ;;  %v7510_v28 = vld [vmem:[#allocation37_spill] sm:$0xff] }
 0x9ac   :  { %2880 = vadd.xlane.f32.xlu0 %v2879_v6  ;;  %v7514_v6 = vld [vmem:[#allocation77_spill] sm:$0xff] }
 0x9b0   :  { %2886 = vadd.xlane.f32.xlu0 %v2885_v46  ;;  %v7515_v46 = vld [vmem:[#allocation131_spill] sm:$0xff] }
 0x9b3   :  { %v2827_v11 = vpop.xlane.xlu0 %2826 }
 0x9b4   :  { %4374 = vrcp.f32 %v2827_v11  ;;  %2892 = vadd.xlane.f32.xlu0 %v2891_v59 }
 0x9b8   :  { %2898 = vadd.xlane.f32.xlu0 %v2897_v50 }
 0x9bb   :  { %v2830_v49 = vpop.xlane.xlu1 %2829 }
 0x9bc   :  { %4376 = vrcp.f32 %v2830_v49  ;;  %2904 = vadd.xlane.f32.xlu0 %v2903_v33  ;;  %v7017_v49 = vpop.permute.xlu0 %3437 }
 0x9bd   :  { %4378 = vtanh.f32 %v2174_v24 }
 0x9be   :  { %v4375_v13 = vpop.eup %4374 }
 0x9bf   :  { %v2999_v38 = vmul.f32 %v4375_v13, %v6751_v52  ;;  %v7019_v33 = vpop.permute.xlu1 %3439 }
 0x9c0   :  { %2910 = vadd.xlane.f32.xlu0 %v2909_v12 }
 0x9c1   :  { %v3493_v42 = vsel %vm318_vm1, %v2999_v38, %v7510_v28  ;;  %v7516_v28 = vld [vmem:[#allocation39_spill] sm:$0xff] }
 0x9c2   :  { %v3531_v34 = vsel %vm1939_vm4, %v3493_v42, %v7511_v27  ;;  %v7517_v27 = vld [vmem:[#allocation76_spill] sm:$0xff] }
 0x9c3   :  { %v3570_v43 = vsel %vm3561_vm5, %v3531_v34, %v7512_v1  ;;  %v7518_v1 = vld [vmem:[#allocation135_spill] sm:$0xff] }
 0x9c4   :  { %v3609_v5 = vsel %vm3600_vm6, %v3570_v43, 0.0 }
 0x9c5   :  { %3647 = vst [vmem:[#allocation21 + $0x40] sm:$0xff] %v3609_v5 }
 0x9c6   :  { %v4377_v23 = vpop.eup %4376 }
 0x9c7   :  { %v3000_v52 = vmul.f32 %v4377_v23, %v6765_v48  ;;  %v4379_v50 = vpop.eup %4378 }
 0x9c8   :  { %v2250_v17 = vadd.f32 1.0, %v4379_v50 }
 0x9c9   :  { %v3494_v61 = vsel %vm318_vm1, %v3000_v52, %v7513_v15 }
 0x9ca   :  { %v3532_v58 = vsel %vm1939_vm4, %v3494_v61, %v7514_v6  ;;  %v2288_v57 = vmul.f32 0.5, %v2250_v17  ;;  %v7519_v61 = vld [vmem:[#allocation40_spill] sm:$0xff] }
 0x9cb   :  { %v3571_v11 = vsel %vm3561_vm5, %v3532_v58, %v7515_v46  ;;  %v7520_v46 = vld [vmem:[#allocation78_spill] sm:$0xff] }
 0x9cc   :  { %v3610_v59 = vsel %vm3600_vm6, %v3571_v11, 0.0 }
 0x9cd   :  { %3648 = vst [vmem:[#allocation21 + $0x48] sm:$0xff] %v3610_v59  ;;  %v7521_v59 = vld [vmem:[#allocation134_spill] sm:$0xff] }
 0x9d6   :  { %3445 = vrot.lane.b32.xlu0 %v2288_v57, %s4734_s14 }
 0x9e8   :  { %v2833_v48 = vpop.xlane.xlu0 %2832 }
 0x9e9   :  { %4380 = vrcp.f32 %v2833_v48 }
 0x9f0   :  { %v2836_v13 = vpop.xlane.xlu1 %2835 }
 0x9f1   :  { %4382 = vrcp.f32 %v2836_v13 }
 0x9f3   :  { %v4381_v24 = vpop.eup %4380 }
 0x9f4   :  { %v3001_v38 = vmul.f32 %v4381_v24, %v6795_v45  ;;  %v2842_v12 = vpop.xlane.xlu1 %2841 }
 0x9f5   :  { %4384 = vrcp.f32 %v2842_v12 }
 0x9f6   :  { %v3495_v42 = vsel %vm318_vm1, %v3001_v38, %v7516_v28  ;;  %v7523_v38 = vld [vmem:[#allocation80_spill] sm:$0xff]  ;;  %v7524_v28 = vld [vmem:[#allocation137_spill] sm:$0xff] }
 0x9f7   :  { %v3533_v34 = vsel %vm1939_vm4, %v3495_v42, %v7517_v27 }
 0x9f8   :  { %v3572_v43 = vsel %vm3561_vm5, %v3533_v34, %v7518_v1  ;;  %v2848_v5 = vpop.xlane.xlu1 %2847  ;;  %v7525_v1 = vld [vmem:[#allocation44_spill] sm:$0xff] }
 0x9f9   :  { %v3611_v23 = vsel %vm3600_vm6, %v3572_v43, 0.0  ;;  %4386 = vrcp.f32 %v2848_v5 }
 0x9fa   :  { %3649 = vst [vmem:[#allocation21 + $0x50] sm:$0xff] %v3611_v23  ;;  %v7526_v23 = vld [vmem:[#allocation82_spill] sm:$0xff] }
 0x9fb   :  { %v4383_v52 = vpop.eup %4382 }
 0x9fc   :  { %v3002_v15 = vmul.f32 %v4383_v52, %v6811_v31  ;;  %v2854_v45 = vpop.xlane.xlu1 %2853  ;;  %v7522_v31 = vld [vmem:[#allocation42_spill] sm:$0xff] }
 0x9fd   :  { %4388 = vrcp.f32 %v2854_v45 }
 0x9fe   :  { %v3496_v6 = vsel %vm318_vm1, %v3002_v15, %v7519_v61  ;;  %v7527_v15 = vld [vmem:[#allocation140_spill] sm:$0xff] }
 0x9ff   :  { %v4385_v58 = vpop.eup %4384  ;;  %v3534_v11 = vsel %vm1939_vm4, %v3496_v6, %v7520_v46 }
 0xa00   :  { %v3573_v50 = vsel %vm3561_vm5, %v3534_v11, %v7521_v59  ;;  %v3004_v17 = vmul.f32 %v4385_v58, %v6824_v0  ;;  %v2860_v57 = vpop.xlane.xlu1 %2859  ;;  %v7528_v58 = vld [vmem:[#allocation46_spill] sm:$0xff]  ;;  %v7529_v59 = vld [vmem:[#allocation84_spill] sm:$0xff] }
 0xa01   :  { %v3612_v48 = vsel %vm3600_vm6, %v3573_v50, 0.0  ;;  %4390 = vrcp.f32 %v2860_v57 }
 0xa02   :  { %3650 = vst [vmem:[#allocation21 + $0x58] sm:$0xff] %v3612_v48  ;;  %v3498_v13 = vsel %vm318_vm1, %v3004_v17, %v7522_v31  ;;  %v7530_v17 = vld [vmem:[#allocation143_spill] sm:$0xff] }
 0xa03   :  { %v4387_v24 = vpop.eup %4386  ;;  %v3536_v12 = vsel %vm1939_vm4, %v3498_v13, %v7523_v38  ;;  %v7531_v13 = vld [vmem:[#allocation48_spill] sm:$0xff] }
 0xa04   :  { %v3575_v42 = vsel %vm3561_vm5, %v3536_v12, %v7524_v28  ;;  %v3006_v27 = vmul.f32 %v4387_v24, %v6830_v25  ;;  %v2866_v34 = vpop.xlane.xlu1 %2865  ;;  %v7532_v12 = vld [vmem:[#allocation86_spill] sm:$0xff] }
 0xa05   :  { %v3614_v0 = vsel %vm3600_vm6, %v3575_v42, 0.0  ;;  %4392 = vrcp.f32 %v2866_v34  ;;  %v7533_v42 = vld [vmem:[#allocation146_spill] sm:$0xff] }
 0xa06   :  { %3652 = vst [vmem:[#allocation21 + $0x68] sm:$0xff] %v3614_v0  ;;  %v3500_v43 = vsel %vm318_vm1, %v3006_v27, %v7525_v1  ;;  %v7534_v1 = vld [vmem:[#allocation50_spill] sm:$0xff] }
 0xa07   :  { %v4389_v5 = vpop.eup %4388  ;;  %v3538_v52 = vsel %vm1939_vm4, %v3500_v43, %v7526_v23  ;;  %v7535_v23 = vld [vmem:[#allocation88_spill] sm:$0xff] }
 0xa08   :  { %v3577_v45 = vsel %vm3561_vm5, %v3538_v52, %v7527_v15  ;;  %v3008_v61 = vmul.f32 %v4389_v5, %v6836_v32  ;;  %v2872_v6 = vpop.xlane.xlu1 %2871  ;;  %v7536_v15 = vld [vmem:[#allocation148_spill] sm:$0xff] }
 0xa09   :  { %v3616_v25 = vsel %vm3600_vm6, %v3577_v45, 0.0  ;;  %4394 = vrcp.f32 %v2872_v6 }
 0xa0a   :  { %3654 = vst [vmem:[#allocation21 + $0x78] sm:$0xff] %v3616_v25  ;;  %v3502_v46 = vsel %vm318_vm1, %v3008_v61, %v7528_v58  ;;  %v7537_v25 = vld [vmem:[#allocation52_spill] sm:$0xff] }
 0xa0b   :  { %v4391_v11 = vpop.eup %4390  ;;  %v3540_v50 = vsel %vm1939_vm4, %v3502_v46, %v7529_v59 }
 0xa0c   :  { %v3579_v57 = vsel %vm3561_vm5, %v3540_v50, %v7530_v17  ;;  %v3010_v48 = vmul.f32 %v4391_v11, %v6842_v51  ;;  %v2878_v31 = vpop.xlane.xlu1 %2877  ;;  %v7538_v11 = vld [vmem:[#allocation90_spill] sm:$0xff] }
 0xa0d   :  { %v3618_v32 = vsel %vm3600_vm6, %v3579_v57, 0.0  ;;  %4396 = vrcp.f32 %v2878_v31  ;;  %v7539_v31 = vld [vmem:[#allocation54_spill] sm:$0xff] }
 0xa0e   :  { %3656 = vst [vmem:[#allocation21 + $0x88] sm:$0xff] %v3618_v32  ;;  %v3504_v24 = vsel %vm318_vm1, %v3010_v48, %v7531_v13  ;;  %v7085_v48 = vpop.permute.xlu0 %3441 }
 0xa0f   :  { %v4393_v38 = vpop.eup %4392  ;;  %v3542_v28 = vsel %vm1939_vm4, %v3504_v24, %v7532_v12  ;;  %v7540_v24 = vld [vmem:[#allocation92_spill] sm:$0xff] }
 0xa10   :  { %v3581_v27 = vsel %vm3561_vm5, %v3542_v28, %v7533_v42  ;;  %v3012_v34 = vmul.f32 %v4393_v38, %v6849_v56  ;;  %v2884_v0 = vpop.xlane.xlu1 %2883 }
 0xa11   :  { %v3620_v51 = vsel %vm3600_vm6, %v3581_v27, 0.0  ;;  %4398 = vrcp.f32 %v2884_v0  ;;  %v7541_v27 = vld [vmem:[#allocation56_spill] sm:$0xff] }
 0xa12   :  { %3658 = vst [vmem:[#allocation21 + $0x98] sm:$0xff] %v3620_v51  ;;  %v3506_v43 = vsel %vm318_vm1, %v3012_v34, %v7534_v1  ;;  %v7542_v51 = vld [vmem:[#allocation94_spill] sm:$0xff] }
 0xa13   :  { %v4395_v5 = vpop.eup %4394  ;;  %v3544_v52 = vsel %vm1939_vm4, %v3506_v43, %v7535_v23 }
 0xa14   :  { %v3583_v45 = vsel %vm3561_vm5, %v3544_v52, %v7536_v15  ;;  %v3014_v61 = vmul.f32 %v4395_v5, %v6855_v30  ;;  %v2890_v6 = vpop.xlane.xlu1 %2889  ;;  %v7543_v52 = vld [vmem:[#allocation58_spill] sm:$0xff] }
 0xa15   :  { %v3622_v56 = vsel %vm3600_vm6, %v3583_v45, 0.0  ;;  %4400 = vrcp.f32 %v2890_v6 }
 0xa16   :  { %3660 = vst [vmem:[#allocation21 + $0xa8] sm:$0xff] %v3622_v56  ;;  %v3508_v58 = vsel %vm318_vm1, %v3014_v61, %v7537_v25  ;;  %v7544_v61 = vld [vmem:[#allocation96_spill] sm:$0xff] }
 0xa17   :  { %v4397_v46 = vpop.eup %4396  ;;  %v3546_v59 = vsel %vm1939_vm4, %v3508_v58, %v7538_v11  ;;  %v7545_v58 = vld [vmem:[#allocation60_spill] sm:$0xff] }
 0xa18   :  { %v3585_v50 = vsel %vm3561_vm5, %v3546_v59, %v6702_v18  ;;  %v3016_v17 = vmul.f32 %v4397_v46, %v6865_v40  ;;  %v2896_v57 = vpop.xlane.xlu1 %2895  ;;  %v7546_v59 = vld [vmem:[#allocation98_spill] sm:$0xff] }
 0xa19   :  { %v3624_v30 = vsel %vm3600_vm6, %v3585_v50, 0.0  ;;  %4402 = vrcp.f32 %v2896_v57 }
 0xa1a   :  { %3662 = vst [vmem:[#allocation21 + $0xb8] sm:$0xff] %v3624_v30  ;;  %v3510_v32 = vsel %vm318_vm1, %v3016_v17, %v7539_v31 }
 0xa1b   :  { %v4399_v13 = vpop.eup %4398  ;;  %v3548_v38 = vsel %vm1939_vm4, %v3510_v32, %v7540_v24  ;;  %v7547_v32 = vld [vmem:[#allocation62_spill] sm:$0xff] }
 0xa1c   :  { %v3587_v12 = vsel %vm3561_vm5, %v3548_v38, %v6742_v41  ;;  %v3018_v18 = vmul.f32 %v4399_v13, %v6873_v7  ;;  %v2902_v40 = vpop.xlane.xlu1 %2901  ;;  %v7548_v38 = vld [vmem:[#allocation100_spill] sm:$0xff] }
 0xa1d   :  { %v3626_v28 = vsel %vm3600_vm6, %v3587_v12, 0.0  ;;  %4404 = vrcp.f32 %v2902_v40  ;;  %v2839_v42 = vpop.xlane.xlu0 %2838 }
 0xa1e   :  { %3664 = vst [vmem:[#allocation21 + $0xc8] sm:$0xff] %v3626_v28  ;;  %v3512_v34 = vsel %vm318_vm1, %v3018_v18, %v7541_v27  ;;  %4406 = vrcp.f32 %v2839_v42  ;;  %v7549_v18 = vld [vmem:[#allocation41_spill] sm:$0xff]  ;;  %v7550_v28 = vld [vmem:[#allocation79_spill] sm:$0xff] }
 0xa1f   :  { %v4401_v0 = vpop.eup %4400  ;;  %v3550_v1 = vsel %vm1939_vm4, %v3512_v34, %v7542_v51  ;;  %v7551_v34 = vld [vmem:[#allocation138_spill] sm:$0xff] }
 0xa20   :  { %v3589_v43 = vsel %vm3561_vm5, %v3550_v1, %v6780_v9  ;;  %v3020_v41 = vmul.f32 %v4401_v0, %v6883_v10  ;;  %v2908_v7 = vpop.xlane.xlu1 %2907 }
 0xa21   :  { %v3628_v5 = vsel %vm3600_vm6, %v3589_v43, 0.0  ;;  %4408 = vrcp.f32 %v2908_v7  ;;  %v2845_v23 = vpop.xlane.xlu0 %2844 }
 0xa22   :  { %3666 = vst [vmem:[#allocation21 + $0xd8] sm:$0xff] %v3628_v5  ;;  %v3514_v15 = vsel %vm318_vm1, %v3020_v41, %v7543_v52  ;;  %4410 = vrcp.f32 %v2845_v23  ;;  %v7552_v41 = vld [vmem:[#allocation66_spill] sm:$0xff] }
 0xa23   :  { %v4403_v45 = vpop.eup %4402  ;;  %v3552_v6 = vsel %vm1939_vm4, %v3514_v15, %v7544_v61 }
 0xa24   :  { %v3591_v56 = vsel %vm3561_vm5, %v3552_v6, %v6861_v60  ;;  %v3022_v9 = vmul.f32 %v4403_v45, %v6889_v21  ;;  %v7556_v6 = vld [vmem:[#allocation141_spill] sm:$0xff] }
 0xa25   :  { %v3630_v10 = vsel %vm3600_vm6, %v3591_v56, 0.0  ;;  %v2851_v25 = vpop.xlane.xlu0 %2850 }
 0xa26   :  { %3668 = vst [vmem:[#allocation21 + $0xe8] sm:$0xff] %v3630_v10  ;;  %v3516_v46 = vsel %vm318_vm1, %v3022_v9, %v7545_v58  ;;  %4412 = vrcp.f32 %v2851_v25  ;;  %v7557_v58 = vld [vmem:[#allocation45_spill] sm:$0xff] }
 0xa27   :  { %v4405_v11 = vpop.eup %4404  ;;  %v3554_v50 = vsel %vm1939_vm4, %v3516_v46, %v7546_v59 }
 0xa28   :  { %v4407_v17 = vpop.eup %4406  ;;  %v3593_v57 = vsel %vm3561_vm5, %v3554_v50, %v6976_v36  ;;  %v3024_v60 = vmul.f32 %v4405_v11, %v6896_v3  ;;  %v7558_v11 = vld [vmem:[#allocation83_spill] sm:$0xff]  ;;  %v7559_v50 = vld [vmem:[#allocation144_spill] sm:$0xff] }
 0xa29   :  { %v3632_v21 = vsel %vm3600_vm6, %v3593_v57, 0.0  ;;  %v3003_v30 = vmul.f32 %v4407_v17, %v6898_v55  ;;  %v2857_v31 = vpop.xlane.xlu0 %2856 }
 0xa2a   :  { %3670 = vst [vmem:[#allocation21 + $0xf8] sm:$0xff] %v3632_v21  ;;  %v3518_v13 = vsel %vm318_vm1, %v3024_v60, %v7547_v32  ;;  %4414 = vrcp.f32 %v2857_v31  ;;  %v7560_v21 = vld [vmem:[#allocation47_spill] sm:$0xff]  ;;  %v7561_v32 = vld [vmem:[#allocation85_spill] sm:$0xff] }
 0xa2b   :  { %v4409_v24 = vpop.eup %4408  ;;  %v3556_v12 = vsel %vm1939_vm4, %v3518_v13, %v7548_v38  ;;  %v3497_v40 = vsel %vm318_vm1, %v3003_v30, %v7549_v18 }
 0xa2c   :  { %v4411_v36 = vpop.eup %4410  ;;  %v3595_v3 = vsel %vm3561_vm5, %v3556_v12, %v7017_v49  ;;  %v3535_v55 = vsel %vm1939_vm4, %v3497_v40, %v7550_v28  ;;  %v3026_v42 = vmul.f32 %v4409_v24, %v6912_v19  ;;  %v7553_v49 = vld [vmem:[#allocation102_spill] sm:$0xff]  ;;  %v7554_v19 = vld [vmem:[#allocation43_spill] sm:$0xff]  ;;  %v2914_v40 = vpop.xlane.xlu1 %2913 }
 0xa2d   :  { %v3634_v27 = vsel %vm3600_vm6, %v3595_v3, 0.0  ;;  %v3574_v0 = vsel %vm3561_vm5, %v3535_v55, %v7551_v34  ;;  %v3005_v51 = vmul.f32 %v4411_v36, %v6917_v35  ;;  %v2863_v1 = vpop.xlane.xlu0 %2862  ;;  %v7555_v35 = vld [vmem:[#allocation81_spill] sm:$0xff]  ;;  %v7562_v24 = vld [vmem:[#allocation147_spill] sm:$0xff] }
 0xa2e   :  { %3672 = vst [vmem:[#allocation21 + $0x108] sm:$0xff] %v3634_v27  ;;  %v3613_v43 = vsel %vm3600_vm6, %v3574_v0, 0.0  ;;  %v3520_v7 = vsel %vm318_vm1, %v3026_v42, %v7552_v41  ;;  %4416 = vrcp.f32 %v2863_v1  ;;  %v7563_v36 = vld [vmem:[#allocation49_spill] sm:$0xff]  ;;  %v7564_v55 = vld [vmem:[#allocation87_spill] sm:$0xff] }
 0xa2f   :  { %3651 = vst [vmem:[#allocation21 + $0x60] sm:$0xff] %v3613_v43  ;;  %v3558_v5 = vsel %vm1939_vm4, %v3520_v7, %v7553_v49  ;;  %v3499_v23 = vsel %vm318_vm1, %v3005_v51, %v7554_v19  ;;  %v7565_v27 = vld [vmem:[#allocation149_spill] sm:$0xff]  ;;  %v7566_v1 = vld [vmem:[#allocation51_spill] sm:$0xff] }
 0xa30   :  { %v4413_v52 = vpop.eup %4412  ;;  %v3597_v15 = vsel %vm3561_vm5, %v3558_v5, %v7085_v48  ;;  %v3537_v45 = vsel %vm1939_vm4, %v3499_v23, %v7555_v35  ;;  %v7567_v7 = vld [vmem:[#allocation89_spill] sm:$0xff] }
 0xa31   :  { %v3636_v61 = vsel %vm3600_vm6, %v3597_v15, 0.0  ;;  %v3576_v56 = vsel %vm3561_vm5, %v3537_v45, %v7556_v6  ;;  %v3007_v9 = vmul.f32 %v4413_v52, %v6919_v39  ;;  %v2869_v10 = vpop.xlane.xlu0 %2868  ;;  %v7568_v52 = vld [vmem:[#allocation53_spill] sm:$0xff]  ;;  %v7569_v45 = vld [vmem:[#allocation91_spill] sm:$0xff] }
 0xa32   :  { %3674 = vst [vmem:[#allocation21 + $0x118] sm:$0xff] %v3636_v61  ;;  %v3615_v25 = vsel %vm3600_vm6, %v3576_v56, 0.0  ;;  %4418 = vrcp.f32 %v2869_v10  ;;  %v7570_v6 = vld [vmem:[#allocation151_spill] sm:$0xff] }
 0xa33   :  { %3653 = vst [vmem:[#allocation21 + $0x70] sm:$0xff] %v3615_v25  ;;  %v3501_v46 = vsel %vm318_vm1, %v3007_v9, %v7557_v58  ;;  %v7571_v25 = vld [vmem:[#allocation55_spill] sm:$0xff] }
 0xa34   :  { %v4415_v48 = vpop.eup %4414  ;;  %v3539_v59 = vsel %vm1939_vm4, %v3501_v46, %v7558_v11 }
 0xa35   :  { %v3578_v17 = vsel %vm3561_vm5, %v3539_v59, %v7559_v50  ;;  %v3009_v57 = vmul.f32 %v4415_v48, %v6943_v16  ;;  %v2875_v60 = vpop.xlane.xlu0 %2874  ;;  %v7572_v48 = vld [vmem:[#allocation93_spill] sm:$0xff] }
 0xa36   :  { %v3617_v39 = vsel %vm3600_vm6, %v3578_v17, 0.0  ;;  %4420 = vrcp.f32 %v2875_v60  ;;  %v7573_v60 = vld [vmem:[#allocation57_spill] sm:$0xff] }
 0xa37   :  { %3655 = vst [vmem:[#allocation21 + $0x80] sm:$0xff] %v3617_v39  ;;  %v3503_v30 = vsel %vm318_vm1, %v3009_v57, %v7560_v21 }
 0xa38   :  { %v4417_v31 = vpop.eup %4416  ;;  %v3541_v13 = vsel %vm1939_vm4, %v3503_v30, %v7561_v32  ;;  %v7574_v30 = vld [vmem:[#allocation95_spill] sm:$0xff] }
 0xa39   :  { %v3580_v38 = vsel %vm3561_vm5, %v3541_v13, %v7562_v24  ;;  %v3011_v12 = vmul.f32 %v4417_v31, %v6949_v4  ;;  %v2881_v18 = vpop.xlane.xlu0 %2880  ;;  %v7575_v24 = vld [vmem:[#allocation70_spill] sm:$0xff] }
 0xa3a   :  { %v3619_v16 = vsel %vm3600_vm6, %v3580_v38, 0.0  ;;  %4422 = vrcp.f32 %v2881_v18  ;;  %v7576_v38 = vld [vmem:[#allocation59_spill] sm:$0xff] }
 0xa3b   :  { %3657 = vst [vmem:[#allocation21 + $0x90] sm:$0xff] %v3619_v16  ;;  %v3505_v3 = vsel %vm318_vm1, %v3011_v12, %v7563_v36  ;;  %4424 = vrcp.f32 %v2914_v40  ;;  %v7577_v40 = vld [vmem:[#allocation97_spill] sm:$0xff] }
 0xa3c   :  { %v4419_v28 = vpop.eup %4418  ;;  %v3543_v42 = vsel %vm1939_vm4, %v3505_v3, %v7564_v55  ;;  %v7578_v3 = vld [vmem:[#allocation104_spill] sm:$0xff] }
 0xa3d   :  { %v3582_v34 = vsel %vm3561_vm5, %v3543_v42, %v7565_v27  ;;  %v3013_v0 = vmul.f32 %v4419_v28, %v6953_v54  ;;  %v2887_v4 = vpop.xlane.xlu0 %2886  ;;  %v7579_v27 = vld [vmem:[#allocation61_spill] sm:$0xff] }
 0xa3e   :  { %v3621_v51 = vsel %vm3600_vm6, %v3582_v34, 0.0  ;;  %4426 = vrcp.f32 %v2887_v4 }
 0xa3f   :  { %3659 = vst [vmem:[#allocation21 + $0xa0] sm:$0xff] %v3621_v51  ;;  %v3507_v43 = vsel %vm318_vm1, %v3013_v0, %v7566_v1  ;;  %v7580_v51 = vld [vmem:[#allocation99_spill] sm:$0xff] }
 0xa40   :  { %v4421_v41 = vpop.eup %4420  ;;  %v3545_v49 = vsel %vm1939_vm4, %v3507_v43, %v7567_v7 }
 0xa41   :  { %v3584_v5 = vsel %vm3561_vm5, %v3545_v49, %v6704_v47  ;;  %v3015_v19 = vmul.f32 %v4421_v41, %v6961_v44  ;;  %v2893_v23 = vpop.xlane.xlu0 %2892  ;;  %v7581_v41 = vld [vmem:[#allocation65_spill] sm:$0xff] }
 0xa42   :  { %v3623_v54 = vsel %vm3600_vm6, %v3584_v5, 0.0  ;;  %4428 = vrcp.f32 %v2893_v23  ;;  %v7582_v5 = vld [vmem:[#allocation101_spill] sm:$0xff] }
 0xa43   :  { %3661 = vst [vmem:[#allocation21 + $0xb0] sm:$0xff] %v3623_v54  ;;  %v3509_v15 = vsel %vm318_vm1, %v3015_v19, %v7568_v52 }
 0xa44   :  { %v4423_v35 = vpop.eup %4422  ;;  %v3547_v61 = vsel %vm1939_vm4, %v3509_v15, %v7569_v45  ;;  %v3444_v15 = vpop.permute.xlu1 %3443 }
 0xa45   :  { %v3586_v56 = vsel %vm3561_vm5, %v3547_v61, %v7570_v6  ;;  %v3017_v9 = vmul.f32 %v4423_v35, %v6967_v53  ;;  %v2899_v47 = vpop.xlane.xlu0 %2898  ;;  %v4425_v10 = vpop.eup %4424  ;;  %v7584_v35 = vld [vmem:[#allocation103_spill] sm:$0xff] }
 0xa46   :  { %v3625_v44 = vsel %vm3600_vm6, %v3586_v56, 0.0  ;;  %4430 = vrcp.f32 %v2899_v47  ;;  %v3028_v57 = vmul.f32 %v4425_v10, %v6926_v14 }
 0xa47   :  { %3663 = vst [vmem:[#allocation21 + $0xc0] sm:$0xff] %v3625_v44  ;;  %v3511_v58 = vsel %vm318_vm1, %v3017_v9, %v7571_v25 }
 0xa48   :  { %v4427_v46 = vpop.eup %4426  ;;  %v3549_v11 = vsel %vm1939_vm4, %v3511_v58, %v7572_v48  ;;  %v3522_v14 = vsel %vm318_vm1, %v3028_v57, %v7575_v24 }
 0xa49   :  { %v3588_v59 = vsel %vm3561_vm5, %v3549_v11, %v6746_v2  ;;  %v3019_v50 = vmul.f32 %v4427_v46, %v6974_v22  ;;  %v2905_v17 = vpop.xlane.xlu0 %2904  ;;  %v3560_v28 = vsel %vm1939_vm4, %v3522_v14, %v7578_v3 }
 0xa4a   :  { %v3627_v53 = vsel %vm3600_vm6, %v3588_v59, 0.0  ;;  %4432 = vrcp.f32 %v2905_v17 }
 0xa4b   :  { %3665 = vst [vmem:[#allocation21 + $0xd0] sm:$0xff] %v3627_v53  ;;  %v3513_v39 = vsel %vm318_vm1, %v3019_v50, %v7573_v60 }
 0xa4c   :  { %v4429_v21 = vpop.eup %4428  ;;  %v3551_v31 = vsel %vm1939_vm4, %v3513_v39, %v7574_v30 }
 0xa4d   :  { %v3590_v32 = vsel %vm3561_vm5, %v3551_v31, %v6784_v63  ;;  %v3021_v2 = vmul.f32 %v4429_v21, %v6980_v20  ;;  %v2911_v22 = vpop.xlane.xlu0 %2910 }
 0xa4e   :  { %v3629_v13 = vsel %vm3600_vm6, %v3590_v32, 0.0  ;;  %4434 = vrcp.f32 %v2911_v22 }
 0xa4f   :  { %3667 = vst [vmem:[#allocation21 + $0xe0] sm:$0xff] %v3629_v13  ;;  %v3515_v12 = vsel %vm318_vm1, %v3021_v2, %v7576_v38 }
 0xa50   :  { %v4431_v18 = vpop.eup %4430  ;;  %v3553_v16 = vsel %vm1939_vm4, %v3515_v12, %v7577_v40 }
 0xa51   :  { %v3592_v63 = vsel %vm3561_vm5, %v3553_v16, %v6879_v29  ;;  %v3023_v20 = vmul.f32 %v4431_v18, %v6984_v62  ;;  %v3446_v36 = vpop.permute.xlu0 %3445 }
 0xa52   :  { %v3631_v55 = vsel %vm3600_vm6, %v3592_v63, 0.0  ;;  %v3599_v42 = vsel %vm3561_vm5, %v3560_v28, %v3446_v36 }
 0xa53   :  { %3669 = vst [vmem:[#allocation21 + $0xf0] sm:$0xff] %v3631_v55  ;;  %v3517_v34 = vsel %vm318_vm1, %v3023_v20, %v7579_v27  ;;  %v3638_v0 = vsel %vm3600_vm6, %v3599_v42, 0.0 }
 0xa54   :  { %v4433_v4 = vpop.eup %4432  ;;  %v3555_v29 = vsel %vm1939_vm4, %v3517_v34, %v7580_v51  ;;  %3676 = vst [vmem:[#allocation21 + $0x128] sm:$0xff] %v3638_v0 }
 0xa55   :  { %v3594_v62 = vsel %vm3561_vm5, %v3555_v29, %v6986_v26  ;;  %v3025_v1 = vmul.f32 %v4433_v4, %v6990_v37  ;;  %v7583_v26 = vld [vmem:[#allocation69_spill] sm:$0xff] }
 0xa56   :  { %v3633_v43 = vsel %vm3600_vm6, %v3594_v62, 0.0 }
 0xa57   :  { %3671 = vst [vmem:[#allocation21 + $0x100] sm:$0xff] %v3633_v43  ;;  %v3519_v7 = vsel %vm318_vm1, %v3025_v1, %v7581_v41 }
 0xa58   :  { %v4435_v49 = vpop.eup %4434  ;;  %v3557_v19 = vsel %vm1939_vm4, %v3519_v7, %v7582_v5 }
 0xa59   :  { %v3596_v23 = vsel %vm3561_vm5, %v3557_v19, %v7019_v33  ;;  %v3027_v54 = vmul.f32 %v4435_v49, %v6996_v8 }
 0xa5a   :  { %v3635_v52 = vsel %vm3600_vm6, %v3596_v23, 0.0 }
 0xa5b   :  { %3673 = vst [vmem:[#allocation21 + $0x110] sm:$0xff] %v3635_v52  ;;  %v3521_v37 = vsel %vm318_vm1, %v3027_v54, %v7583_v26 }
 0xa5c   :  { %v3559_v45 = vsel %vm1939_vm4, %v3521_v37, %v7584_v35 }
 0xa5d   :  { %v3598_v61 = vsel %vm3561_vm5, %v3559_v45, %v3444_v15 }
 0xa5e   :  { %v3637_v6 = vsel %vm3600_vm6, %v3598_v61, 0.0 }
 0xa5f   :  { %3675 = vst [vmem:[#allocation21 + $0x120] sm:$0xff] %v3637_v6 }
 0xa60   :  { %4690 = shalt.err (!%p4687_p8)
}
 0xa61   :  { %s4691_s9 = scalar_lea.hbm %s7272_s12, 4864 }
 0xa62   :  { %p4692_p9 = scmp.ne.s32.totalorder %s7272_s12, %s4691_s9  ;;  %p4695_p10 = scmp.lt.u32.totalorder %s4691_s9, %s7272_s12 }
 0xa64   :  { %p4697_p11 = pnand %p4695_p10, %p4692_p9 }
 0xa66   :  { %4700 = shalt.err (!%p4697_p11)
}
 0xa67   :  { %3688 = dma.vmem_to_hbm [thread:$0]  %s3683_s19, 4864, %s7272_s12, [#allocation5], %s4717_s16, %s4717_s16, %s4718_s17  }
 0xa68   :  { %4713 = dma.done.wait [#allocation5], 4864  }
 0xa69   :  { %4714 = vsyncadd [#allocation5], 4294962432 }
 0xa6a   :  { %3692 = vsyncpa [#allocation4], 1 }
 0xa6b   :  { %3693 = vsyncpa [#allocation7], 1 }
 0xa6c   :  { %3694 = vsyncpa [#allocation10], 1 }
 0xa6d   :  { %3695 = vsyncpa [#allocation13], 1 }
 0xa6e   :  { %3696 = vsyncpa [#allocation16], 1 }
 0xa6f   :  { %3697 = vsyncpa [#allocation19], 1 }
 0xa70   :  { %3698 = vsyncpa [#allocation5], 1 }

</bundles_post_ra>
